<compile_context>
chip_gen: v7x
topology: tpu7x:2x2x1
jax: 0.10.0
libtpu: 0.0.40
codegen_flags: <defaults>
</compile_context>

<pallas_src>
import functools

import jax
import jax.numpy as jnp
from jax.experimental import pallas as pl
from jax.experimental.pallas import tpu as pltpu

EPS = 1e-5  # torch.nn.BatchNorm2d default eps
BASIC_OPS = ('none', 'skip_connect', 'max_pool_3x3', 'avg_pool_3x3', 'sep_conv_3x3')

N_NODES = 2        # n_nodes
MULTIPLIER = 2     # multiplier
K_SPLIT = 4        # PC-DARTS channel split factor (self.k)

_VMEM = pl.BlockSpec(memory_space=pltpu.MemorySpace.VMEM)
_SMEM = pl.BlockSpec(memory_space=pltpu.MemorySpace.SMEM)


# ----------------------------- fused cell kernel -----------------------------

def _cell_kernel(w_ops_ref, w_edge_ref,                 # SMEM: (E, 5), (E,)
                 s0_ref, s1_ref, wp0_ref, wp1_ref,      # (C_pp,L) (C_p,L) (C,C_pp) (C,C_p)
                 dw1_ref, pw1_ref, dw2_ref, pw2_ref,    # (E,C4,9) (E,C4,C4) (E,C4,9) (E,C4,C4)
                 masks_ref, invc_ref,                   # (9,L) tap validity, (1,L) 1/count
                 out_ref,                               # (multiplier*C, L)
                 *, C, C4, W, L, n_nodes, groups):
    masks = masks_ref[...]                              # (9, L) float {0,1}
    bmask = masks > 0.5                                 # hoisted bool masks for maxpool
    inv_cnt = invc_ref[...]                             # (1, L)
    offs = tuple(dh * W + dw for dh in (-1, 0, 1) for dw in (-1, 0, 1))
    inv_l = 1.0 / float(L)

    def bn(y):
        # BatchNorm2d(affine=False) training forward: biased batch stats over (N,H,W)
        # == the lane axis.  One-pass sum / sum-of-squares.
        mean = jnp.sum(y, axis=1, keepdims=True) * inv_l
        ex2 = jnp.sum(y * y, axis=1, keepdims=True) * inv_l
        var = ex2 - mean * mean
        return (y - mean) * jax.lax.rsqrt(var + EPS)

    def shift(x, off):
        # shifted[:, l] = x[:, (l + off) % L]; any wrap across a row / image boundary is
        # killed by the tap masks.
        if off == 0:
            return x
        return pltpu.roll(x, (-off) % L, axis=1)

    def conv1x1_bn(x, w):                               # w (C_out, C_in), x (C_in, L)
        return bn(jnp.dot(w, x, preferred_element_type=jnp.float32))

    def masked_taps_of(x):
        # 9 zero-padded 3x3 taps of x (boundary lanes zeroed): one roll + one mul each.
        return [shift(x, off) * masks[t:t + 1, :] for t, off in enumerate(offs)]

    def dw3x3(relu_taps, wtap):                         # depthwise 3x3 on masked ReLU taps
        acc = relu_taps[0] * wtap[:, 0:1]
        for t in range(1, 9):
            acc = acc + relu_taps[t] * wtap[:, t:t + 1]
        return acc

    def maxpool3_bn(mtaps):                             # MaxPool2d(3,1,1) + BN
        acc = mtaps[4]                                  # center tap always valid
        for t in range(9):
            if t == 4:
                continue
            acc = jnp.maximum(acc, jnp.where(bmask[t:t + 1, :], mtaps[t], -jnp.inf))
        return bn(acc)

    def avgpool3_bn(mtaps):                             # AvgPool2d(3,1,1, count_include_pad=False) + BN
        acc = mtaps[0]
        for t in range(1, 9):
            acc = acc + mtaps[t]
        return bn(acc * inv_cnt)

    def make_state_cache(x_cl):
        # Everything that depends only on the state (not the edge): shared by all edges
        # consuming this state.
        xt = x_cl[0:C4, :]
        xb = x_cl[C4:C, :]
        mtaps = masked_taps_of(xt)                      # shared: avgpool, maxpool, sep dw1
        rtaps = [jnp.maximum(t, 0.0) for t in mtaps]    # relu(x) taps (zero pad stays exact)
        return dict(xt=xt, xb=xb,
                    mp=maxpool3_bn(mtaps), ap=avgpool3_bn(mtaps), rtaps=rtaps)

    def sep_conv3(rtaps, e):                            # SepConv = (ReLU, dw3x3, pw1x1, BN) x 2
        h = conv1x1_bn(dw3x3(rtaps, dw1_ref[e]), pw1_ref[e])
        h_rtaps = [jnp.maximum(t, 0.0) for t in masked_taps_of(h)]
        return conv1x1_bn(dw3x3(h_rtaps, dw2_ref[e]), pw2_ref[e])

    # preproc0 / preproc1 : ReluConvBn = ReLU -> 1x1 conv (no bias) -> BN(affine=False)
    s0 = conv1x1_bn(jnp.maximum(s0_ref[...], 0.0), wp0_ref[...])
    s1 = conv1x1_bn(jnp.maximum(s1_ref[...], 0.0), wp1_ref[...])
    caches = [make_state_cache(s0), make_state_cache(s1)]

    cpg = C // groups                                    # channels per shuffle group (== C4)
    edge = 0
    for i in range(n_nodes):
        acc_a = None                                     # sum_j ww_j * part_x_j   (C4, L)
        acc_b = None                                     # sum_j ww_j * xtemp2_j   (C-C4, L)
        for j in range(2 + i):
            st = caches[j]
            ww = w_edge_ref[edge]
            # scalar SMEM products fold the edge weight into the op weights
            # ('none' op contributes exact zeros -> skipped).
            w_skip = ww * w_ops_ref[edge, 1]
            w_max = ww * w_ops_ref[edge, 2]
            w_avg = ww * w_ops_ref[edge, 3]
            w_sep = ww * w_ops_ref[edge, 4]
            pa = (w_skip * st['xt'] + w_max * st['mp'] + w_avg * st['ap']
                  + w_sep * sep_conv3(st['rtaps'], edge))
            pb = ww * st['xb']
            acc_a = pa if acc_a is None else acc_a + pa
            acc_b = pb if acc_b is None else acc_b + pb
            edge += 1
        # Node output = channel_shuffle(concat([acc_a, acc_b], ch), groups), assembled in
        # registers (single sublane concatenate) and written once as a sublane-aligned
        # contiguous (C, L) slab:  out[ci*groups + gi] = acc_a[ci]            if gi == 0
        #                                              = acc_b[(gi-1)*cpg+ci] otherwise.
        rows = []
        for ci in range(cpg):
            rows.append(acc_a[ci:ci + 1, :])
            for gi in range(1, groups):
                src = (gi - 1) * cpg + ci
                rows.append(acc_b[src:src + 1, :])
        node = jnp.concatenate(rows, axis=0)             # (C, L), already shuffled
        out_ref[i * C:(i + 1) * C, :] = node             # multiplier == n_nodes: every node emitted
        if i + 1 < n_nodes:                              # later nodes consume this state from vregs
            caches.append(make_state_cache(node))


# ----------------------------- layout / constant glue -----------------------------

def to_cl(x):                               # (N,C,H,W) -> (C, N*H*W)   (once at entry)
    N, C, H, W = x.shape
    return jnp.transpose(x, (1, 0, 2, 3)).reshape(C, N * H * W)


def from_cl(y, N, H, W):                    # (C, N*H*W) -> (N,C,H,W)   (once at exit)
    C = y.shape[0]
    return jnp.transpose(y.reshape(C, N, H, W), (1, 0, 2, 3))


def _tap_masks(N, H, W):
    """(9, L) validity mask per 3x3 tap and (1, L) inverse valid-count (L = N*H*W)."""
    l = jnp.arange(N * H * W, dtype=jnp.int32)
    h = (l // W) % H
    w = l % W
    rows = []
    for dh in (-1, 0, 1):
        for dw in (-1, 0, 1):
            ok = (h + dh >= 0) & (h + dh < H) & (w + dw >= 0) & (w + dw < W)
            rows.append(ok)
    masks = jnp.stack(rows, axis=0).astype(jnp.float32)           # (9, L)
    inv_cnt = 1.0 / jnp.sum(masks, axis=0, keepdims=True)         # (1, L)
    return masks, inv_cnt


# ----------------------------- cell forward -----------------------------

def pcdarts_cell_forward(s0, s1, sample, sample2, params):
    N, _, H, W = s0.shape
    C = params['preproc0_w'].shape[0]
    C4 = C // K_SPLIT
    L = N * H * W
    assert MULTIPLIER == N_NODES  # node outputs are assembled in place in the output block

    s0_cl = to_cl(s0)
    s1_cl = to_cl(s1)
    masks, inv_cnt = _tap_masks(N, H, W)

    edges = params['edges']
    dw1 = jnp.stack([p['dw1'].reshape(C4, 9) for p in edges])     # (E, C4, 9)
    pw1 = jnp.stack([p['pw1'] for p in edges])                    # (E, C4, C4)
    dw2 = jnp.stack([p['dw2'].reshape(C4, 9) for p in edges])     # (E, C4, 9)
    pw2 = jnp.stack([p['pw2'] for p in edges])                    # (E, C4, C4)

    kernel = functools.partial(
        _cell_kernel, C=C, C4=C4, W=W, L=L, n_nodes=N_NODES, groups=K_SPLIT)

    out_cl = pl.pallas_call(
        kernel,
        out_shape=jax.ShapeDtypeStruct((MULTIPLIER * C, L), jnp.float32),
        in_specs=[_SMEM, _SMEM] + [_VMEM] * 10,
        out_specs=_VMEM,
    )(sample.astype(jnp.float32), sample2.astype(jnp.float32),
      s0_cl, s1_cl, params['preproc0_w'], params['preproc1_w'],
      dw1, pw1, dw2, pw2, masks, inv_cnt)

    return from_cl(out_cl, N, H, W)


# ----------------------------- main -----------------------------

if __name__ == "__main__":
    N, C_pp, C_p, C, H, W = 2, 16, 16, 16, 8, 8
    C4 = C // K_SPLIT
    num_edges = sum(2 + i for i in range(N_NODES))          # 5
    num_ops = len(BASIC_OPS)

    key = jax.random.PRNGKey(0)
    ks = jax.random.split(key, 6 + num_edges)
    s0 = jax.random.normal(ks[0], (N, C_pp, H, W), jnp.float32)
    s1 = jax.random.normal(ks[1], (N, C_p, H, W), jnp.float32)

    # architecture weights: softmax op weights per edge, softmax edge weights per node
    sample = jax.nn.softmax(jax.random.normal(ks[2], (num_edges, num_ops)), axis=-1)
    raw2 = jax.random.normal(ks[3], (num_edges,))
    chunks, start, end = [], 0, 2
    for i in range(N_NODES):
        chunks.append(jax.nn.softmax(raw2[start:end]))
        start, end = end, end + i + 3
    sample2 = jnp.concatenate(chunks)

    def edge_params(k):
        k1, k2, k3, k4 = jax.random.split(k, 4)
        return {'dw1': 0.3 * jax.random.normal(k1, (C4, 3, 3), jnp.float32),
                'pw1': 0.3 * jax.random.normal(k2, (C4, C4), jnp.float32),
                'dw2': 0.3 * jax.random.normal(k3, (C4, 3, 3), jnp.float32),
                'pw2': 0.3 * jax.random.normal(k4, (C4, C4), jnp.float32)}

    params = {
        'preproc0_w': 0.3 * jax.random.normal(ks[4], (C, C_pp), jnp.float32),
        'preproc1_w': 0.3 * jax.random.normal(ks[5], (C, C_p), jnp.float32),
        'edges': [edge_params(ks[6 + e]) for e in range(num_edges)],
    }

    fwd = jax.jit(pcdarts_cell_forward)
    out = jax.block_until_ready(fwd(s0, s1, sample, sample2, params))
    assert out.shape == (N, MULTIPLIER * C, H, W), out.shape
    assert bool(jnp.all(jnp.isfinite(out)))
    print("KERNEL_OK")
</pallas_src>

<mosaic_0001>
module attributes {stable_mosaic.version = 11 : i64} {
  func.func @_cell_kernel(%arg0: memref<5x5xf32, #tpu.memory_space<smem>>, %arg1: memref<5xf32, #tpu.memory_space<smem>>, %arg2: memref<16x128xf32, #tpu.memory_space<vmem>>, %arg3: memref<16x128xf32, #tpu.memory_space<vmem>>, %arg4: memref<16x16xf32, #tpu.memory_space<vmem>>, %arg5: memref<16x16xf32, #tpu.memory_space<vmem>>, %arg6: memref<5x4x9xf32, #tpu.memory_space<vmem>>, %arg7: memref<5x4x4xf32, #tpu.memory_space<vmem>>, %arg8: memref<5x4x9xf32, #tpu.memory_space<vmem>>, %arg9: memref<5x4x4xf32, #tpu.memory_space<vmem>>, %arg10: memref<9x128xf32, #tpu.memory_space<vmem>>, %arg11: memref<1x128xf32, #tpu.memory_space<vmem>>, %arg12: memref<32x128xf32, #tpu.memory_space<vmem>>) attributes {dimension_semantics = [], scalar_prefetch = 0 : i64, scratch_operands = 0 : i64, tpu.core_type = #tpu.core_type<tc>} {
    %c0 = arith.constant 0 : index
    %c0_0 = arith.constant 0 : index
    %0 = vector.load %arg10[%c0, %c0_0] : memref<9x128xf32, #tpu.memory_space<vmem>>, vector<9x128xf32>
    %cst = arith.constant 5.000000e-01 : f32
    %1 = vector.broadcast %cst : f32 to vector<9x128xf32>
    %2 = arith.cmpf ogt, %0, %1 : vector<9x128xf32>
    %c0_1 = arith.constant 0 : index
    %c0_2 = arith.constant 0 : index
    %3 = vector.load %arg11[%c0_1, %c0_2] : memref<1x128xf32, #tpu.memory_space<vmem>>, vector<1x128xf32>
    %c0_3 = arith.constant 0 : index
    %c0_4 = arith.constant 0 : index
    %4 = vector.load %arg2[%c0_3, %c0_4] : memref<16x128xf32, #tpu.memory_space<vmem>>, vector<16x128xf32>
    %cst_5 = arith.constant 0.000000e+00 : f32
    %5 = vector.broadcast %cst_5 : f32 to vector<16x128xf32>
    %6 = arith.maximumf %4, %5 : vector<16x128xf32>
    %c0_6 = arith.constant 0 : index
    %c0_7 = arith.constant 0 : index
    %7 = vector.load %arg4[%c0_6, %c0_7] : memref<16x16xf32, #tpu.memory_space<vmem>>, vector<16x16xf32>
    %cst_8 = arith.constant dense<0.000000e+00> : vector<16x128xf32>
    %8 = tpu.matmul %7, %6, %cst_8 {dimension_numbers = #tpu.dot_dimension_numbers<[1], [0], [0], [1], [0, 0, 1, 1], [], []>} : vector<16x16xf32>, vector<16x128xf32>, vector<16x128xf32> -> vector<16x128xf32>
    %cst_9 = arith.constant dense<0.000000e+00> : vector<16xf32>
    %9 = vector.multi_reduction <add>, %8, %cst_9 [1] : vector<16x128xf32> to vector<16xf32>
    %10 = vector.shape_cast %9 : vector<16xf32> to vector<16x1xf32>
    %cst_10 = arith.constant 7.812500e-03 : f32
    %11 = vector.broadcast %cst_10 : f32 to vector<16x1xf32>
    %12 = arith.mulf %10, %11 : vector<16x1xf32>
    %13 = arith.mulf %8, %8 : vector<16x128xf32>
    %cst_11 = arith.constant dense<0.000000e+00> : vector<16xf32>
    %14 = vector.multi_reduction <add>, %13, %cst_11 [1] : vector<16x128xf32> to vector<16xf32>
    %15 = vector.shape_cast %14 : vector<16xf32> to vector<16x1xf32>
    %cst_12 = arith.constant 7.812500e-03 : f32
    %16 = vector.broadcast %cst_12 : f32 to vector<16x1xf32>
    %17 = arith.mulf %15, %16 : vector<16x1xf32>
    %18 = arith.mulf %12, %12 : vector<16x1xf32>
    %19 = arith.subf %17, %18 : vector<16x1xf32>
    %20 = vector.broadcast %12 : vector<16x1xf32> to vector<16x128xf32>
    %21 = arith.subf %8, %20 : vector<16x128xf32>
    %cst_13 = arith.constant 9.99999974E-6 : f32
    %22 = vector.broadcast %cst_13 : f32 to vector<16x1xf32>
    %23 = arith.addf %19, %22 : vector<16x1xf32>
    %24 = math.rsqrt %23 : vector<16x1xf32>
    %25 = vector.broadcast %24 : vector<16x1xf32> to vector<16x128xf32>
    %26 = arith.mulf %21, %25 : vector<16x128xf32>
    %c0_14 = arith.constant 0 : index
    %c0_15 = arith.constant 0 : index
    %27 = vector.load %arg3[%c0_14, %c0_15] : memref<16x128xf32, #tpu.memory_space<vmem>>, vector<16x128xf32>
    %cst_16 = arith.constant 0.000000e+00 : f32
    %28 = vector.broadcast %cst_16 : f32 to vector<16x128xf32>
    %29 = arith.maximumf %27, %28 : vector<16x128xf32>
    %c0_17 = arith.constant 0 : index
    %c0_18 = arith.constant 0 : index
    %30 = vector.load %arg5[%c0_17, %c0_18] : memref<16x16xf32, #tpu.memory_space<vmem>>, vector<16x16xf32>
    %cst_19 = arith.constant dense<0.000000e+00> : vector<16x128xf32>
    %31 = tpu.matmul %30, %29, %cst_19 {dimension_numbers = #tpu.dot_dimension_numbers<[1], [0], [0], [1], [0, 0, 1, 1], [], []>} : vector<16x16xf32>, vector<16x128xf32>, vector<16x128xf32> -> vector<16x128xf32>
    %cst_20 = arith.constant dense<0.000000e+00> : vector<16xf32>
    %32 = vector.multi_reduction <add>, %31, %cst_20 [1] : vector<16x128xf32> to vector<16xf32>
    %33 = vector.shape_cast %32 : vector<16xf32> to vector<16x1xf32>
    %cst_21 = arith.constant 7.812500e-03 : f32
    %34 = vector.broadcast %cst_21 : f32 to vector<16x1xf32>
    %35 = arith.mulf %33, %34 : vector<16x1xf32>
    %36 = arith.mulf %31, %31 : vector<16x128xf32>
    %cst_22 = arith.constant dense<0.000000e+00> : vector<16xf32>
    %37 = vector.multi_reduction <add>, %36, %cst_22 [1] : vector<16x128xf32> to vector<16xf32>
    %38 = vector.shape_cast %37 : vector<16xf32> to vector<16x1xf32>
    %cst_23 = arith.constant 7.812500e-03 : f32
    %39 = vector.broadcast %cst_23 : f32 to vector<16x1xf32>
    %40 = arith.mulf %38, %39 : vector<16x1xf32>
    %41 = arith.mulf %35, %35 : vector<16x1xf32>
    %42 = arith.subf %40, %41 : vector<16x1xf32>
    %43 = vector.broadcast %35 : vector<16x1xf32> to vector<16x128xf32>
    %44 = arith.subf %31, %43 : vector<16x128xf32>
    %cst_24 = arith.constant 9.99999974E-6 : f32
    %45 = vector.broadcast %cst_24 : f32 to vector<16x1xf32>
    %46 = arith.addf %42, %45 : vector<16x1xf32>
    %47 = math.rsqrt %46 : vector<16x1xf32>
    %48 = vector.broadcast %47 : vector<16x1xf32> to vector<16x128xf32>
    %49 = arith.mulf %44, %48 : vector<16x128xf32>
    %50 = vector.extract_strided_slice %26 {offsets = [0, 0], sizes = [4, 128], strides = [1, 1]} : vector<16x128xf32> to vector<4x128xf32>
    %51 = vector.extract_strided_slice %26 {offsets = [4, 0], sizes = [12, 128], strides = [1, 1]} : vector<16x128xf32> to vector<12x128xf32>
    %c9_i32 = arith.constant 9 : i32
    %52 = tpu.dynamic_rotate %50 by %c9_i32 dim 1 : vector<4x128xf32>, i32 -> vector<4x128xf32>
    %53 = vector.extract_strided_slice %0 {offsets = [0, 0], sizes = [1, 128], strides = [1, 1]} : vector<9x128xf32> to vector<1x128xf32>
    %54 = vector.broadcast %53 : vector<1x128xf32> to vector<4x128xf32>
    %55 = arith.mulf %52, %54 : vector<4x128xf32>
    %c8_i32 = arith.constant 8 : i32
    %56 = tpu.dynamic_rotate %50 by %c8_i32 dim 1 : vector<4x128xf32>, i32 -> vector<4x128xf32>
    %57 = vector.extract_strided_slice %0 {offsets = [1, 0], sizes = [1, 128], strides = [1, 1]} : vector<9x128xf32> to vector<1x128xf32>
    %58 = vector.broadcast %57 : vector<1x128xf32> to vector<4x128xf32>
    %59 = arith.mulf %56, %58 : vector<4x128xf32>
    %c7_i32 = arith.constant 7 : i32
    %60 = tpu.dynamic_rotate %50 by %c7_i32 dim 1 : vector<4x128xf32>, i32 -> vector<4x128xf32>
    %61 = vector.extract_strided_slice %0 {offsets = [2, 0], sizes = [1, 128], strides = [1, 1]} : vector<9x128xf32> to vector<1x128xf32>
    %62 = vector.broadcast %61 : vector<1x128xf32> to vector<4x128xf32>
    %63 = arith.mulf %60, %62 : vector<4x128xf32>
    %c1_i32 = arith.constant 1 : i32
    %64 = tpu.dynamic_rotate %50 by %c1_i32 dim 1 : vector<4x128xf32>, i32 -> vector<4x128xf32>
    %65 = vector.extract_strided_slice %0 {offsets = [3, 0], sizes = [1, 128], strides = [1, 1]} : vector<9x128xf32> to vector<1x128xf32>
    %66 = vector.broadcast %65 : vector<1x128xf32> to vector<4x128xf32>
    %67 = arith.mulf %64, %66 : vector<4x128xf32>
    %68 = vector.extract_strided_slice %0 {offsets = [4, 0], sizes = [1, 128], strides = [1, 1]} : vector<9x128xf32> to vector<1x128xf32>
    %69 = vector.broadcast %68 : vector<1x128xf32> to vector<4x128xf32>
    %70 = arith.mulf %50, %69 : vector<4x128xf32>
    %c127_i32 = arith.constant 127 : i32
    %71 = tpu.dynamic_rotate %50 by %c127_i32 dim 1 : vector<4x128xf32>, i32 -> vector<4x128xf32>
    %72 = vector.extract_strided_slice %0 {offsets = [5, 0], sizes = [1, 128], strides = [1, 1]} : vector<9x128xf32> to vector<1x128xf32>
    %73 = vector.broadcast %72 : vector<1x128xf32> to vector<4x128xf32>
    %74 = arith.mulf %71, %73 : vector<4x128xf32>
    %c121_i32 = arith.constant 121 : i32
    %75 = tpu.dynamic_rotate %50 by %c121_i32 dim 1 : vector<4x128xf32>, i32 -> vector<4x128xf32>
    %76 = vector.extract_strided_slice %0 {offsets = [6, 0], sizes = [1, 128], strides = [1, 1]} : vector<9x128xf32> to vector<1x128xf32>
    %77 = vector.broadcast %76 : vector<1x128xf32> to vector<4x128xf32>
    %78 = arith.mulf %75, %77 : vector<4x128xf32>
    %c120_i32 = arith.constant 120 : i32
    %79 = tpu.dynamic_rotate %50 by %c120_i32 dim 1 : vector<4x128xf32>, i32 -> vector<4x128xf32>
    %80 = vector.extract_strided_slice %0 {offsets = [7, 0], sizes = [1, 128], strides = [1, 1]} : vector<9x128xf32> to vector<1x128xf32>
    %81 = vector.broadcast %80 : vector<1x128xf32> to vector<4x128xf32>
    %82 = arith.mulf %79, %81 : vector<4x128xf32>
    %c119_i32 = arith.constant 119 : i32
    %83 = tpu.dynamic_rotate %50 by %c119_i32 dim 1 : vector<4x128xf32>, i32 -> vector<4x128xf32>
    %84 = vector.extract_strided_slice %0 {offsets = [8, 0], sizes = [1, 128], strides = [1, 1]} : vector<9x128xf32> to vector<1x128xf32>
    %85 = vector.broadcast %84 : vector<1x128xf32> to vector<4x128xf32>
    %86 = arith.mulf %83, %85 : vector<4x128xf32>
    %cst_25 = arith.constant 0.000000e+00 : f32
    %87 = vector.broadcast %cst_25 : f32 to vector<4x128xf32>
    %88 = arith.maximumf %55, %87 : vector<4x128xf32>
    %cst_26 = arith.constant 0.000000e+00 : f32
    %89 = vector.broadcast %cst_26 : f32 to vector<4x128xf32>
    %90 = arith.maximumf %59, %89 : vector<4x128xf32>
    %cst_27 = arith.constant 0.000000e+00 : f32
    %91 = vector.broadcast %cst_27 : f32 to vector<4x128xf32>
    %92 = arith.maximumf %63, %91 : vector<4x128xf32>
    %cst_28 = arith.constant 0.000000e+00 : f32
    %93 = vector.broadcast %cst_28 : f32 to vector<4x128xf32>
    %94 = arith.maximumf %67, %93 : vector<4x128xf32>
    %cst_29 = arith.constant 0.000000e+00 : f32
    %95 = vector.broadcast %cst_29 : f32 to vector<4x128xf32>
    %96 = arith.maximumf %70, %95 : vector<4x128xf32>
    %cst_30 = arith.constant 0.000000e+00 : f32
    %97 = vector.broadcast %cst_30 : f32 to vector<4x128xf32>
    %98 = arith.maximumf %74, %97 : vector<4x128xf32>
    %cst_31 = arith.constant 0.000000e+00 : f32
    %99 = vector.broadcast %cst_31 : f32 to vector<4x128xf32>
    %100 = arith.maximumf %78, %99 : vector<4x128xf32>
    %cst_32 = arith.constant 0.000000e+00 : f32
    %101 = vector.broadcast %cst_32 : f32 to vector<4x128xf32>
    %102 = arith.maximumf %82, %101 : vector<4x128xf32>
    %cst_33 = arith.constant 0.000000e+00 : f32
    %103 = vector.broadcast %cst_33 : f32 to vector<4x128xf32>
    %104 = arith.maximumf %86, %103 : vector<4x128xf32>
    %105 = vector.extract_strided_slice %2 {offsets = [0, 0], sizes = [1, 128], strides = [1, 1]} : vector<9x128xi1> to vector<1x128xi1>
    %cst_34 = arith.constant 0xFF800000 : f32
    %106 = vector.shape_cast %105 : vector<1x128xi1> to vector<1x128xi1>
    %107 = vector.broadcast %106 : vector<1x128xi1> to vector<4x128xi1>
    %108 = vector.broadcast %cst_34 : f32 to vector<4x128xf32>
    %109 = arith.select %107, %55, %108 : vector<4x128xi1>, vector<4x128xf32>
    %110 = arith.maximumf %70, %109 : vector<4x128xf32>
    %111 = vector.extract_strided_slice %2 {offsets = [1, 0], sizes = [1, 128], strides = [1, 1]} : vector<9x128xi1> to vector<1x128xi1>
    %cst_35 = arith.constant 0xFF800000 : f32
    %112 = vector.shape_cast %111 : vector<1x128xi1> to vector<1x128xi1>
    %113 = vector.broadcast %112 : vector<1x128xi1> to vector<4x128xi1>
    %114 = vector.broadcast %cst_35 : f32 to vector<4x128xf32>
    %115 = arith.select %113, %59, %114 : vector<4x128xi1>, vector<4x128xf32>
    %116 = arith.maximumf %110, %115 : vector<4x128xf32>
    %117 = vector.extract_strided_slice %2 {offsets = [2, 0], sizes = [1, 128], strides = [1, 1]} : vector<9x128xi1> to vector<1x128xi1>
    %cst_36 = arith.constant 0xFF800000 : f32
    %118 = vector.shape_cast %117 : vector<1x128xi1> to vector<1x128xi1>
    %119 = vector.broadcast %118 : vector<1x128xi1> to vector<4x128xi1>
    %120 = vector.broadcast %cst_36 : f32 to vector<4x128xf32>
    %121 = arith.select %119, %63, %120 : vector<4x128xi1>, vector<4x128xf32>
    %122 = arith.maximumf %116, %121 : vector<4x128xf32>
    %123 = vector.extract_strided_slice %2 {offsets = [3, 0], sizes = [1, 128], strides = [1, 1]} : vector<9x128xi1> to vector<1x128xi1>
    %cst_37 = arith.constant 0xFF800000 : f32
    %124 = vector.shape_cast %123 : vector<1x128xi1> to vector<1x128xi1>
    %125 = vector.broadcast %124 : vector<1x128xi1> to vector<4x128xi1>
    %126 = vector.broadcast %cst_37 : f32 to vector<4x128xf32>
    %127 = arith.select %125, %67, %126 : vector<4x128xi1>, vector<4x128xf32>
    %128 = arith.maximumf %122, %127 : vector<4x128xf32>
    %129 = vector.extract_strided_slice %2 {offsets = [5, 0], sizes = [1, 128], strides = [1, 1]} : vector<9x128xi1> to vector<1x128xi1>
    %cst_38 = arith.constant 0xFF800000 : f32
    %130 = vector.shape_cast %129 : vector<1x128xi1> to vector<1x128xi1>
    %131 = vector.broadcast %130 : vector<1x128xi1> to vector<4x128xi1>
    %132 = vector.broadcast %cst_38 : f32 to vector<4x128xf32>
    %133 = arith.select %131, %74, %132 : vector<4x128xi1>, vector<4x128xf32>
    %134 = arith.maximumf %128, %133 : vector<4x128xf32>
    %135 = vector.extract_strided_slice %2 {offsets = [6, 0], sizes = [1, 128], strides = [1, 1]} : vector<9x128xi1> to vector<1x128xi1>
    %cst_39 = arith.constant 0xFF800000 : f32
    %136 = vector.shape_cast %135 : vector<1x128xi1> to vector<1x128xi1>
    %137 = vector.broadcast %136 : vector<1x128xi1> to vector<4x128xi1>
    %138 = vector.broadcast %cst_39 : f32 to vector<4x128xf32>
    %139 = arith.select %137, %78, %138 : vector<4x128xi1>, vector<4x128xf32>
    %140 = arith.maximumf %134, %139 : vector<4x128xf32>
    %141 = vector.extract_strided_slice %2 {offsets = [7, 0], sizes = [1, 128], strides = [1, 1]} : vector<9x128xi1> to vector<1x128xi1>
    %cst_40 = arith.constant 0xFF800000 : f32
    %142 = vector.shape_cast %141 : vector<1x128xi1> to vector<1x128xi1>
    %143 = vector.broadcast %142 : vector<1x128xi1> to vector<4x128xi1>
    %144 = vector.broadcast %cst_40 : f32 to vector<4x128xf32>
    %145 = arith.select %143, %82, %144 : vector<4x128xi1>, vector<4x128xf32>
    %146 = arith.maximumf %140, %145 : vector<4x128xf32>
    %147 = vector.extract_strided_slice %2 {offsets = [8, 0], sizes = [1, 128], strides = [1, 1]} : vector<9x128xi1> to vector<1x128xi1>
    %cst_41 = arith.constant 0xFF800000 : f32
    %148 = vector.shape_cast %147 : vector<1x128xi1> to vector<1x128xi1>
    %149 = vector.broadcast %148 : vector<1x128xi1> to vector<4x128xi1>
    %150 = vector.broadcast %cst_41 : f32 to vector<4x128xf32>
    %151 = arith.select %149, %86, %150 : vector<4x128xi1>, vector<4x128xf32>
    %152 = arith.maximumf %146, %151 : vector<4x128xf32>
    %cst_42 = arith.constant dense<0.000000e+00> : vector<4xf32>
    %153 = vector.multi_reduction <add>, %152, %cst_42 [1] : vector<4x128xf32> to vector<4xf32>
    %154 = vector.shape_cast %153 : vector<4xf32> to vector<4x1xf32>
    %cst_43 = arith.constant 7.812500e-03 : f32
    %155 = vector.broadcast %cst_43 : f32 to vector<4x1xf32>
    %156 = arith.mulf %154, %155 : vector<4x1xf32>
    %157 = arith.mulf %152, %152 : vector<4x128xf32>
    %cst_44 = arith.constant dense<0.000000e+00> : vector<4xf32>
    %158 = vector.multi_reduction <add>, %157, %cst_44 [1] : vector<4x128xf32> to vector<4xf32>
    %159 = vector.shape_cast %158 : vector<4xf32> to vector<4x1xf32>
    %cst_45 = arith.constant 7.812500e-03 : f32
    %160 = vector.broadcast %cst_45 : f32 to vector<4x1xf32>
    %161 = arith.mulf %159, %160 : vector<4x1xf32>
    %162 = arith.mulf %156, %156 : vector<4x1xf32>
    %163 = arith.subf %161, %162 : vector<4x1xf32>
    %164 = vector.broadcast %156 : vector<4x1xf32> to vector<4x128xf32>
    %165 = arith.subf %152, %164 : vector<4x128xf32>
    %cst_46 = arith.constant 9.99999974E-6 : f32
    %166 = vector.broadcast %cst_46 : f32 to vector<4x1xf32>
    %167 = arith.addf %163, %166 : vector<4x1xf32>
    %168 = math.rsqrt %167 : vector<4x1xf32>
    %169 = vector.broadcast %168 : vector<4x1xf32> to vector<4x128xf32>
    %170 = arith.mulf %165, %169 : vector<4x128xf32>
    %171 = arith.addf %55, %59 : vector<4x128xf32>
    %172 = arith.addf %171, %63 : vector<4x128xf32>
    %173 = arith.addf %172, %67 : vector<4x128xf32>
    %174 = arith.addf %173, %70 : vector<4x128xf32>
    %175 = arith.addf %174, %74 : vector<4x128xf32>
    %176 = arith.addf %175, %78 : vector<4x128xf32>
    %177 = arith.addf %176, %82 : vector<4x128xf32>
    %178 = arith.addf %177, %86 : vector<4x128xf32>
    %179 = vector.broadcast %3 : vector<1x128xf32> to vector<4x128xf32>
    %180 = arith.mulf %178, %179 : vector<4x128xf32>
    %cst_47 = arith.constant dense<0.000000e+00> : vector<4xf32>
    %181 = vector.multi_reduction <add>, %180, %cst_47 [1] : vector<4x128xf32> to vector<4xf32>
    %182 = vector.shape_cast %181 : vector<4xf32> to vector<4x1xf32>
    %cst_48 = arith.constant 7.812500e-03 : f32
    %183 = vector.broadcast %cst_48 : f32 to vector<4x1xf32>
    %184 = arith.mulf %182, %183 : vector<4x1xf32>
    %185 = arith.mulf %180, %180 : vector<4x128xf32>
    %cst_49 = arith.constant dense<0.000000e+00> : vector<4xf32>
    %186 = vector.multi_reduction <add>, %185, %cst_49 [1] : vector<4x128xf32> to vector<4xf32>
    %187 = vector.shape_cast %186 : vector<4xf32> to vector<4x1xf32>
    %cst_50 = arith.constant 7.812500e-03 : f32
    %188 = vector.broadcast %cst_50 : f32 to vector<4x1xf32>
    %189 = arith.mulf %187, %188 : vector<4x1xf32>
    %190 = arith.mulf %184, %184 : vector<4x1xf32>
    %191 = arith.subf %189, %190 : vector<4x1xf32>
    %192 = vector.broadcast %184 : vector<4x1xf32> to vector<4x128xf32>
    %193 = arith.subf %180, %192 : vector<4x128xf32>
    %cst_51 = arith.constant 9.99999974E-6 : f32
    %194 = vector.broadcast %cst_51 : f32 to vector<4x1xf32>
    %195 = arith.addf %191, %194 : vector<4x1xf32>
    %196 = math.rsqrt %195 : vector<4x1xf32>
    %197 = vector.broadcast %196 : vector<4x1xf32> to vector<4x128xf32>
    %198 = arith.mulf %193, %197 : vector<4x128xf32>
    %199 = vector.extract_strided_slice %49 {offsets = [0, 0], sizes = [4, 128], strides = [1, 1]} : vector<16x128xf32> to vector<4x128xf32>
    %200 = vector.extract_strided_slice %49 {offsets = [4, 0], sizes = [12, 128], strides = [1, 1]} : vector<16x128xf32> to vector<12x128xf32>
    %c9_i32_52 = arith.constant 9 : i32
    %201 = tpu.dynamic_rotate %199 by %c9_i32_52 dim 1 : vector<4x128xf32>, i32 -> vector<4x128xf32>
    %202 = vector.extract_strided_slice %0 {offsets = [0, 0], sizes = [1, 128], strides = [1, 1]} : vector<9x128xf32> to vector<1x128xf32>
    %203 = vector.broadcast %202 : vector<1x128xf32> to vector<4x128xf32>
    %204 = arith.mulf %201, %203 : vector<4x128xf32>
    %c8_i32_53 = arith.constant 8 : i32
    %205 = tpu.dynamic_rotate %199 by %c8_i32_53 dim 1 : vector<4x128xf32>, i32 -> vector<4x128xf32>
    %206 = vector.extract_strided_slice %0 {offsets = [1, 0], sizes = [1, 128], strides = [1, 1]} : vector<9x128xf32> to vector<1x128xf32>
    %207 = vector.broadcast %206 : vector<1x128xf32> to vector<4x128xf32>
    %208 = arith.mulf %205, %207 : vector<4x128xf32>
    %c7_i32_54 = arith.constant 7 : i32
    %209 = tpu.dynamic_rotate %199 by %c7_i32_54 dim 1 : vector<4x128xf32>, i32 -> vector<4x128xf32>
    %210 = vector.extract_strided_slice %0 {offsets = [2, 0], sizes = [1, 128], strides = [1, 1]} : vector<9x128xf32> to vector<1x128xf32>
    %211 = vector.broadcast %210 : vector<1x128xf32> to vector<4x128xf32>
    %212 = arith.mulf %209, %211 : vector<4x128xf32>
    %c1_i32_55 = arith.constant 1 : i32
    %213 = tpu.dynamic_rotate %199 by %c1_i32_55 dim 1 : vector<4x128xf32>, i32 -> vector<4x128xf32>
    %214 = vector.extract_strided_slice %0 {offsets = [3, 0], sizes = [1, 128], strides = [1, 1]} : vector<9x128xf32> to vector<1x128xf32>
    %215 = vector.broadcast %214 : vector<1x128xf32> to vector<4x128xf32>
    %216 = arith.mulf %213, %215 : vector<4x128xf32>
    %217 = vector.extract_strided_slice %0 {offsets = [4, 0], sizes = [1, 128], strides = [1, 1]} : vector<9x128xf32> to vector<1x128xf32>
    %218 = vector.broadcast %217 : vector<1x128xf32> to vector<4x128xf32>
    %219 = arith.mulf %199, %218 : vector<4x128xf32>
    %c127_i32_56 = arith.constant 127 : i32
    %220 = tpu.dynamic_rotate %199 by %c127_i32_56 dim 1 : vector<4x128xf32>, i32 -> vector<4x128xf32>
    %221 = vector.extract_strided_slice %0 {offsets = [5, 0], sizes = [1, 128], strides = [1, 1]} : vector<9x128xf32> to vector<1x128xf32>
    %222 = vector.broadcast %221 : vector<1x128xf32> to vector<4x128xf32>
    %223 = arith.mulf %220, %222 : vector<4x128xf32>
    %c121_i32_57 = arith.constant 121 : i32
    %224 = tpu.dynamic_rotate %199 by %c121_i32_57 dim 1 : vector<4x128xf32>, i32 -> vector<4x128xf32>
    %225 = vector.extract_strided_slice %0 {offsets = [6, 0], sizes = [1, 128], strides = [1, 1]} : vector<9x128xf32> to vector<1x128xf32>
    %226 = vector.broadcast %225 : vector<1x128xf32> to vector<4x128xf32>
    %227 = arith.mulf %224, %226 : vector<4x128xf32>
    %c120_i32_58 = arith.constant 120 : i32
    %228 = tpu.dynamic_rotate %199 by %c120_i32_58 dim 1 : vector<4x128xf32>, i32 -> vector<4x128xf32>
    %229 = vector.extract_strided_slice %0 {offsets = [7, 0], sizes = [1, 128], strides = [1, 1]} : vector<9x128xf32> to vector<1x128xf32>
    %230 = vector.broadcast %229 : vector<1x128xf32> to vector<4x128xf32>
    %231 = arith.mulf %228, %230 : vector<4x128xf32>
    %c119_i32_59 = arith.constant 119 : i32
    %232 = tpu.dynamic_rotate %199 by %c119_i32_59 dim 1 : vector<4x128xf32>, i32 -> vector<4x128xf32>
    %233 = vector.extract_strided_slice %0 {offsets = [8, 0], sizes = [1, 128], strides = [1, 1]} : vector<9x128xf32> to vector<1x128xf32>
    %234 = vector.broadcast %233 : vector<1x128xf32> to vector<4x128xf32>
    %235 = arith.mulf %232, %234 : vector<4x128xf32>
    %cst_60 = arith.constant 0.000000e+00 : f32
    %236 = vector.broadcast %cst_60 : f32 to vector<4x128xf32>
    %237 = arith.maximumf %204, %236 : vector<4x128xf32>
    %cst_61 = arith.constant 0.000000e+00 : f32
    %238 = vector.broadcast %cst_61 : f32 to vector<4x128xf32>
    %239 = arith.maximumf %208, %238 : vector<4x128xf32>
    %cst_62 = arith.constant 0.000000e+00 : f32
    %240 = vector.broadcast %cst_62 : f32 to vector<4x128xf32>
    %241 = arith.maximumf %212, %240 : vector<4x128xf32>
    %cst_63 = arith.constant 0.000000e+00 : f32
    %242 = vector.broadcast %cst_63 : f32 to vector<4x128xf32>
    %243 = arith.maximumf %216, %242 : vector<4x128xf32>
    %cst_64 = arith.constant 0.000000e+00 : f32
    %244 = vector.broadcast %cst_64 : f32 to vector<4x128xf32>
    %245 = arith.maximumf %219, %244 : vector<4x128xf32>
    %cst_65 = arith.constant 0.000000e+00 : f32
    %246 = vector.broadcast %cst_65 : f32 to vector<4x128xf32>
    %247 = arith.maximumf %223, %246 : vector<4x128xf32>
    %cst_66 = arith.constant 0.000000e+00 : f32
    %248 = vector.broadcast %cst_66 : f32 to vector<4x128xf32>
    %249 = arith.maximumf %227, %248 : vector<4x128xf32>
    %cst_67 = arith.constant 0.000000e+00 : f32
    %250 = vector.broadcast %cst_67 : f32 to vector<4x128xf32>
    %251 = arith.maximumf %231, %250 : vector<4x128xf32>
    %cst_68 = arith.constant 0.000000e+00 : f32
    %252 = vector.broadcast %cst_68 : f32 to vector<4x128xf32>
    %253 = arith.maximumf %235, %252 : vector<4x128xf32>
    %254 = vector.extract_strided_slice %2 {offsets = [0, 0], sizes = [1, 128], strides = [1, 1]} : vector<9x128xi1> to vector<1x128xi1>
    %cst_69 = arith.constant 0xFF800000 : f32
    %255 = vector.shape_cast %254 : vector<1x128xi1> to vector<1x128xi1>
    %256 = vector.broadcast %255 : vector<1x128xi1> to vector<4x128xi1>
    %257 = vector.broadcast %cst_69 : f32 to vector<4x128xf32>
    %258 = arith.select %256, %204, %257 : vector<4x128xi1>, vector<4x128xf32>
    %259 = arith.maximumf %219, %258 : vector<4x128xf32>
    %260 = vector.extract_strided_slice %2 {offsets = [1, 0], sizes = [1, 128], strides = [1, 1]} : vector<9x128xi1> to vector<1x128xi1>
    %cst_70 = arith.constant 0xFF800000 : f32
    %261 = vector.shape_cast %260 : vector<1x128xi1> to vector<1x128xi1>
    %262 = vector.broadcast %261 : vector<1x128xi1> to vector<4x128xi1>
    %263 = vector.broadcast %cst_70 : f32 to vector<4x128xf32>
    %264 = arith.select %262, %208, %263 : vector<4x128xi1>, vector<4x128xf32>
    %265 = arith.maximumf %259, %264 : vector<4x128xf32>
    %266 = vector.extract_strided_slice %2 {offsets = [2, 0], sizes = [1, 128], strides = [1, 1]} : vector<9x128xi1> to vector<1x128xi1>
    %cst_71 = arith.constant 0xFF800000 : f32
    %267 = vector.shape_cast %266 : vector<1x128xi1> to vector<1x128xi1>
    %268 = vector.broadcast %267 : vector<1x128xi1> to vector<4x128xi1>
    %269 = vector.broadcast %cst_71 : f32 to vector<4x128xf32>
    %270 = arith.select %268, %212, %269 : vector<4x128xi1>, vector<4x128xf32>
    %271 = arith.maximumf %265, %270 : vector<4x128xf32>
    %272 = vector.extract_strided_slice %2 {offsets = [3, 0], sizes = [1, 128], strides = [1, 1]} : vector<9x128xi1> to vector<1x128xi1>
    %cst_72 = arith.constant 0xFF800000 : f32
    %273 = vector.shape_cast %272 : vector<1x128xi1> to vector<1x128xi1>
    %274 = vector.broadcast %273 : vector<1x128xi1> to vector<4x128xi1>
    %275 = vector.broadcast %cst_72 : f32 to vector<4x128xf32>
    %276 = arith.select %274, %216, %275 : vector<4x128xi1>, vector<4x128xf32>
    %277 = arith.maximumf %271, %276 : vector<4x128xf32>
    %278 = vector.extract_strided_slice %2 {offsets = [5, 0], sizes = [1, 128], strides = [1, 1]} : vector<9x128xi1> to vector<1x128xi1>
    %cst_73 = arith.constant 0xFF800000 : f32
    %279 = vector.shape_cast %278 : vector<1x128xi1> to vector<1x128xi1>
    %280 = vector.broadcast %279 : vector<1x128xi1> to vector<4x128xi1>
    %281 = vector.broadcast %cst_73 : f32 to vector<4x128xf32>
    %282 = arith.select %280, %223, %281 : vector<4x128xi1>, vector<4x128xf32>
    %283 = arith.maximumf %277, %282 : vector<4x128xf32>
    %284 = vector.extract_strided_slice %2 {offsets = [6, 0], sizes = [1, 128], strides = [1, 1]} : vector<9x128xi1> to vector<1x128xi1>
    %cst_74 = arith.constant 0xFF800000 : f32
    %285 = vector.shape_cast %284 : vector<1x128xi1> to vector<1x128xi1>
    %286 = vector.broadcast %285 : vector<1x128xi1> to vector<4x128xi1>
    %287 = vector.broadcast %cst_74 : f32 to vector<4x128xf32>
    %288 = arith.select %286, %227, %287 : vector<4x128xi1>, vector<4x128xf32>
    %289 = arith.maximumf %283, %288 : vector<4x128xf32>
    %290 = vector.extract_strided_slice %2 {offsets = [7, 0], sizes = [1, 128], strides = [1, 1]} : vector<9x128xi1> to vector<1x128xi1>
    %cst_75 = arith.constant 0xFF800000 : f32
    %291 = vector.shape_cast %290 : vector<1x128xi1> to vector<1x128xi1>
    %292 = vector.broadcast %291 : vector<1x128xi1> to vector<4x128xi1>
    %293 = vector.broadcast %cst_75 : f32 to vector<4x128xf32>
    %294 = arith.select %292, %231, %293 : vector<4x128xi1>, vector<4x128xf32>
    %295 = arith.maximumf %289, %294 : vector<4x128xf32>
    %296 = vector.extract_strided_slice %2 {offsets = [8, 0], sizes = [1, 128], strides = [1, 1]} : vector<9x128xi1> to vector<1x128xi1>
    %cst_76 = arith.constant 0xFF800000 : f32
    %297 = vector.shape_cast %296 : vector<1x128xi1> to vector<1x128xi1>
    %298 = vector.broadcast %297 : vector<1x128xi1> to vector<4x128xi1>
    %299 = vector.broadcast %cst_76 : f32 to vector<4x128xf32>
    %300 = arith.select %298, %235, %299 : vector<4x128xi1>, vector<4x128xf32>
    %301 = arith.maximumf %295, %300 : vector<4x128xf32>
    %cst_77 = arith.constant dense<0.000000e+00> : vector<4xf32>
    %302 = vector.multi_reduction <add>, %301, %cst_77 [1] : vector<4x128xf32> to vector<4xf32>
    %303 = vector.shape_cast %302 : vector<4xf32> to vector<4x1xf32>
    %cst_78 = arith.constant 7.812500e-03 : f32
    %304 = vector.broadcast %cst_78 : f32 to vector<4x1xf32>
    %305 = arith.mulf %303, %304 : vector<4x1xf32>
    %306 = arith.mulf %301, %301 : vector<4x128xf32>
    %cst_79 = arith.constant dense<0.000000e+00> : vector<4xf32>
    %307 = vector.multi_reduction <add>, %306, %cst_79 [1] : vector<4x128xf32> to vector<4xf32>
    %308 = vector.shape_cast %307 : vector<4xf32> to vector<4x1xf32>
    %cst_80 = arith.constant 7.812500e-03 : f32
    %309 = vector.broadcast %cst_80 : f32 to vector<4x1xf32>
    %310 = arith.mulf %308, %309 : vector<4x1xf32>
    %311 = arith.mulf %305, %305 : vector<4x1xf32>
    %312 = arith.subf %310, %311 : vector<4x1xf32>
    %313 = vector.broadcast %305 : vector<4x1xf32> to vector<4x128xf32>
    %314 = arith.subf %301, %313 : vector<4x128xf32>
    %cst_81 = arith.constant 9.99999974E-6 : f32
    %315 = vector.broadcast %cst_81 : f32 to vector<4x1xf32>
    %316 = arith.addf %312, %315 : vector<4x1xf32>
    %317 = math.rsqrt %316 : vector<4x1xf32>
    %318 = vector.broadcast %317 : vector<4x1xf32> to vector<4x128xf32>
    %319 = arith.mulf %314, %318 : vector<4x128xf32>
    %320 = arith.addf %204, %208 : vector<4x128xf32>
    %321 = arith.addf %320, %212 : vector<4x128xf32>
    %322 = arith.addf %321, %216 : vector<4x128xf32>
    %323 = arith.addf %322, %219 : vector<4x128xf32>
    %324 = arith.addf %323, %223 : vector<4x128xf32>
    %325 = arith.addf %324, %227 : vector<4x128xf32>
    %326 = arith.addf %325, %231 : vector<4x128xf32>
    %327 = arith.addf %326, %235 : vector<4x128xf32>
    %328 = vector.broadcast %3 : vector<1x128xf32> to vector<4x128xf32>
    %329 = arith.mulf %327, %328 : vector<4x128xf32>
    %cst_82 = arith.constant dense<0.000000e+00> : vector<4xf32>
    %330 = vector.multi_reduction <add>, %329, %cst_82 [1] : vector<4x128xf32> to vector<4xf32>
    %331 = vector.shape_cast %330 : vector<4xf32> to vector<4x1xf32>
    %cst_83 = arith.constant 7.812500e-03 : f32
    %332 = vector.broadcast %cst_83 : f32 to vector<4x1xf32>
    %333 = arith.mulf %331, %332 : vector<4x1xf32>
    %334 = arith.mulf %329, %329 : vector<4x128xf32>
    %cst_84 = arith.constant dense<0.000000e+00> : vector<4xf32>
    %335 = vector.multi_reduction <add>, %334, %cst_84 [1] : vector<4x128xf32> to vector<4xf32>
    %336 = vector.shape_cast %335 : vector<4xf32> to vector<4x1xf32>
    %cst_85 = arith.constant 7.812500e-03 : f32
    %337 = vector.broadcast %cst_85 : f32 to vector<4x1xf32>
    %338 = arith.mulf %336, %337 : vector<4x1xf32>
    %339 = arith.mulf %333, %333 : vector<4x1xf32>
    %340 = arith.subf %338, %339 : vector<4x1xf32>
    %341 = vector.broadcast %333 : vector<4x1xf32> to vector<4x128xf32>
    %342 = arith.subf %329, %341 : vector<4x128xf32>
    %cst_86 = arith.constant 9.99999974E-6 : f32
    %343 = vector.broadcast %cst_86 : f32 to vector<4x1xf32>
    %344 = arith.addf %340, %343 : vector<4x1xf32>
    %345 = math.rsqrt %344 : vector<4x1xf32>
    %346 = vector.broadcast %345 : vector<4x1xf32> to vector<4x128xf32>
    %347 = arith.mulf %342, %346 : vector<4x128xf32>
    %c0_87 = arith.constant 0 : index
    %348 = memref.load %arg1[%c0_87] : memref<5xf32, #tpu.memory_space<smem>>
    %c0_88 = arith.constant 0 : index
    %c1 = arith.constant 1 : index
    %349 = memref.load %arg0[%c0_88, %c1] : memref<5x5xf32, #tpu.memory_space<smem>>
    %350 = arith.mulf %348, %349 : f32
    %c0_89 = arith.constant 0 : index
    %c2 = arith.constant 2 : index
    %351 = memref.load %arg0[%c0_89, %c2] : memref<5x5xf32, #tpu.memory_space<smem>>
    %352 = arith.mulf %348, %351 : f32
    %c0_90 = arith.constant 0 : index
    %c3 = arith.constant 3 : index
    %353 = memref.load %arg0[%c0_90, %c3] : memref<5x5xf32, #tpu.memory_space<smem>>
    %354 = arith.mulf %348, %353 : f32
    %c0_91 = arith.constant 0 : index
    %c4 = arith.constant 4 : index
    %355 = memref.load %arg0[%c0_91, %c4] : memref<5x5xf32, #tpu.memory_space<smem>>
    %356 = arith.mulf %348, %355 : f32
    %357 = vector.broadcast %350 : f32 to vector<4x128xf32>
    %358 = arith.mulf %357, %50 : vector<4x128xf32>
    %359 = vector.broadcast %352 : f32 to vector<4x128xf32>
    %360 = arith.mulf %359, %170 : vector<4x128xf32>
    %361 = arith.addf %358, %360 : vector<4x128xf32>
    %362 = vector.broadcast %354 : f32 to vector<4x128xf32>
    %363 = arith.mulf %362, %198 : vector<4x128xf32>
    %364 = arith.addf %361, %363 : vector<4x128xf32>
    %c0_92 = arith.constant 0 : index
    %c0_93 = arith.constant 0 : index
    %c0_94 = arith.constant 0 : index
    %365 = vector.load %arg6[%c0_92, %c0_93, %c0_94] : memref<5x4x9xf32, #tpu.memory_space<vmem>>, vector<1x4x9xf32>
    %366 = vector.shape_cast %365 : vector<1x4x9xf32> to vector<4x9xf32>
    %367 = vector.extract_strided_slice %366 {offsets = [0, 0], sizes = [4, 1], strides = [1, 1]} : vector<4x9xf32> to vector<4x1xf32>
    %368 = vector.broadcast %367 : vector<4x1xf32> to vector<4x128xf32>
    %369 = arith.mulf %88, %368 : vector<4x128xf32>
    %370 = vector.extract_strided_slice %366 {offsets = [0, 1], sizes = [4, 1], strides = [1, 1]} : vector<4x9xf32> to vector<4x1xf32>
    %371 = vector.broadcast %370 : vector<4x1xf32> to vector<4x128xf32>
    %372 = arith.mulf %90, %371 : vector<4x128xf32>
    %373 = arith.addf %369, %372 : vector<4x128xf32>
    %374 = vector.extract_strided_slice %366 {offsets = [0, 2], sizes = [4, 1], strides = [1, 1]} : vector<4x9xf32> to vector<4x1xf32>
    %375 = vector.broadcast %374 : vector<4x1xf32> to vector<4x128xf32>
    %376 = arith.mulf %92, %375 : vector<4x128xf32>
    %377 = arith.addf %373, %376 : vector<4x128xf32>
    %378 = vector.extract_strided_slice %366 {offsets = [0, 3], sizes = [4, 1], strides = [1, 1]} : vector<4x9xf32> to vector<4x1xf32>
    %379 = vector.broadcast %378 : vector<4x1xf32> to vector<4x128xf32>
    %380 = arith.mulf %94, %379 : vector<4x128xf32>
    %381 = arith.addf %377, %380 : vector<4x128xf32>
    %382 = vector.extract_strided_slice %366 {offsets = [0, 4], sizes = [4, 1], strides = [1, 1]} : vector<4x9xf32> to vector<4x1xf32>
    %383 = vector.broadcast %382 : vector<4x1xf32> to vector<4x128xf32>
    %384 = arith.mulf %96, %383 : vector<4x128xf32>
    %385 = arith.addf %381, %384 : vector<4x128xf32>
    %386 = vector.extract_strided_slice %366 {offsets = [0, 5], sizes = [4, 1], strides = [1, 1]} : vector<4x9xf32> to vector<4x1xf32>
    %387 = vector.broadcast %386 : vector<4x1xf32> to vector<4x128xf32>
    %388 = arith.mulf %98, %387 : vector<4x128xf32>
    %389 = arith.addf %385, %388 : vector<4x128xf32>
    %390 = vector.extract_strided_slice %366 {offsets = [0, 6], sizes = [4, 1], strides = [1, 1]} : vector<4x9xf32> to vector<4x1xf32>
    %391 = vector.broadcast %390 : vector<4x1xf32> to vector<4x128xf32>
    %392 = arith.mulf %100, %391 : vector<4x128xf32>
    %393 = arith.addf %389, %392 : vector<4x128xf32>
    %394 = vector.extract_strided_slice %366 {offsets = [0, 7], sizes = [4, 1], strides = [1, 1]} : vector<4x9xf32> to vector<4x1xf32>
    %395 = vector.broadcast %394 : vector<4x1xf32> to vector<4x128xf32>
    %396 = arith.mulf %102, %395 : vector<4x128xf32>
    %397 = arith.addf %393, %396 : vector<4x128xf32>
    %398 = vector.extract_strided_slice %366 {offsets = [0, 8], sizes = [4, 1], strides = [1, 1]} : vector<4x9xf32> to vector<4x1xf32>
    %399 = vector.broadcast %398 : vector<4x1xf32> to vector<4x128xf32>
    %400 = arith.mulf %104, %399 : vector<4x128xf32>
    %401 = arith.addf %397, %400 : vector<4x128xf32>
    %c0_95 = arith.constant 0 : index
    %c0_96 = arith.constant 0 : index
    %c0_97 = arith.constant 0 : index
    %402 = vector.load %arg7[%c0_95, %c0_96, %c0_97] : memref<5x4x4xf32, #tpu.memory_space<vmem>>, vector<1x4x4xf32>
    %403 = vector.shape_cast %402 : vector<1x4x4xf32> to vector<4x4xf32>
    %cst_98 = arith.constant dense<0.000000e+00> : vector<4x128xf32>
    %404 = tpu.matmul %403, %401, %cst_98 {dimension_numbers = #tpu.dot_dimension_numbers<[1], [0], [0], [1], [0, 0, 1, 1], [], []>} : vector<4x4xf32>, vector<4x128xf32>, vector<4x128xf32> -> vector<4x128xf32>
    %cst_99 = arith.constant dense<0.000000e+00> : vector<4xf32>
    %405 = vector.multi_reduction <add>, %404, %cst_99 [1] : vector<4x128xf32> to vector<4xf32>
    %406 = vector.shape_cast %405 : vector<4xf32> to vector<4x1xf32>
    %cst_100 = arith.constant 7.812500e-03 : f32
    %407 = vector.broadcast %cst_100 : f32 to vector<4x1xf32>
    %408 = arith.mulf %406, %407 : vector<4x1xf32>
    %409 = arith.mulf %404, %404 : vector<4x128xf32>
    %cst_101 = arith.constant dense<0.000000e+00> : vector<4xf32>
    %410 = vector.multi_reduction <add>, %409, %cst_101 [1] : vector<4x128xf32> to vector<4xf32>
    %411 = vector.shape_cast %410 : vector<4xf32> to vector<4x1xf32>
    %cst_102 = arith.constant 7.812500e-03 : f32
    %412 = vector.broadcast %cst_102 : f32 to vector<4x1xf32>
    %413 = arith.mulf %411, %412 : vector<4x1xf32>
    %414 = arith.mulf %408, %408 : vector<4x1xf32>
    %415 = arith.subf %413, %414 : vector<4x1xf32>
    %416 = vector.broadcast %408 : vector<4x1xf32> to vector<4x128xf32>
    %417 = arith.subf %404, %416 : vector<4x128xf32>
    %cst_103 = arith.constant 9.99999974E-6 : f32
    %418 = vector.broadcast %cst_103 : f32 to vector<4x1xf32>
    %419 = arith.addf %415, %418 : vector<4x1xf32>
    %420 = math.rsqrt %419 : vector<4x1xf32>
    %421 = vector.broadcast %420 : vector<4x1xf32> to vector<4x128xf32>
    %422 = arith.mulf %417, %421 : vector<4x128xf32>
    %c9_i32_104 = arith.constant 9 : i32
    %423 = tpu.dynamic_rotate %422 by %c9_i32_104 dim 1 : vector<4x128xf32>, i32 -> vector<4x128xf32>
    %424 = vector.extract_strided_slice %0 {offsets = [0, 0], sizes = [1, 128], strides = [1, 1]} : vector<9x128xf32> to vector<1x128xf32>
    %425 = vector.broadcast %424 : vector<1x128xf32> to vector<4x128xf32>
    %426 = arith.mulf %423, %425 : vector<4x128xf32>
    %c8_i32_105 = arith.constant 8 : i32
    %427 = tpu.dynamic_rotate %422 by %c8_i32_105 dim 1 : vector<4x128xf32>, i32 -> vector<4x128xf32>
    %428 = vector.extract_strided_slice %0 {offsets = [1, 0], sizes = [1, 128], strides = [1, 1]} : vector<9x128xf32> to vector<1x128xf32>
    %429 = vector.broadcast %428 : vector<1x128xf32> to vector<4x128xf32>
    %430 = arith.mulf %427, %429 : vector<4x128xf32>
    %c7_i32_106 = arith.constant 7 : i32
    %431 = tpu.dynamic_rotate %422 by %c7_i32_106 dim 1 : vector<4x128xf32>, i32 -> vector<4x128xf32>
    %432 = vector.extract_strided_slice %0 {offsets = [2, 0], sizes = [1, 128], strides = [1, 1]} : vector<9x128xf32> to vector<1x128xf32>
    %433 = vector.broadcast %432 : vector<1x128xf32> to vector<4x128xf32>
    %434 = arith.mulf %431, %433 : vector<4x128xf32>
    %c1_i32_107 = arith.constant 1 : i32
    %435 = tpu.dynamic_rotate %422 by %c1_i32_107 dim 1 : vector<4x128xf32>, i32 -> vector<4x128xf32>
    %436 = vector.extract_strided_slice %0 {offsets = [3, 0], sizes = [1, 128], strides = [1, 1]} : vector<9x128xf32> to vector<1x128xf32>
    %437 = vector.broadcast %436 : vector<1x128xf32> to vector<4x128xf32>
    %438 = arith.mulf %435, %437 : vector<4x128xf32>
    %439 = vector.extract_strided_slice %0 {offsets = [4, 0], sizes = [1, 128], strides = [1, 1]} : vector<9x128xf32> to vector<1x128xf32>
    %440 = vector.broadcast %439 : vector<1x128xf32> to vector<4x128xf32>
    %441 = arith.mulf %422, %440 : vector<4x128xf32>
    %c127_i32_108 = arith.constant 127 : i32
    %442 = tpu.dynamic_rotate %422 by %c127_i32_108 dim 1 : vector<4x128xf32>, i32 -> vector<4x128xf32>
    %443 = vector.extract_strided_slice %0 {offsets = [5, 0], sizes = [1, 128], strides = [1, 1]} : vector<9x128xf32> to vector<1x128xf32>
    %444 = vector.broadcast %443 : vector<1x128xf32> to vector<4x128xf32>
    %445 = arith.mulf %442, %444 : vector<4x128xf32>
    %c121_i32_109 = arith.constant 121 : i32
    %446 = tpu.dynamic_rotate %422 by %c121_i32_109 dim 1 : vector<4x128xf32>, i32 -> vector<4x128xf32>
    %447 = vector.extract_strided_slice %0 {offsets = [6, 0], sizes = [1, 128], strides = [1, 1]} : vector<9x128xf32> to vector<1x128xf32>
    %448 = vector.broadcast %447 : vector<1x128xf32> to vector<4x128xf32>
    %449 = arith.mulf %446, %448 : vector<4x128xf32>
    %c120_i32_110 = arith.constant 120 : i32
    %450 = tpu.dynamic_rotate %422 by %c120_i32_110 dim 1 : vector<4x128xf32>, i32 -> vector<4x128xf32>
    %451 = vector.extract_strided_slice %0 {offsets = [7, 0], sizes = [1, 128], strides = [1, 1]} : vector<9x128xf32> to vector<1x128xf32>
    %452 = vector.broadcast %451 : vector<1x128xf32> to vector<4x128xf32>
    %453 = arith.mulf %450, %452 : vector<4x128xf32>
    %c119_i32_111 = arith.constant 119 : i32
    %454 = tpu.dynamic_rotate %422 by %c119_i32_111 dim 1 : vector<4x128xf32>, i32 -> vector<4x128xf32>
    %455 = vector.extract_strided_slice %0 {offsets = [8, 0], sizes = [1, 128], strides = [1, 1]} : vector<9x128xf32> to vector<1x128xf32>
    %456 = vector.broadcast %455 : vector<1x128xf32> to vector<4x128xf32>
    %457 = arith.mulf %454, %456 : vector<4x128xf32>
    %cst_112 = arith.constant 0.000000e+00 : f32
    %458 = vector.broadcast %cst_112 : f32 to vector<4x128xf32>
    %459 = arith.maximumf %426, %458 : vector<4x128xf32>
    %cst_113 = arith.constant 0.000000e+00 : f32
    %460 = vector.broadcast %cst_113 : f32 to vector<4x128xf32>
    %461 = arith.maximumf %430, %460 : vector<4x128xf32>
    %cst_114 = arith.constant 0.000000e+00 : f32
    %462 = vector.broadcast %cst_114 : f32 to vector<4x128xf32>
    %463 = arith.maximumf %434, %462 : vector<4x128xf32>
    %cst_115 = arith.constant 0.000000e+00 : f32
    %464 = vector.broadcast %cst_115 : f32 to vector<4x128xf32>
    %465 = arith.maximumf %438, %464 : vector<4x128xf32>
    %cst_116 = arith.constant 0.000000e+00 : f32
    %466 = vector.broadcast %cst_116 : f32 to vector<4x128xf32>
    %467 = arith.maximumf %441, %466 : vector<4x128xf32>
    %cst_117 = arith.constant 0.000000e+00 : f32
    %468 = vector.broadcast %cst_117 : f32 to vector<4x128xf32>
    %469 = arith.maximumf %445, %468 : vector<4x128xf32>
    %cst_118 = arith.constant 0.000000e+00 : f32
    %470 = vector.broadcast %cst_118 : f32 to vector<4x128xf32>
    %471 = arith.maximumf %449, %470 : vector<4x128xf32>
    %cst_119 = arith.constant 0.000000e+00 : f32
    %472 = vector.broadcast %cst_119 : f32 to vector<4x128xf32>
    %473 = arith.maximumf %453, %472 : vector<4x128xf32>
    %cst_120 = arith.constant 0.000000e+00 : f32
    %474 = vector.broadcast %cst_120 : f32 to vector<4x128xf32>
    %475 = arith.maximumf %457, %474 : vector<4x128xf32>
    %c0_121 = arith.constant 0 : index
    %c0_122 = arith.constant 0 : index
    %c0_123 = arith.constant 0 : index
    %476 = vector.load %arg8[%c0_121, %c0_122, %c0_123] : memref<5x4x9xf32, #tpu.memory_space<vmem>>, vector<1x4x9xf32>
    %477 = vector.shape_cast %476 : vector<1x4x9xf32> to vector<4x9xf32>
    %478 = vector.extract_strided_slice %477 {offsets = [0, 0], sizes = [4, 1], strides = [1, 1]} : vector<4x9xf32> to vector<4x1xf32>
    %479 = vector.broadcast %478 : vector<4x1xf32> to vector<4x128xf32>
    %480 = arith.mulf %459, %479 : vector<4x128xf32>
    %481 = vector.extract_strided_slice %477 {offsets = [0, 1], sizes = [4, 1], strides = [1, 1]} : vector<4x9xf32> to vector<4x1xf32>
    %482 = vector.broadcast %481 : vector<4x1xf32> to vector<4x128xf32>
    %483 = arith.mulf %461, %482 : vector<4x128xf32>
    %484 = arith.addf %480, %483 : vector<4x128xf32>
    %485 = vector.extract_strided_slice %477 {offsets = [0, 2], sizes = [4, 1], strides = [1, 1]} : vector<4x9xf32> to vector<4x1xf32>
    %486 = vector.broadcast %485 : vector<4x1xf32> to vector<4x128xf32>
    %487 = arith.mulf %463, %486 : vector<4x128xf32>
    %488 = arith.addf %484, %487 : vector<4x128xf32>
    %489 = vector.extract_strided_slice %477 {offsets = [0, 3], sizes = [4, 1], strides = [1, 1]} : vector<4x9xf32> to vector<4x1xf32>
    %490 = vector.broadcast %489 : vector<4x1xf32> to vector<4x128xf32>
    %491 = arith.mulf %465, %490 : vector<4x128xf32>
    %492 = arith.addf %488, %491 : vector<4x128xf32>
    %493 = vector.extract_strided_slice %477 {offsets = [0, 4], sizes = [4, 1], strides = [1, 1]} : vector<4x9xf32> to vector<4x1xf32>
    %494 = vector.broadcast %493 : vector<4x1xf32> to vector<4x128xf32>
    %495 = arith.mulf %467, %494 : vector<4x128xf32>
    %496 = arith.addf %492, %495 : vector<4x128xf32>
    %497 = vector.extract_strided_slice %477 {offsets = [0, 5], sizes = [4, 1], strides = [1, 1]} : vector<4x9xf32> to vector<4x1xf32>
    %498 = vector.broadcast %497 : vector<4x1xf32> to vector<4x128xf32>
    %499 = arith.mulf %469, %498 : vector<4x128xf32>
    %500 = arith.addf %496, %499 : vector<4x128xf32>
    %501 = vector.extract_strided_slice %477 {offsets = [0, 6], sizes = [4, 1], strides = [1, 1]} : vector<4x9xf32> to vector<4x1xf32>
    %502 = vector.broadcast %501 : vector<4x1xf32> to vector<4x128xf32>
    %503 = arith.mulf %471, %502 : vector<4x128xf32>
    %504 = arith.addf %500, %503 : vector<4x128xf32>
    %505 = vector.extract_strided_slice %477 {offsets = [0, 7], sizes = [4, 1], strides = [1, 1]} : vector<4x9xf32> to vector<4x1xf32>
    %506 = vector.broadcast %505 : vector<4x1xf32> to vector<4x128xf32>
    %507 = arith.mulf %473, %506 : vector<4x128xf32>
    %508 = arith.addf %504, %507 : vector<4x128xf32>
    %509 = vector.extract_strided_slice %477 {offsets = [0, 8], sizes = [4, 1], strides = [1, 1]} : vector<4x9xf32> to vector<4x1xf32>
    %510 = vector.broadcast %509 : vector<4x1xf32> to vector<4x128xf32>
    %511 = arith.mulf %475, %510 : vector<4x128xf32>
    %512 = arith.addf %508, %511 : vector<4x128xf32>
    %c0_124 = arith.constant 0 : index
    %c0_125 = arith.constant 0 : index
    %c0_126 = arith.constant 0 : index
    %513 = vector.load %arg9[%c0_124, %c0_125, %c0_126] : memref<5x4x4xf32, #tpu.memory_space<vmem>>, vector<1x4x4xf32>
    %514 = vector.shape_cast %513 : vector<1x4x4xf32> to vector<4x4xf32>
    %cst_127 = arith.constant dense<0.000000e+00> : vector<4x128xf32>
    %515 = tpu.matmul %514, %512, %cst_127 {dimension_numbers = #tpu.dot_dimension_numbers<[1], [0], [0], [1], [0, 0, 1, 1], [], []>} : vector<4x4xf32>, vector<4x128xf32>, vector<4x128xf32> -> vector<4x128xf32>
    %cst_128 = arith.constant dense<0.000000e+00> : vector<4xf32>
    %516 = vector.multi_reduction <add>, %515, %cst_128 [1] : vector<4x128xf32> to vector<4xf32>
    %517 = vector.shape_cast %516 : vector<4xf32> to vector<4x1xf32>
    %cst_129 = arith.constant 7.812500e-03 : f32
    %518 = vector.broadcast %cst_129 : f32 to vector<4x1xf32>
    %519 = arith.mulf %517, %518 : vector<4x1xf32>
    %520 = arith.mulf %515, %515 : vector<4x128xf32>
    %cst_130 = arith.constant dense<0.000000e+00> : vector<4xf32>
    %521 = vector.multi_reduction <add>, %520, %cst_130 [1] : vector<4x128xf32> to vector<4xf32>
    %522 = vector.shape_cast %521 : vector<4xf32> to vector<4x1xf32>
    %cst_131 = arith.constant 7.812500e-03 : f32
    %523 = vector.broadcast %cst_131 : f32 to vector<4x1xf32>
    %524 = arith.mulf %522, %523 : vector<4x1xf32>
    %525 = arith.mulf %519, %519 : vector<4x1xf32>
    %526 = arith.subf %524, %525 : vector<4x1xf32>
    %527 = vector.broadcast %519 : vector<4x1xf32> to vector<4x128xf32>
    %528 = arith.subf %515, %527 : vector<4x128xf32>
    %cst_132 = arith.constant 9.99999974E-6 : f32
    %529 = vector.broadcast %cst_132 : f32 to vector<4x1xf32>
    %530 = arith.addf %526, %529 : vector<4x1xf32>
    %531 = math.rsqrt %530 : vector<4x1xf32>
    %532 = vector.broadcast %531 : vector<4x1xf32> to vector<4x128xf32>
    %533 = arith.mulf %528, %532 : vector<4x128xf32>
    %534 = vector.broadcast %356 : f32 to vector<4x128xf32>
    %535 = arith.mulf %534, %533 : vector<4x128xf32>
    %536 = arith.addf %364, %535 : vector<4x128xf32>
    %537 = vector.broadcast %348 : f32 to vector<12x128xf32>
    %538 = arith.mulf %537, %51 : vector<12x128xf32>
    %c1_133 = arith.constant 1 : index
    %539 = memref.load %arg1[%c1_133] : memref<5xf32, #tpu.memory_space<smem>>
    %c1_134 = arith.constant 1 : index
    %c1_135 = arith.constant 1 : index
    %540 = memref.load %arg0[%c1_134, %c1_135] : memref<5x5xf32, #tpu.memory_space<smem>>
    %541 = arith.mulf %539, %540 : f32
    %c1_136 = arith.constant 1 : index
    %c2_137 = arith.constant 2 : index
    %542 = memref.load %arg0[%c1_136, %c2_137] : memref<5x5xf32, #tpu.memory_space<smem>>
    %543 = arith.mulf %539, %542 : f32
    %c1_138 = arith.constant 1 : index
    %c3_139 = arith.constant 3 : index
    %544 = memref.load %arg0[%c1_138, %c3_139] : memref<5x5xf32, #tpu.memory_space<smem>>
    %545 = arith.mulf %539, %544 : f32
    %c1_140 = arith.constant 1 : index
    %c4_141 = arith.constant 4 : index
    %546 = memref.load %arg0[%c1_140, %c4_141] : memref<5x5xf32, #tpu.memory_space<smem>>
    %547 = arith.mulf %539, %546 : f32
    %548 = vector.broadcast %541 : f32 to vector<4x128xf32>
    %549 = arith.mulf %548, %199 : vector<4x128xf32>
    %550 = vector.broadcast %543 : f32 to vector<4x128xf32>
    %551 = arith.mulf %550, %319 : vector<4x128xf32>
    %552 = arith.addf %549, %551 : vector<4x128xf32>
    %553 = vector.broadcast %545 : f32 to vector<4x128xf32>
    %554 = arith.mulf %553, %347 : vector<4x128xf32>
    %555 = arith.addf %552, %554 : vector<4x128xf32>
    %c1_142 = arith.constant 1 : index
    %c0_143 = arith.constant 0 : index
    %c0_144 = arith.constant 0 : index
    %556 = vector.load %arg6[%c1_142, %c0_143, %c0_144] : memref<5x4x9xf32, #tpu.memory_space<vmem>>, vector<1x4x9xf32>
    %557 = vector.shape_cast %556 : vector<1x4x9xf32> to vector<4x9xf32>
    %558 = vector.extract_strided_slice %557 {offsets = [0, 0], sizes = [4, 1], strides = [1, 1]} : vector<4x9xf32> to vector<4x1xf32>
    %559 = vector.broadcast %558 : vector<4x1xf32> to vector<4x128xf32>
    %560 = arith.mulf %237, %559 : vector<4x128xf32>
    %561 = vector.extract_strided_slice %557 {offsets = [0, 1], sizes = [4, 1], strides = [1, 1]} : vector<4x9xf32> to vector<4x1xf32>
    %562 = vector.broadcast %561 : vector<4x1xf32> to vector<4x128xf32>
    %563 = arith.mulf %239, %562 : vector<4x128xf32>
    %564 = arith.addf %560, %563 : vector<4x128xf32>
    %565 = vector.extract_strided_slice %557 {offsets = [0, 2], sizes = [4, 1], strides = [1, 1]} : vector<4x9xf32> to vector<4x1xf32>
    %566 = vector.broadcast %565 : vector<4x1xf32> to vector<4x128xf32>
    %567 = arith.mulf %241, %566 : vector<4x128xf32>
    %568 = arith.addf %564, %567 : vector<4x128xf32>
    %569 = vector.extract_strided_slice %557 {offsets = [0, 3], sizes = [4, 1], strides = [1, 1]} : vector<4x9xf32> to vector<4x1xf32>
    %570 = vector.broadcast %569 : vector<4x1xf32> to vector<4x128xf32>
    %571 = arith.mulf %243, %570 : vector<4x128xf32>
    %572 = arith.addf %568, %571 : vector<4x128xf32>
    %573 = vector.extract_strided_slice %557 {offsets = [0, 4], sizes = [4, 1], strides = [1, 1]} : vector<4x9xf32> to vector<4x1xf32>
    %574 = vector.broadcast %573 : vector<4x1xf32> to vector<4x128xf32>
    %575 = arith.mulf %245, %574 : vector<4x128xf32>
    %576 = arith.addf %572, %575 : vector<4x128xf32>
    %577 = vector.extract_strided_slice %557 {offsets = [0, 5], sizes = [4, 1], strides = [1, 1]} : vector<4x9xf32> to vector<4x1xf32>
    %578 = vector.broadcast %577 : vector<4x1xf32> to vector<4x128xf32>
    %579 = arith.mulf %247, %578 : vector<4x128xf32>
    %580 = arith.addf %576, %579 : vector<4x128xf32>
    %581 = vector.extract_strided_slice %557 {offsets = [0, 6], sizes = [4, 1], strides = [1, 1]} : vector<4x9xf32> to vector<4x1xf32>
    %582 = vector.broadcast %581 : vector<4x1xf32> to vector<4x128xf32>
    %583 = arith.mulf %249, %582 : vector<4x128xf32>
    %584 = arith.addf %580, %583 : vector<4x128xf32>
    %585 = vector.extract_strided_slice %557 {offsets = [0, 7], sizes = [4, 1], strides = [1, 1]} : vector<4x9xf32> to vector<4x1xf32>
    %586 = vector.broadcast %585 : vector<4x1xf32> to vector<4x128xf32>
    %587 = arith.mulf %251, %586 : vector<4x128xf32>
    %588 = arith.addf %584, %587 : vector<4x128xf32>
    %589 = vector.extract_strided_slice %557 {offsets = [0, 8], sizes = [4, 1], strides = [1, 1]} : vector<4x9xf32> to vector<4x1xf32>
    %590 = vector.broadcast %589 : vector<4x1xf32> to vector<4x128xf32>
    %591 = arith.mulf %253, %590 : vector<4x128xf32>
    %592 = arith.addf %588, %591 : vector<4x128xf32>
    %c1_145 = arith.constant 1 : index
    %c0_146 = arith.constant 0 : index
    %c0_147 = arith.constant 0 : index
    %593 = vector.load %arg7[%c1_145, %c0_146, %c0_147] : memref<5x4x4xf32, #tpu.memory_space<vmem>>, vector<1x4x4xf32>
    %594 = vector.shape_cast %593 : vector<1x4x4xf32> to vector<4x4xf32>
    %cst_148 = arith.constant dense<0.000000e+00> : vector<4x128xf32>
    %595 = tpu.matmul %594, %592, %cst_148 {dimension_numbers = #tpu.dot_dimension_numbers<[1], [0], [0], [1], [0, 0, 1, 1], [], []>} : vector<4x4xf32>, vector<4x128xf32>, vector<4x128xf32> -> vector<4x128xf32>
    %cst_149 = arith.constant dense<0.000000e+00> : vector<4xf32>
    %596 = vector.multi_reduction <add>, %595, %cst_149 [1] : vector<4x128xf32> to vector<4xf32>
    %597 = vector.shape_cast %596 : vector<4xf32> to vector<4x1xf32>
    %cst_150 = arith.constant 7.812500e-03 : f32
    %598 = vector.broadcast %cst_150 : f32 to vector<4x1xf32>
    %599 = arith.mulf %597, %598 : vector<4x1xf32>
    %600 = arith.mulf %595, %595 : vector<4x128xf32>
    %cst_151 = arith.constant dense<0.000000e+00> : vector<4xf32>
    %601 = vector.multi_reduction <add>, %600, %cst_151 [1] : vector<4x128xf32> to vector<4xf32>
    %602 = vector.shape_cast %601 : vector<4xf32> to vector<4x1xf32>
    %cst_152 = arith.constant 7.812500e-03 : f32
    %603 = vector.broadcast %cst_152 : f32 to vector<4x1xf32>
    %604 = arith.mulf %602, %603 : vector<4x1xf32>
    %605 = arith.mulf %599, %599 : vector<4x1xf32>
    %606 = arith.subf %604, %605 : vector<4x1xf32>
    %607 = vector.broadcast %599 : vector<4x1xf32> to vector<4x128xf32>
    %608 = arith.subf %595, %607 : vector<4x128xf32>
    %cst_153 = arith.constant 9.99999974E-6 : f32
    %609 = vector.broadcast %cst_153 : f32 to vector<4x1xf32>
    %610 = arith.addf %606, %609 : vector<4x1xf32>
    %611 = math.rsqrt %610 : vector<4x1xf32>
    %612 = vector.broadcast %611 : vector<4x1xf32> to vector<4x128xf32>
    %613 = arith.mulf %608, %612 : vector<4x128xf32>
    %c9_i32_154 = arith.constant 9 : i32
    %614 = tpu.dynamic_rotate %613 by %c9_i32_154 dim 1 : vector<4x128xf32>, i32 -> vector<4x128xf32>
    %615 = vector.extract_strided_slice %0 {offsets = [0, 0], sizes = [1, 128], strides = [1, 1]} : vector<9x128xf32> to vector<1x128xf32>
    %616 = vector.broadcast %615 : vector<1x128xf32> to vector<4x128xf32>
    %617 = arith.mulf %614, %616 : vector<4x128xf32>
    %c8_i32_155 = arith.constant 8 : i32
    %618 = tpu.dynamic_rotate %613 by %c8_i32_155 dim 1 : vector<4x128xf32>, i32 -> vector<4x128xf32>
    %619 = vector.extract_strided_slice %0 {offsets = [1, 0], sizes = [1, 128], strides = [1, 1]} : vector<9x128xf32> to vector<1x128xf32>
    %620 = vector.broadcast %619 : vector<1x128xf32> to vector<4x128xf32>
    %621 = arith.mulf %618, %620 : vector<4x128xf32>
    %c7_i32_156 = arith.constant 7 : i32
    %622 = tpu.dynamic_rotate %613 by %c7_i32_156 dim 1 : vector<4x128xf32>, i32 -> vector<4x128xf32>
    %623 = vector.extract_strided_slice %0 {offsets = [2, 0], sizes = [1, 128], strides = [1, 1]} : vector<9x128xf32> to vector<1x128xf32>
    %624 = vector.broadcast %623 : vector<1x128xf32> to vector<4x128xf32>
    %625 = arith.mulf %622, %624 : vector<4x128xf32>
    %c1_i32_157 = arith.constant 1 : i32
    %626 = tpu.dynamic_rotate %613 by %c1_i32_157 dim 1 : vector<4x128xf32>, i32 -> vector<4x128xf32>
    %627 = vector.extract_strided_slice %0 {offsets = [3, 0], sizes = [1, 128], strides = [1, 1]} : vector<9x128xf32> to vector<1x128xf32>
    %628 = vector.broadcast %627 : vector<1x128xf32> to vector<4x128xf32>
    %629 = arith.mulf %626, %628 : vector<4x128xf32>
    %630 = vector.extract_strided_slice %0 {offsets = [4, 0], sizes = [1, 128], strides = [1, 1]} : vector<9x128xf32> to vector<1x128xf32>
    %631 = vector.broadcast %630 : vector<1x128xf32> to vector<4x128xf32>
    %632 = arith.mulf %613, %631 : vector<4x128xf32>
    %c127_i32_158 = arith.constant 127 : i32
    %633 = tpu.dynamic_rotate %613 by %c127_i32_158 dim 1 : vector<4x128xf32>, i32 -> vector<4x128xf32>
    %634 = vector.extract_strided_slice %0 {offsets = [5, 0], sizes = [1, 128], strides = [1, 1]} : vector<9x128xf32> to vector<1x128xf32>
    %635 = vector.broadcast %634 : vector<1x128xf32> to vector<4x128xf32>
    %636 = arith.mulf %633, %635 : vector<4x128xf32>
    %c121_i32_159 = arith.constant 121 : i32
    %637 = tpu.dynamic_rotate %613 by %c121_i32_159 dim 1 : vector<4x128xf32>, i32 -> vector<4x128xf32>
    %638 = vector.extract_strided_slice %0 {offsets = [6, 0], sizes = [1, 128], strides = [1, 1]} : vector<9x128xf32> to vector<1x128xf32>
    %639 = vector.broadcast %638 : vector<1x128xf32> to vector<4x128xf32>
    %640 = arith.mulf %637, %639 : vector<4x128xf32>
    %c120_i32_160 = arith.constant 120 : i32
    %641 = tpu.dynamic_rotate %613 by %c120_i32_160 dim 1 : vector<4x128xf32>, i32 -> vector<4x128xf32>
    %642 = vector.extract_strided_slice %0 {offsets = [7, 0], sizes = [1, 128], strides = [1, 1]} : vector<9x128xf32> to vector<1x128xf32>
    %643 = vector.broadcast %642 : vector<1x128xf32> to vector<4x128xf32>
    %644 = arith.mulf %641, %643 : vector<4x128xf32>
    %c119_i32_161 = arith.constant 119 : i32
    %645 = tpu.dynamic_rotate %613 by %c119_i32_161 dim 1 : vector<4x128xf32>, i32 -> vector<4x128xf32>
    %646 = vector.extract_strided_slice %0 {offsets = [8, 0], sizes = [1, 128], strides = [1, 1]} : vector<9x128xf32> to vector<1x128xf32>
    %647 = vector.broadcast %646 : vector<1x128xf32> to vector<4x128xf32>
    %648 = arith.mulf %645, %647 : vector<4x128xf32>
    %cst_162 = arith.constant 0.000000e+00 : f32
    %649 = vector.broadcast %cst_162 : f32 to vector<4x128xf32>
    %650 = arith.maximumf %617, %649 : vector<4x128xf32>
    %cst_163 = arith.constant 0.000000e+00 : f32
    %651 = vector.broadcast %cst_163 : f32 to vector<4x128xf32>
    %652 = arith.maximumf %621, %651 : vector<4x128xf32>
    %cst_164 = arith.constant 0.000000e+00 : f32
    %653 = vector.broadcast %cst_164 : f32 to vector<4x128xf32>
    %654 = arith.maximumf %625, %653 : vector<4x128xf32>
    %cst_165 = arith.constant 0.000000e+00 : f32
    %655 = vector.broadcast %cst_165 : f32 to vector<4x128xf32>
    %656 = arith.maximumf %629, %655 : vector<4x128xf32>
    %cst_166 = arith.constant 0.000000e+00 : f32
    %657 = vector.broadcast %cst_166 : f32 to vector<4x128xf32>
    %658 = arith.maximumf %632, %657 : vector<4x128xf32>
    %cst_167 = arith.constant 0.000000e+00 : f32
    %659 = vector.broadcast %cst_167 : f32 to vector<4x128xf32>
    %660 = arith.maximumf %636, %659 : vector<4x128xf32>
    %cst_168 = arith.constant 0.000000e+00 : f32
    %661 = vector.broadcast %cst_168 : f32 to vector<4x128xf32>
    %662 = arith.maximumf %640, %661 : vector<4x128xf32>
    %cst_169 = arith.constant 0.000000e+00 : f32
    %663 = vector.broadcast %cst_169 : f32 to vector<4x128xf32>
    %664 = arith.maximumf %644, %663 : vector<4x128xf32>
    %cst_170 = arith.constant 0.000000e+00 : f32
    %665 = vector.broadcast %cst_170 : f32 to vector<4x128xf32>
    %666 = arith.maximumf %648, %665 : vector<4x128xf32>
    %c1_171 = arith.constant 1 : index
    %c0_172 = arith.constant 0 : index
    %c0_173 = arith.constant 0 : index
    %667 = vector.load %arg8[%c1_171, %c0_172, %c0_173] : memref<5x4x9xf32, #tpu.memory_space<vmem>>, vector<1x4x9xf32>
    %668 = vector.shape_cast %667 : vector<1x4x9xf32> to vector<4x9xf32>
    %669 = vector.extract_strided_slice %668 {offsets = [0, 0], sizes = [4, 1], strides = [1, 1]} : vector<4x9xf32> to vector<4x1xf32>
    %670 = vector.broadcast %669 : vector<4x1xf32> to vector<4x128xf32>
    %671 = arith.mulf %650, %670 : vector<4x128xf32>
    %672 = vector.extract_strided_slice %668 {offsets = [0, 1], sizes = [4, 1], strides = [1, 1]} : vector<4x9xf32> to vector<4x1xf32>
    %673 = vector.broadcast %672 : vector<4x1xf32> to vector<4x128xf32>
    %674 = arith.mulf %652, %673 : vector<4x128xf32>
    %675 = arith.addf %671, %674 : vector<4x128xf32>
    %676 = vector.extract_strided_slice %668 {offsets = [0, 2], sizes = [4, 1], strides = [1, 1]} : vector<4x9xf32> to vector<4x1xf32>
    %677 = vector.broadcast %676 : vector<4x1xf32> to vector<4x128xf32>
    %678 = arith.mulf %654, %677 : vector<4x128xf32>
    %679 = arith.addf %675, %678 : vector<4x128xf32>
    %680 = vector.extract_strided_slice %668 {offsets = [0, 3], sizes = [4, 1], strides = [1, 1]} : vector<4x9xf32> to vector<4x1xf32>
    %681 = vector.broadcast %680 : vector<4x1xf32> to vector<4x128xf32>
    %682 = arith.mulf %656, %681 : vector<4x128xf32>
    %683 = arith.addf %679, %682 : vector<4x128xf32>
    %684 = vector.extract_strided_slice %668 {offsets = [0, 4], sizes = [4, 1], strides = [1, 1]} : vector<4x9xf32> to vector<4x1xf32>
    %685 = vector.broadcast %684 : vector<4x1xf32> to vector<4x128xf32>
    %686 = arith.mulf %658, %685 : vector<4x128xf32>
    %687 = arith.addf %683, %686 : vector<4x128xf32>
    %688 = vector.extract_strided_slice %668 {offsets = [0, 5], sizes = [4, 1], strides = [1, 1]} : vector<4x9xf32> to vector<4x1xf32>
    %689 = vector.broadcast %688 : vector<4x1xf32> to vector<4x128xf32>
    %690 = arith.mulf %660, %689 : vector<4x128xf32>
    %691 = arith.addf %687, %690 : vector<4x128xf32>
    %692 = vector.extract_strided_slice %668 {offsets = [0, 6], sizes = [4, 1], strides = [1, 1]} : vector<4x9xf32> to vector<4x1xf32>
    %693 = vector.broadcast %692 : vector<4x1xf32> to vector<4x128xf32>
    %694 = arith.mulf %662, %693 : vector<4x128xf32>
    %695 = arith.addf %691, %694 : vector<4x128xf32>
    %696 = vector.extract_strided_slice %668 {offsets = [0, 7], sizes = [4, 1], strides = [1, 1]} : vector<4x9xf32> to vector<4x1xf32>
    %697 = vector.broadcast %696 : vector<4x1xf32> to vector<4x128xf32>
    %698 = arith.mulf %664, %697 : vector<4x128xf32>
    %699 = arith.addf %695, %698 : vector<4x128xf32>
    %700 = vector.extract_strided_slice %668 {offsets = [0, 8], sizes = [4, 1], strides = [1, 1]} : vector<4x9xf32> to vector<4x1xf32>
    %701 = vector.broadcast %700 : vector<4x1xf32> to vector<4x128xf32>
    %702 = arith.mulf %666, %701 : vector<4x128xf32>
    %703 = arith.addf %699, %702 : vector<4x128xf32>
    %c1_174 = arith.constant 1 : index
    %c0_175 = arith.constant 0 : index
    %c0_176 = arith.constant 0 : index
    %704 = vector.load %arg9[%c1_174, %c0_175, %c0_176] : memref<5x4x4xf32, #tpu.memory_space<vmem>>, vector<1x4x4xf32>
    %705 = vector.shape_cast %704 : vector<1x4x4xf32> to vector<4x4xf32>
    %cst_177 = arith.constant dense<0.000000e+00> : vector<4x128xf32>
    %706 = tpu.matmul %705, %703, %cst_177 {dimension_numbers = #tpu.dot_dimension_numbers<[1], [0], [0], [1], [0, 0, 1, 1], [], []>} : vector<4x4xf32>, vector<4x128xf32>, vector<4x128xf32> -> vector<4x128xf32>
    %cst_178 = arith.constant dense<0.000000e+00> : vector<4xf32>
    %707 = vector.multi_reduction <add>, %706, %cst_178 [1] : vector<4x128xf32> to vector<4xf32>
    %708 = vector.shape_cast %707 : vector<4xf32> to vector<4x1xf32>
    %cst_179 = arith.constant 7.812500e-03 : f32
    %709 = vector.broadcast %cst_179 : f32 to vector<4x1xf32>
    %710 = arith.mulf %708, %709 : vector<4x1xf32>
    %711 = arith.mulf %706, %706 : vector<4x128xf32>
    %cst_180 = arith.constant dense<0.000000e+00> : vector<4xf32>
    %712 = vector.multi_reduction <add>, %711, %cst_180 [1] : vector<4x128xf32> to vector<4xf32>
    %713 = vector.shape_cast %712 : vector<4xf32> to vector<4x1xf32>
    %cst_181 = arith.constant 7.812500e-03 : f32
    %714 = vector.broadcast %cst_181 : f32 to vector<4x1xf32>
    %715 = arith.mulf %713, %714 : vector<4x1xf32>
    %716 = arith.mulf %710, %710 : vector<4x1xf32>
    %717 = arith.subf %715, %716 : vector<4x1xf32>
    %718 = vector.broadcast %710 : vector<4x1xf32> to vector<4x128xf32>
    %719 = arith.subf %706, %718 : vector<4x128xf32>
    %cst_182 = arith.constant 9.99999974E-6 : f32
    %720 = vector.broadcast %cst_182 : f32 to vector<4x1xf32>
    %721 = arith.addf %717, %720 : vector<4x1xf32>
    %722 = math.rsqrt %721 : vector<4x1xf32>
    %723 = vector.broadcast %722 : vector<4x1xf32> to vector<4x128xf32>
    %724 = arith.mulf %719, %723 : vector<4x128xf32>
    %725 = vector.broadcast %547 : f32 to vector<4x128xf32>
    %726 = arith.mulf %725, %724 : vector<4x128xf32>
    %727 = arith.addf %555, %726 : vector<4x128xf32>
    %728 = vector.broadcast %539 : f32 to vector<12x128xf32>
    %729 = arith.mulf %728, %200 : vector<12x128xf32>
    %730 = arith.addf %536, %727 : vector<4x128xf32>
    %731 = arith.addf %538, %729 : vector<12x128xf32>
    %732 = vector.extract_strided_slice %730 {offsets = [0, 0], sizes = [1, 128], strides = [1, 1]} : vector<4x128xf32> to vector<1x128xf32>
    %733 = vector.extract_strided_slice %731 {offsets = [0, 0], sizes = [1, 128], strides = [1, 1]} : vector<12x128xf32> to vector<1x128xf32>
    %734 = vector.extract_strided_slice %731 {offsets = [4, 0], sizes = [1, 128], strides = [1, 1]} : vector<12x128xf32> to vector<1x128xf32>
    %735 = vector.extract_strided_slice %731 {offsets = [8, 0], sizes = [1, 128], strides = [1, 1]} : vector<12x128xf32> to vector<1x128xf32>
    %736 = vector.extract_strided_slice %730 {offsets = [1, 0], sizes = [1, 128], strides = [1, 1]} : vector<4x128xf32> to vector<1x128xf32>
    %737 = vector.extract_strided_slice %731 {offsets = [1, 0], sizes = [1, 128], strides = [1, 1]} : vector<12x128xf32> to vector<1x128xf32>
    %738 = vector.extract_strided_slice %731 {offsets = [5, 0], sizes = [1, 128], strides = [1, 1]} : vector<12x128xf32> to vector<1x128xf32>
    %739 = vector.extract_strided_slice %731 {offsets = [9, 0], sizes = [1, 128], strides = [1, 1]} : vector<12x128xf32> to vector<1x128xf32>
    %740 = vector.extract_strided_slice %730 {offsets = [2, 0], sizes = [1, 128], strides = [1, 1]} : vector<4x128xf32> to vector<1x128xf32>
    %741 = vector.extract_strided_slice %731 {offsets = [2, 0], sizes = [1, 128], strides = [1, 1]} : vector<12x128xf32> to vector<1x128xf32>
    %742 = vector.extract_strided_slice %731 {offsets = [6, 0], sizes = [1, 128], strides = [1, 1]} : vector<12x128xf32> to vector<1x128xf32>
    %743 = vector.extract_strided_slice %731 {offsets = [10, 0], sizes = [1, 128], strides = [1, 1]} : vector<12x128xf32> to vector<1x128xf32>
    %744 = vector.extract_strided_slice %730 {offsets = [3, 0], sizes = [1, 128], strides = [1, 1]} : vector<4x128xf32> to vector<1x128xf32>
    %745 = vector.extract_strided_slice %731 {offsets = [3, 0], sizes = [1, 128], strides = [1, 1]} : vector<12x128xf32> to vector<1x128xf32>
    %746 = vector.extract_strided_slice %731 {offsets = [7, 0], sizes = [1, 128], strides = [1, 1]} : vector<12x128xf32> to vector<1x128xf32>
    %747 = vector.extract_strided_slice %731 {offsets = [11, 0], sizes = [1, 128], strides = [1, 1]} : vector<12x128xf32> to vector<1x128xf32>
    %748 = tpu.concatenate %732, %733, %734, %735, %736, %737, %738, %739, %740, %741, %742, %743, %744, %745, %746, %747 in 0 : vector<1x128xf32>, vector<1x128xf32>, vector<1x128xf32>, vector<1x128xf32>, vector<1x128xf32>, vector<1x128xf32>, vector<1x128xf32>, vector<1x128xf32>, vector<1x128xf32>, vector<1x128xf32>, vector<1x128xf32>, vector<1x128xf32>, vector<1x128xf32>, vector<1x128xf32>, vector<1x128xf32>, vector<1x128xf32> -> vector<16x128xf32>
    %c0_183 = arith.constant 0 : index
    %c0_184 = arith.constant 0 : index
    %749 = vector.load %arg12[%c0_183, %c0_184] : memref<32x128xf32, #tpu.memory_space<vmem>>, vector<16x128xf32>
    tpu.vector_store %arg12[%c0_183, %c0_184], %748 {strides = array<i32>} : memref<32x128xf32, #tpu.memory_space<vmem>>, vector<16x128xf32>,
    %750 = vector.extract_strided_slice %748 {offsets = [0, 0], sizes = [4, 128], strides = [1, 1]} : vector<16x128xf32> to vector<4x128xf32>
    %751 = vector.extract_strided_slice %748 {offsets = [4, 0], sizes = [12, 128], strides = [1, 1]} : vector<16x128xf32> to vector<12x128xf32>
    %c9_i32_185 = arith.constant 9 : i32
    %752 = tpu.dynamic_rotate %750 by %c9_i32_185 dim 1 : vector<4x128xf32>, i32 -> vector<4x128xf32>
    %753 = vector.extract_strided_slice %0 {offsets = [0, 0], sizes = [1, 128], strides = [1, 1]} : vector<9x128xf32> to vector<1x128xf32>
    %754 = vector.broadcast %753 : vector<1x128xf32> to vector<4x128xf32>
    %755 = arith.mulf %752, %754 : vector<4x128xf32>
    %c8_i32_186 = arith.constant 8 : i32
    %756 = tpu.dynamic_rotate %750 by %c8_i32_186 dim 1 : vector<4x128xf32>, i32 -> vector<4x128xf32>
    %757 = vector.extract_strided_slice %0 {offsets = [1, 0], sizes = [1, 128], strides = [1, 1]} : vector<9x128xf32> to vector<1x128xf32>
    %758 = vector.broadcast %757 : vector<1x128xf32> to vector<4x128xf32>
    %759 = arith.mulf %756, %758 : vector<4x128xf32>
    %c7_i32_187 = arith.constant 7 : i32
    %760 = tpu.dynamic_rotate %750 by %c7_i32_187 dim 1 : vector<4x128xf32>, i32 -> vector<4x128xf32>
    %761 = vector.extract_strided_slice %0 {offsets = [2, 0], sizes = [1, 128], strides = [1, 1]} : vector<9x128xf32> to vector<1x128xf32>
    %762 = vector.broadcast %761 : vector<1x128xf32> to vector<4x128xf32>
    %763 = arith.mulf %760, %762 : vector<4x128xf32>
    %c1_i32_188 = arith.constant 1 : i32
    %764 = tpu.dynamic_rotate %750 by %c1_i32_188 dim 1 : vector<4x128xf32>, i32 -> vector<4x128xf32>
    %765 = vector.extract_strided_slice %0 {offsets = [3, 0], sizes = [1, 128], strides = [1, 1]} : vector<9x128xf32> to vector<1x128xf32>
    %766 = vector.broadcast %765 : vector<1x128xf32> to vector<4x128xf32>
    %767 = arith.mulf %764, %766 : vector<4x128xf32>
    %768 = vector.extract_strided_slice %0 {offsets = [4, 0], sizes = [1, 128], strides = [1, 1]} : vector<9x128xf32> to vector<1x128xf32>
    %769 = vector.broadcast %768 : vector<1x128xf32> to vector<4x128xf32>
    %770 = arith.mulf %750, %769 : vector<4x128xf32>
    %c127_i32_189 = arith.constant 127 : i32
    %771 = tpu.dynamic_rotate %750 by %c127_i32_189 dim 1 : vector<4x128xf32>, i32 -> vector<4x128xf32>
    %772 = vector.extract_strided_slice %0 {offsets = [5, 0], sizes = [1, 128], strides = [1, 1]} : vector<9x128xf32> to vector<1x128xf32>
    %773 = vector.broadcast %772 : vector<1x128xf32> to vector<4x128xf32>
    %774 = arith.mulf %771, %773 : vector<4x128xf32>
    %c121_i32_190 = arith.constant 121 : i32
    %775 = tpu.dynamic_rotate %750 by %c121_i32_190 dim 1 : vector<4x128xf32>, i32 -> vector<4x128xf32>
    %776 = vector.extract_strided_slice %0 {offsets = [6, 0], sizes = [1, 128], strides = [1, 1]} : vector<9x128xf32> to vector<1x128xf32>
    %777 = vector.broadcast %776 : vector<1x128xf32> to vector<4x128xf32>
    %778 = arith.mulf %775, %777 : vector<4x128xf32>
    %c120_i32_191 = arith.constant 120 : i32
    %779 = tpu.dynamic_rotate %750 by %c120_i32_191 dim 1 : vector<4x128xf32>, i32 -> vector<4x128xf32>
    %780 = vector.extract_strided_slice %0 {offsets = [7, 0], sizes = [1, 128], strides = [1, 1]} : vector<9x128xf32> to vector<1x128xf32>
    %781 = vector.broadcast %780 : vector<1x128xf32> to vector<4x128xf32>
    %782 = arith.mulf %779, %781 : vector<4x128xf32>
    %c119_i32_192 = arith.constant 119 : i32
    %783 = tpu.dynamic_rotate %750 by %c119_i32_192 dim 1 : vector<4x128xf32>, i32 -> vector<4x128xf32>
    %784 = vector.extract_strided_slice %0 {offsets = [8, 0], sizes = [1, 128], strides = [1, 1]} : vector<9x128xf32> to vector<1x128xf32>
    %785 = vector.broadcast %784 : vector<1x128xf32> to vector<4x128xf32>
    %786 = arith.mulf %783, %785 : vector<4x128xf32>
    %cst_193 = arith.constant 0.000000e+00 : f32
    %787 = vector.broadcast %cst_193 : f32 to vector<4x128xf32>
    %788 = arith.maximumf %755, %787 : vector<4x128xf32>
    %cst_194 = arith.constant 0.000000e+00 : f32
    %789 = vector.broadcast %cst_194 : f32 to vector<4x128xf32>
    %790 = arith.maximumf %759, %789 : vector<4x128xf32>
    %cst_195 = arith.constant 0.000000e+00 : f32
    %791 = vector.broadcast %cst_195 : f32 to vector<4x128xf32>
    %792 = arith.maximumf %763, %791 : vector<4x128xf32>
    %cst_196 = arith.constant 0.000000e+00 : f32
    %793 = vector.broadcast %cst_196 : f32 to vector<4x128xf32>
    %794 = arith.maximumf %767, %793 : vector<4x128xf32>
    %cst_197 = arith.constant 0.000000e+00 : f32
    %795 = vector.broadcast %cst_197 : f32 to vector<4x128xf32>
    %796 = arith.maximumf %770, %795 : vector<4x128xf32>
    %cst_198 = arith.constant 0.000000e+00 : f32
    %797 = vector.broadcast %cst_198 : f32 to vector<4x128xf32>
    %798 = arith.maximumf %774, %797 : vector<4x128xf32>
    %cst_199 = arith.constant 0.000000e+00 : f32
    %799 = vector.broadcast %cst_199 : f32 to vector<4x128xf32>
    %800 = arith.maximumf %778, %799 : vector<4x128xf32>
    %cst_200 = arith.constant 0.000000e+00 : f32
    %801 = vector.broadcast %cst_200 : f32 to vector<4x128xf32>
    %802 = arith.maximumf %782, %801 : vector<4x128xf32>
    %cst_201 = arith.constant 0.000000e+00 : f32
    %803 = vector.broadcast %cst_201 : f32 to vector<4x128xf32>
    %804 = arith.maximumf %786, %803 : vector<4x128xf32>
    %805 = vector.extract_strided_slice %2 {offsets = [0, 0], sizes = [1, 128], strides = [1, 1]} : vector<9x128xi1> to vector<1x128xi1>
    %cst_202 = arith.constant 0xFF800000 : f32
    %806 = vector.shape_cast %805 : vector<1x128xi1> to vector<1x128xi1>
    %807 = vector.broadcast %806 : vector<1x128xi1> to vector<4x128xi1>
    %808 = vector.broadcast %cst_202 : f32 to vector<4x128xf32>
    %809 = arith.select %807, %755, %808 : vector<4x128xi1>, vector<4x128xf32>
    %810 = arith.maximumf %770, %809 : vector<4x128xf32>
    %811 = vector.extract_strided_slice %2 {offsets = [1, 0], sizes = [1, 128], strides = [1, 1]} : vector<9x128xi1> to vector<1x128xi1>
    %cst_203 = arith.constant 0xFF800000 : f32
    %812 = vector.shape_cast %811 : vector<1x128xi1> to vector<1x128xi1>
    %813 = vector.broadcast %812 : vector<1x128xi1> to vector<4x128xi1>
    %814 = vector.broadcast %cst_203 : f32 to vector<4x128xf32>
    %815 = arith.select %813, %759, %814 : vector<4x128xi1>, vector<4x128xf32>
    %816 = arith.maximumf %810, %815 : vector<4x128xf32>
    %817 = vector.extract_strided_slice %2 {offsets = [2, 0], sizes = [1, 128], strides = [1, 1]} : vector<9x128xi1> to vector<1x128xi1>
    %cst_204 = arith.constant 0xFF800000 : f32
    %818 = vector.shape_cast %817 : vector<1x128xi1> to vector<1x128xi1>
    %819 = vector.broadcast %818 : vector<1x128xi1> to vector<4x128xi1>
    %820 = vector.broadcast %cst_204 : f32 to vector<4x128xf32>
    %821 = arith.select %819, %763, %820 : vector<4x128xi1>, vector<4x128xf32>
    %822 = arith.maximumf %816, %821 : vector<4x128xf32>
    %823 = vector.extract_strided_slice %2 {offsets = [3, 0], sizes = [1, 128], strides = [1, 1]} : vector<9x128xi1> to vector<1x128xi1>
    %cst_205 = arith.constant 0xFF800000 : f32
    %824 = vector.shape_cast %823 : vector<1x128xi1> to vector<1x128xi1>
    %825 = vector.broadcast %824 : vector<1x128xi1> to vector<4x128xi1>
    %826 = vector.broadcast %cst_205 : f32 to vector<4x128xf32>
    %827 = arith.select %825, %767, %826 : vector<4x128xi1>, vector<4x128xf32>
    %828 = arith.maximumf %822, %827 : vector<4x128xf32>
    %829 = vector.extract_strided_slice %2 {offsets = [5, 0], sizes = [1, 128], strides = [1, 1]} : vector<9x128xi1> to vector<1x128xi1>
    %cst_206 = arith.constant 0xFF800000 : f32
    %830 = vector.shape_cast %829 : vector<1x128xi1> to vector<1x128xi1>
    %831 = vector.broadcast %830 : vector<1x128xi1> to vector<4x128xi1>
    %832 = vector.broadcast %cst_206 : f32 to vector<4x128xf32>
    %833 = arith.select %831, %774, %832 : vector<4x128xi1>, vector<4x128xf32>
    %834 = arith.maximumf %828, %833 : vector<4x128xf32>
    %835 = vector.extract_strided_slice %2 {offsets = [6, 0], sizes = [1, 128], strides = [1, 1]} : vector<9x128xi1> to vector<1x128xi1>
    %cst_207 = arith.constant 0xFF800000 : f32
    %836 = vector.shape_cast %835 : vector<1x128xi1> to vector<1x128xi1>
    %837 = vector.broadcast %836 : vector<1x128xi1> to vector<4x128xi1>
    %838 = vector.broadcast %cst_207 : f32 to vector<4x128xf32>
    %839 = arith.select %837, %778, %838 : vector<4x128xi1>, vector<4x128xf32>
    %840 = arith.maximumf %834, %839 : vector<4x128xf32>
    %841 = vector.extract_strided_slice %2 {offsets = [7, 0], sizes = [1, 128], strides = [1, 1]} : vector<9x128xi1> to vector<1x128xi1>
    %cst_208 = arith.constant 0xFF800000 : f32
    %842 = vector.shape_cast %841 : vector<1x128xi1> to vector<1x128xi1>
    %843 = vector.broadcast %842 : vector<1x128xi1> to vector<4x128xi1>
    %844 = vector.broadcast %cst_208 : f32 to vector<4x128xf32>
    %845 = arith.select %843, %782, %844 : vector<4x128xi1>, vector<4x128xf32>
    %846 = arith.maximumf %840, %845 : vector<4x128xf32>
    %847 = vector.extract_strided_slice %2 {offsets = [8, 0], sizes = [1, 128], strides = [1, 1]} : vector<9x128xi1> to vector<1x128xi1>
    %cst_209 = arith.constant 0xFF800000 : f32
    %848 = vector.shape_cast %847 : vector<1x128xi1> to vector<1x128xi1>
    %849 = vector.broadcast %848 : vector<1x128xi1> to vector<4x128xi1>
    %850 = vector.broadcast %cst_209 : f32 to vector<4x128xf32>
    %851 = arith.select %849, %786, %850 : vector<4x128xi1>, vector<4x128xf32>
    %852 = arith.maximumf %846, %851 : vector<4x128xf32>
    %cst_210 = arith.constant dense<0.000000e+00> : vector<4xf32>
    %853 = vector.multi_reduction <add>, %852, %cst_210 [1] : vector<4x128xf32> to vector<4xf32>
    %854 = vector.shape_cast %853 : vector<4xf32> to vector<4x1xf32>
    %cst_211 = arith.constant 7.812500e-03 : f32
    %855 = vector.broadcast %cst_211 : f32 to vector<4x1xf32>
    %856 = arith.mulf %854, %855 : vector<4x1xf32>
    %857 = arith.mulf %852, %852 : vector<4x128xf32>
    %cst_212 = arith.constant dense<0.000000e+00> : vector<4xf32>
    %858 = vector.multi_reduction <add>, %857, %cst_212 [1] : vector<4x128xf32> to vector<4xf32>
    %859 = vector.shape_cast %858 : vector<4xf32> to vector<4x1xf32>
    %cst_213 = arith.constant 7.812500e-03 : f32
    %860 = vector.broadcast %cst_213 : f32 to vector<4x1xf32>
    %861 = arith.mulf %859, %860 : vector<4x1xf32>
    %862 = arith.mulf %856, %856 : vector<4x1xf32>
    %863 = arith.subf %861, %862 : vector<4x1xf32>
    %864 = vector.broadcast %856 : vector<4x1xf32> to vector<4x128xf32>
    %865 = arith.subf %852, %864 : vector<4x128xf32>
    %cst_214 = arith.constant 9.99999974E-6 : f32
    %866 = vector.broadcast %cst_214 : f32 to vector<4x1xf32>
    %867 = arith.addf %863, %866 : vector<4x1xf32>
    %868 = math.rsqrt %867 : vector<4x1xf32>
    %869 = vector.broadcast %868 : vector<4x1xf32> to vector<4x128xf32>
    %870 = arith.mulf %865, %869 : vector<4x128xf32>
    %871 = arith.addf %755, %759 : vector<4x128xf32>
    %872 = arith.addf %871, %763 : vector<4x128xf32>
    %873 = arith.addf %872, %767 : vector<4x128xf32>
    %874 = arith.addf %873, %770 : vector<4x128xf32>
    %875 = arith.addf %874, %774 : vector<4x128xf32>
    %876 = arith.addf %875, %778 : vector<4x128xf32>
    %877 = arith.addf %876, %782 : vector<4x128xf32>
    %878 = arith.addf %877, %786 : vector<4x128xf32>
    %879 = vector.broadcast %3 : vector<1x128xf32> to vector<4x128xf32>
    %880 = arith.mulf %878, %879 : vector<4x128xf32>
    %cst_215 = arith.constant dense<0.000000e+00> : vector<4xf32>
    %881 = vector.multi_reduction <add>, %880, %cst_215 [1] : vector<4x128xf32> to vector<4xf32>
    %882 = vector.shape_cast %881 : vector<4xf32> to vector<4x1xf32>
    %cst_216 = arith.constant 7.812500e-03 : f32
    %883 = vector.broadcast %cst_216 : f32 to vector<4x1xf32>
    %884 = arith.mulf %882, %883 : vector<4x1xf32>
    %885 = arith.mulf %880, %880 : vector<4x128xf32>
    %cst_217 = arith.constant dense<0.000000e+00> : vector<4xf32>
    %886 = vector.multi_reduction <add>, %885, %cst_217 [1] : vector<4x128xf32> to vector<4xf32>
    %887 = vector.shape_cast %886 : vector<4xf32> to vector<4x1xf32>
    %cst_218 = arith.constant 7.812500e-03 : f32
    %888 = vector.broadcast %cst_218 : f32 to vector<4x1xf32>
    %889 = arith.mulf %887, %888 : vector<4x1xf32>
    %890 = arith.mulf %884, %884 : vector<4x1xf32>
    %891 = arith.subf %889, %890 : vector<4x1xf32>
    %892 = vector.broadcast %884 : vector<4x1xf32> to vector<4x128xf32>
    %893 = arith.subf %880, %892 : vector<4x128xf32>
    %cst_219 = arith.constant 9.99999974E-6 : f32
    %894 = vector.broadcast %cst_219 : f32 to vector<4x1xf32>
    %895 = arith.addf %891, %894 : vector<4x1xf32>
    %896 = math.rsqrt %895 : vector<4x1xf32>
    %897 = vector.broadcast %896 : vector<4x1xf32> to vector<4x128xf32>
    %898 = arith.mulf %893, %897 : vector<4x128xf32>
    %c2_220 = arith.constant 2 : index
    %899 = memref.load %arg1[%c2_220] : memref<5xf32, #tpu.memory_space<smem>>
    %c2_221 = arith.constant 2 : index
    %c1_222 = arith.constant 1 : index
    %900 = memref.load %arg0[%c2_221, %c1_222] : memref<5x5xf32, #tpu.memory_space<smem>>
    %901 = arith.mulf %899, %900 : f32
    %c2_223 = arith.constant 2 : index
    %c2_224 = arith.constant 2 : index
    %902 = memref.load %arg0[%c2_223, %c2_224] : memref<5x5xf32, #tpu.memory_space<smem>>
    %903 = arith.mulf %899, %902 : f32
    %c2_225 = arith.constant 2 : index
    %c3_226 = arith.constant 3 : index
    %904 = memref.load %arg0[%c2_225, %c3_226] : memref<5x5xf32, #tpu.memory_space<smem>>
    %905 = arith.mulf %899, %904 : f32
    %c2_227 = arith.constant 2 : index
    %c4_228 = arith.constant 4 : index
    %906 = memref.load %arg0[%c2_227, %c4_228] : memref<5x5xf32, #tpu.memory_space<smem>>
    %907 = arith.mulf %899, %906 : f32
    %908 = vector.broadcast %901 : f32 to vector<4x128xf32>
    %909 = arith.mulf %908, %50 : vector<4x128xf32>
    %910 = vector.broadcast %903 : f32 to vector<4x128xf32>
    %911 = arith.mulf %910, %170 : vector<4x128xf32>
    %912 = arith.addf %909, %911 : vector<4x128xf32>
    %913 = vector.broadcast %905 : f32 to vector<4x128xf32>
    %914 = arith.mulf %913, %198 : vector<4x128xf32>
    %915 = arith.addf %912, %914 : vector<4x128xf32>
    %c2_229 = arith.constant 2 : index
    %c0_230 = arith.constant 0 : index
    %c0_231 = arith.constant 0 : index
    %916 = vector.load %arg6[%c2_229, %c0_230, %c0_231] : memref<5x4x9xf32, #tpu.memory_space<vmem>>, vector<1x4x9xf32>
    %917 = vector.shape_cast %916 : vector<1x4x9xf32> to vector<4x9xf32>
    %918 = vector.extract_strided_slice %917 {offsets = [0, 0], sizes = [4, 1], strides = [1, 1]} : vector<4x9xf32> to vector<4x1xf32>
    %919 = vector.broadcast %918 : vector<4x1xf32> to vector<4x128xf32>
    %920 = arith.mulf %88, %919 : vector<4x128xf32>
    %921 = vector.extract_strided_slice %917 {offsets = [0, 1], sizes = [4, 1], strides = [1, 1]} : vector<4x9xf32> to vector<4x1xf32>
    %922 = vector.broadcast %921 : vector<4x1xf32> to vector<4x128xf32>
    %923 = arith.mulf %90, %922 : vector<4x128xf32>
    %924 = arith.addf %920, %923 : vector<4x128xf32>
    %925 = vector.extract_strided_slice %917 {offsets = [0, 2], sizes = [4, 1], strides = [1, 1]} : vector<4x9xf32> to vector<4x1xf32>
    %926 = vector.broadcast %925 : vector<4x1xf32> to vector<4x128xf32>
    %927 = arith.mulf %92, %926 : vector<4x128xf32>
    %928 = arith.addf %924, %927 : vector<4x128xf32>
    %929 = vector.extract_strided_slice %917 {offsets = [0, 3], sizes = [4, 1], strides = [1, 1]} : vector<4x9xf32> to vector<4x1xf32>
    %930 = vector.broadcast %929 : vector<4x1xf32> to vector<4x128xf32>
    %931 = arith.mulf %94, %930 : vector<4x128xf32>
    %932 = arith.addf %928, %931 : vector<4x128xf32>
    %933 = vector.extract_strided_slice %917 {offsets = [0, 4], sizes = [4, 1], strides = [1, 1]} : vector<4x9xf32> to vector<4x1xf32>
    %934 = vector.broadcast %933 : vector<4x1xf32> to vector<4x128xf32>
    %935 = arith.mulf %96, %934 : vector<4x128xf32>
    %936 = arith.addf %932, %935 : vector<4x128xf32>
    %937 = vector.extract_strided_slice %917 {offsets = [0, 5], sizes = [4, 1], strides = [1, 1]} : vector<4x9xf32> to vector<4x1xf32>
    %938 = vector.broadcast %937 : vector<4x1xf32> to vector<4x128xf32>
    %939 = arith.mulf %98, %938 : vector<4x128xf32>
    %940 = arith.addf %936, %939 : vector<4x128xf32>
    %941 = vector.extract_strided_slice %917 {offsets = [0, 6], sizes = [4, 1], strides = [1, 1]} : vector<4x9xf32> to vector<4x1xf32>
    %942 = vector.broadcast %941 : vector<4x1xf32> to vector<4x128xf32>
    %943 = arith.mulf %100, %942 : vector<4x128xf32>
    %944 = arith.addf %940, %943 : vector<4x128xf32>
    %945 = vector.extract_strided_slice %917 {offsets = [0, 7], sizes = [4, 1], strides = [1, 1]} : vector<4x9xf32> to vector<4x1xf32>
    %946 = vector.broadcast %945 : vector<4x1xf32> to vector<4x128xf32>
    %947 = arith.mulf %102, %946 : vector<4x128xf32>
    %948 = arith.addf %944, %947 : vector<4x128xf32>
    %949 = vector.extract_strided_slice %917 {offsets = [0, 8], sizes = [4, 1], strides = [1, 1]} : vector<4x9xf32> to vector<4x1xf32>
    %950 = vector.broadcast %949 : vector<4x1xf32> to vector<4x128xf32>
    %951 = arith.mulf %104, %950 : vector<4x128xf32>
    %952 = arith.addf %948, %951 : vector<4x128xf32>
    %c2_232 = arith.constant 2 : index
    %c0_233 = arith.constant 0 : index
    %c0_234 = arith.constant 0 : index
    %953 = vector.load %arg7[%c2_232, %c0_233, %c0_234] : memref<5x4x4xf32, #tpu.memory_space<vmem>>, vector<1x4x4xf32>
    %954 = vector.shape_cast %953 : vector<1x4x4xf32> to vector<4x4xf32>
    %cst_235 = arith.constant dense<0.000000e+00> : vector<4x128xf32>
    %955 = tpu.matmul %954, %952, %cst_235 {dimension_numbers = #tpu.dot_dimension_numbers<[1], [0], [0], [1], [0, 0, 1, 1], [], []>} : vector<4x4xf32>, vector<4x128xf32>, vector<4x128xf32> -> vector<4x128xf32>
    %cst_236 = arith.constant dense<0.000000e+00> : vector<4xf32>
    %956 = vector.multi_reduction <add>, %955, %cst_236 [1] : vector<4x128xf32> to vector<4xf32>
    %957 = vector.shape_cast %956 : vector<4xf32> to vector<4x1xf32>
    %cst_237 = arith.constant 7.812500e-03 : f32
    %958 = vector.broadcast %cst_237 : f32 to vector<4x1xf32>
    %959 = arith.mulf %957, %958 : vector<4x1xf32>
    %960 = arith.mulf %955, %955 : vector<4x128xf32>
    %cst_238 = arith.constant dense<0.000000e+00> : vector<4xf32>
    %961 = vector.multi_reduction <add>, %960, %cst_238 [1] : vector<4x128xf32> to vector<4xf32>
    %962 = vector.shape_cast %961 : vector<4xf32> to vector<4x1xf32>
    %cst_239 = arith.constant 7.812500e-03 : f32
    %963 = vector.broadcast %cst_239 : f32 to vector<4x1xf32>
    %964 = arith.mulf %962, %963 : vector<4x1xf32>
    %965 = arith.mulf %959, %959 : vector<4x1xf32>
    %966 = arith.subf %964, %965 : vector<4x1xf32>
    %967 = vector.broadcast %959 : vector<4x1xf32> to vector<4x128xf32>
    %968 = arith.subf %955, %967 : vector<4x128xf32>
    %cst_240 = arith.constant 9.99999974E-6 : f32
    %969 = vector.broadcast %cst_240 : f32 to vector<4x1xf32>
    %970 = arith.addf %966, %969 : vector<4x1xf32>
    %971 = math.rsqrt %970 : vector<4x1xf32>
    %972 = vector.broadcast %971 : vector<4x1xf32> to vector<4x128xf32>
    %973 = arith.mulf %968, %972 : vector<4x128xf32>
    %c9_i32_241 = arith.constant 9 : i32
    %974 = tpu.dynamic_rotate %973 by %c9_i32_241 dim 1 : vector<4x128xf32>, i32 -> vector<4x128xf32>
    %975 = vector.extract_strided_slice %0 {offsets = [0, 0], sizes = [1, 128], strides = [1, 1]} : vector<9x128xf32> to vector<1x128xf32>
    %976 = vector.broadcast %975 : vector<1x128xf32> to vector<4x128xf32>
    %977 = arith.mulf %974, %976 : vector<4x128xf32>
    %c8_i32_242 = arith.constant 8 : i32
    %978 = tpu.dynamic_rotate %973 by %c8_i32_242 dim 1 : vector<4x128xf32>, i32 -> vector<4x128xf32>
    %979 = vector.extract_strided_slice %0 {offsets = [1, 0], sizes = [1, 128], strides = [1, 1]} : vector<9x128xf32> to vector<1x128xf32>
    %980 = vector.broadcast %979 : vector<1x128xf32> to vector<4x128xf32>
    %981 = arith.mulf %978, %980 : vector<4x128xf32>
    %c7_i32_243 = arith.constant 7 : i32
    %982 = tpu.dynamic_rotate %973 by %c7_i32_243 dim 1 : vector<4x128xf32>, i32 -> vector<4x128xf32>
    %983 = vector.extract_strided_slice %0 {offsets = [2, 0], sizes = [1, 128], strides = [1, 1]} : vector<9x128xf32> to vector<1x128xf32>
    %984 = vector.broadcast %983 : vector<1x128xf32> to vector<4x128xf32>
    %985 = arith.mulf %982, %984 : vector<4x128xf32>
    %c1_i32_244 = arith.constant 1 : i32
    %986 = tpu.dynamic_rotate %973 by %c1_i32_244 dim 1 : vector<4x128xf32>, i32 -> vector<4x128xf32>
    %987 = vector.extract_strided_slice %0 {offsets = [3, 0], sizes = [1, 128], strides = [1, 1]} : vector<9x128xf32> to vector<1x128xf32>
    %988 = vector.broadcast %987 : vector<1x128xf32> to vector<4x128xf32>
    %989 = arith.mulf %986, %988 : vector<4x128xf32>
    %990 = vector.extract_strided_slice %0 {offsets = [4, 0], sizes = [1, 128], strides = [1, 1]} : vector<9x128xf32> to vector<1x128xf32>
    %991 = vector.broadcast %990 : vector<1x128xf32> to vector<4x128xf32>
    %992 = arith.mulf %973, %991 : vector<4x128xf32>
    %c127_i32_245 = arith.constant 127 : i32
    %993 = tpu.dynamic_rotate %973 by %c127_i32_245 dim 1 : vector<4x128xf32>, i32 -> vector<4x128xf32>
    %994 = vector.extract_strided_slice %0 {offsets = [5, 0], sizes = [1, 128], strides = [1, 1]} : vector<9x128xf32> to vector<1x128xf32>
    %995 = vector.broadcast %994 : vector<1x128xf32> to vector<4x128xf32>
    %996 = arith.mulf %993, %995 : vector<4x128xf32>
    %c121_i32_246 = arith.constant 121 : i32
    %997 = tpu.dynamic_rotate %973 by %c121_i32_246 dim 1 : vector<4x128xf32>, i32 -> vector<4x128xf32>
    %998 = vector.extract_strided_slice %0 {offsets = [6, 0], sizes = [1, 128], strides = [1, 1]} : vector<9x128xf32> to vector<1x128xf32>
    %999 = vector.broadcast %998 : vector<1x128xf32> to vector<4x128xf32>
    %1000 = arith.mulf %997, %999 : vector<4x128xf32>
    %c120_i32_247 = arith.constant 120 : i32
    %1001 = tpu.dynamic_rotate %973 by %c120_i32_247 dim 1 : vector<4x128xf32>, i32 -> vector<4x128xf32>
    %1002 = vector.extract_strided_slice %0 {offsets = [7, 0], sizes = [1, 128], strides = [1, 1]} : vector<9x128xf32> to vector<1x128xf32>
    %1003 = vector.broadcast %1002 : vector<1x128xf32> to vector<4x128xf32>
    %1004 = arith.mulf %1001, %1003 : vector<4x128xf32>
    %c119_i32_248 = arith.constant 119 : i32
    %1005 = tpu.dynamic_rotate %973 by %c119_i32_248 dim 1 : vector<4x128xf32>, i32 -> vector<4x128xf32>
    %1006 = vector.extract_strided_slice %0 {offsets = [8, 0], sizes = [1, 128], strides = [1, 1]} : vector<9x128xf32> to vector<1x128xf32>
    %1007 = vector.broadcast %1006 : vector<1x128xf32> to vector<4x128xf32>
    %1008 = arith.mulf %1005, %1007 : vector<4x128xf32>
    %cst_249 = arith.constant 0.000000e+00 : f32
    %1009 = vector.broadcast %cst_249 : f32 to vector<4x128xf32>
    %1010 = arith.maximumf %977, %1009 : vector<4x128xf32>
    %cst_250 = arith.constant 0.000000e+00 : f32
    %1011 = vector.broadcast %cst_250 : f32 to vector<4x128xf32>
    %1012 = arith.maximumf %981, %1011 : vector<4x128xf32>
    %cst_251 = arith.constant 0.000000e+00 : f32
    %1013 = vector.broadcast %cst_251 : f32 to vector<4x128xf32>
    %1014 = arith.maximumf %985, %1013 : vector<4x128xf32>
    %cst_252 = arith.constant 0.000000e+00 : f32
    %1015 = vector.broadcast %cst_252 : f32 to vector<4x128xf32>
    %1016 = arith.maximumf %989, %1015 : vector<4x128xf32>
    %cst_253 = arith.constant 0.000000e+00 : f32
    %1017 = vector.broadcast %cst_253 : f32 to vector<4x128xf32>
    %1018 = arith.maximumf %992, %1017 : vector<4x128xf32>
    %cst_254 = arith.constant 0.000000e+00 : f32
    %1019 = vector.broadcast %cst_254 : f32 to vector<4x128xf32>
    %1020 = arith.maximumf %996, %1019 : vector<4x128xf32>
    %cst_255 = arith.constant 0.000000e+00 : f32
    %1021 = vector.broadcast %cst_255 : f32 to vector<4x128xf32>
    %1022 = arith.maximumf %1000, %1021 : vector<4x128xf32>
    %cst_256 = arith.constant 0.000000e+00 : f32
    %1023 = vector.broadcast %cst_256 : f32 to vector<4x128xf32>
    %1024 = arith.maximumf %1004, %1023 : vector<4x128xf32>
    %cst_257 = arith.constant 0.000000e+00 : f32
    %1025 = vector.broadcast %cst_257 : f32 to vector<4x128xf32>
    %1026 = arith.maximumf %1008, %1025 : vector<4x128xf32>
    %c2_258 = arith.constant 2 : index
    %c0_259 = arith.constant 0 : index
    %c0_260 = arith.constant 0 : index
    %1027 = vector.load %arg8[%c2_258, %c0_259, %c0_260] : memref<5x4x9xf32, #tpu.memory_space<vmem>>, vector<1x4x9xf32>
    %1028 = vector.shape_cast %1027 : vector<1x4x9xf32> to vector<4x9xf32>
    %1029 = vector.extract_strided_slice %1028 {offsets = [0, 0], sizes = [4, 1], strides = [1, 1]} : vector<4x9xf32> to vector<4x1xf32>
    %1030 = vector.broadcast %1029 : vector<4x1xf32> to vector<4x128xf32>
    %1031 = arith.mulf %1010, %1030 : vector<4x128xf32>
    %1032 = vector.extract_strided_slice %1028 {offsets = [0, 1], sizes = [4, 1], strides = [1, 1]} : vector<4x9xf32> to vector<4x1xf32>
    %1033 = vector.broadcast %1032 : vector<4x1xf32> to vector<4x128xf32>
    %1034 = arith.mulf %1012, %1033 : vector<4x128xf32>
    %1035 = arith.addf %1031, %1034 : vector<4x128xf32>
    %1036 = vector.extract_strided_slice %1028 {offsets = [0, 2], sizes = [4, 1], strides = [1, 1]} : vector<4x9xf32> to vector<4x1xf32>
    %1037 = vector.broadcast %1036 : vector<4x1xf32> to vector<4x128xf32>
    %1038 = arith.mulf %1014, %1037 : vector<4x128xf32>
    %1039 = arith.addf %1035, %1038 : vector<4x128xf32>
    %1040 = vector.extract_strided_slice %1028 {offsets = [0, 3], sizes = [4, 1], strides = [1, 1]} : vector<4x9xf32> to vector<4x1xf32>
    %1041 = vector.broadcast %1040 : vector<4x1xf32> to vector<4x128xf32>
    %1042 = arith.mulf %1016, %1041 : vector<4x128xf32>
    %1043 = arith.addf %1039, %1042 : vector<4x128xf32>
    %1044 = vector.extract_strided_slice %1028 {offsets = [0, 4], sizes = [4, 1], strides = [1, 1]} : vector<4x9xf32> to vector<4x1xf32>
    %1045 = vector.broadcast %1044 : vector<4x1xf32> to vector<4x128xf32>
    %1046 = arith.mulf %1018, %1045 : vector<4x128xf32>
    %1047 = arith.addf %1043, %1046 : vector<4x128xf32>
    %1048 = vector.extract_strided_slice %1028 {offsets = [0, 5], sizes = [4, 1], strides = [1, 1]} : vector<4x9xf32> to vector<4x1xf32>
    %1049 = vector.broadcast %1048 : vector<4x1xf32> to vector<4x128xf32>
    %1050 = arith.mulf %1020, %1049 : vector<4x128xf32>
    %1051 = arith.addf %1047, %1050 : vector<4x128xf32>
    %1052 = vector.extract_strided_slice %1028 {offsets = [0, 6], sizes = [4, 1], strides = [1, 1]} : vector<4x9xf32> to vector<4x1xf32>
    %1053 = vector.broadcast %1052 : vector<4x1xf32> to vector<4x128xf32>
    %1054 = arith.mulf %1022, %1053 : vector<4x128xf32>
    %1055 = arith.addf %1051, %1054 : vector<4x128xf32>
    %1056 = vector.extract_strided_slice %1028 {offsets = [0, 7], sizes = [4, 1], strides = [1, 1]} : vector<4x9xf32> to vector<4x1xf32>
    %1057 = vector.broadcast %1056 : vector<4x1xf32> to vector<4x128xf32>
    %1058 = arith.mulf %1024, %1057 : vector<4x128xf32>
    %1059 = arith.addf %1055, %1058 : vector<4x128xf32>
    %1060 = vector.extract_strided_slice %1028 {offsets = [0, 8], sizes = [4, 1], strides = [1, 1]} : vector<4x9xf32> to vector<4x1xf32>
    %1061 = vector.broadcast %1060 : vector<4x1xf32> to vector<4x128xf32>
    %1062 = arith.mulf %1026, %1061 : vector<4x128xf32>
    %1063 = arith.addf %1059, %1062 : vector<4x128xf32>
    %c2_261 = arith.constant 2 : index
    %c0_262 = arith.constant 0 : index
    %c0_263 = arith.constant 0 : index
    %1064 = vector.load %arg9[%c2_261, %c0_262, %c0_263] : memref<5x4x4xf32, #tpu.memory_space<vmem>>, vector<1x4x4xf32>
    %1065 = vector.shape_cast %1064 : vector<1x4x4xf32> to vector<4x4xf32>
    %cst_264 = arith.constant dense<0.000000e+00> : vector<4x128xf32>
    %1066 = tpu.matmul %1065, %1063, %cst_264 {dimension_numbers = #tpu.dot_dimension_numbers<[1], [0], [0], [1], [0, 0, 1, 1], [], []>} : vector<4x4xf32>, vector<4x128xf32>, vector<4x128xf32> -> vector<4x128xf32>
    %cst_265 = arith.constant dense<0.000000e+00> : vector<4xf32>
    %1067 = vector.multi_reduction <add>, %1066, %cst_265 [1] : vector<4x128xf32> to vector<4xf32>
    %1068 = vector.shape_cast %1067 : vector<4xf32> to vector<4x1xf32>
    %cst_266 = arith.constant 7.812500e-03 : f32
    %1069 = vector.broadcast %cst_266 : f32 to vector<4x1xf32>
    %1070 = arith.mulf %1068, %1069 : vector<4x1xf32>
    %1071 = arith.mulf %1066, %1066 : vector<4x128xf32>
    %cst_267 = arith.constant dense<0.000000e+00> : vector<4xf32>
    %1072 = vector.multi_reduction <add>, %1071, %cst_267 [1] : vector<4x128xf32> to vector<4xf32>
    %1073 = vector.shape_cast %1072 : vector<4xf32> to vector<4x1xf32>
    %cst_268 = arith.constant 7.812500e-03 : f32
    %1074 = vector.broadcast %cst_268 : f32 to vector<4x1xf32>
    %1075 = arith.mulf %1073, %1074 : vector<4x1xf32>
    %1076 = arith.mulf %1070, %1070 : vector<4x1xf32>
    %1077 = arith.subf %1075, %1076 : vector<4x1xf32>
    %1078 = vector.broadcast %1070 : vector<4x1xf32> to vector<4x128xf32>
    %1079 = arith.subf %1066, %1078 : vector<4x128xf32>
    %cst_269 = arith.constant 9.99999974E-6 : f32
    %1080 = vector.broadcast %cst_269 : f32 to vector<4x1xf32>
    %1081 = arith.addf %1077, %1080 : vector<4x1xf32>
    %1082 = math.rsqrt %1081 : vector<4x1xf32>
    %1083 = vector.broadcast %1082 : vector<4x1xf32> to vector<4x128xf32>
    %1084 = arith.mulf %1079, %1083 : vector<4x128xf32>
    %1085 = vector.broadcast %907 : f32 to vector<4x128xf32>
    %1086 = arith.mulf %1085, %1084 : vector<4x128xf32>
    %1087 = arith.addf %915, %1086 : vector<4x128xf32>
    %1088 = vector.broadcast %899 : f32 to vector<12x128xf32>
    %1089 = arith.mulf %1088, %51 : vector<12x128xf32>
    %c3_270 = arith.constant 3 : index
    %1090 = memref.load %arg1[%c3_270] : memref<5xf32, #tpu.memory_space<smem>>
    %c3_271 = arith.constant 3 : index
    %c1_272 = arith.constant 1 : index
    %1091 = memref.load %arg0[%c3_271, %c1_272] : memref<5x5xf32, #tpu.memory_space<smem>>
    %1092 = arith.mulf %1090, %1091 : f32
    %c3_273 = arith.constant 3 : index
    %c2_274 = arith.constant 2 : index
    %1093 = memref.load %arg0[%c3_273, %c2_274] : memref<5x5xf32, #tpu.memory_space<smem>>
    %1094 = arith.mulf %1090, %1093 : f32
    %c3_275 = arith.constant 3 : index
    %c3_276 = arith.constant 3 : index
    %1095 = memref.load %arg0[%c3_275, %c3_276] : memref<5x5xf32, #tpu.memory_space<smem>>
    %1096 = arith.mulf %1090, %1095 : f32
    %c3_277 = arith.constant 3 : index
    %c4_278 = arith.constant 4 : index
    %1097 = memref.load %arg0[%c3_277, %c4_278] : memref<5x5xf32, #tpu.memory_space<smem>>
    %1098 = arith.mulf %1090, %1097 : f32
    %1099 = vector.broadcast %1092 : f32 to vector<4x128xf32>
    %1100 = arith.mulf %1099, %199 : vector<4x128xf32>
    %1101 = vector.broadcast %1094 : f32 to vector<4x128xf32>
    %1102 = arith.mulf %1101, %319 : vector<4x128xf32>
    %1103 = arith.addf %1100, %1102 : vector<4x128xf32>
    %1104 = vector.broadcast %1096 : f32 to vector<4x128xf32>
    %1105 = arith.mulf %1104, %347 : vector<4x128xf32>
    %1106 = arith.addf %1103, %1105 : vector<4x128xf32>
    %c3_279 = arith.constant 3 : index
    %c0_280 = arith.constant 0 : index
    %c0_281 = arith.constant 0 : index
    %1107 = vector.load %arg6[%c3_279, %c0_280, %c0_281] : memref<5x4x9xf32, #tpu.memory_space<vmem>>, vector<1x4x9xf32>
    %1108 = vector.shape_cast %1107 : vector<1x4x9xf32> to vector<4x9xf32>
    %1109 = vector.extract_strided_slice %1108 {offsets = [0, 0], sizes = [4, 1], strides = [1, 1]} : vector<4x9xf32> to vector<4x1xf32>
    %1110 = vector.broadcast %1109 : vector<4x1xf32> to vector<4x128xf32>
    %1111 = arith.mulf %237, %1110 : vector<4x128xf32>
    %1112 = vector.extract_strided_slice %1108 {offsets = [0, 1], sizes = [4, 1], strides = [1, 1]} : vector<4x9xf32> to vector<4x1xf32>
    %1113 = vector.broadcast %1112 : vector<4x1xf32> to vector<4x128xf32>
    %1114 = arith.mulf %239, %1113 : vector<4x128xf32>
    %1115 = arith.addf %1111, %1114 : vector<4x128xf32>
    %1116 = vector.extract_strided_slice %1108 {offsets = [0, 2], sizes = [4, 1], strides = [1, 1]} : vector<4x9xf32> to vector<4x1xf32>
    %1117 = vector.broadcast %1116 : vector<4x1xf32> to vector<4x128xf32>
    %1118 = arith.mulf %241, %1117 : vector<4x128xf32>
    %1119 = arith.addf %1115, %1118 : vector<4x128xf32>
    %1120 = vector.extract_strided_slice %1108 {offsets = [0, 3], sizes = [4, 1], strides = [1, 1]} : vector<4x9xf32> to vector<4x1xf32>
    %1121 = vector.broadcast %1120 : vector<4x1xf32> to vector<4x128xf32>
    %1122 = arith.mulf %243, %1121 : vector<4x128xf32>
    %1123 = arith.addf %1119, %1122 : vector<4x128xf32>
    %1124 = vector.extract_strided_slice %1108 {offsets = [0, 4], sizes = [4, 1], strides = [1, 1]} : vector<4x9xf32> to vector<4x1xf32>
    %1125 = vector.broadcast %1124 : vector<4x1xf32> to vector<4x128xf32>
    %1126 = arith.mulf %245, %1125 : vector<4x128xf32>
    %1127 = arith.addf %1123, %1126 : vector<4x128xf32>
    %1128 = vector.extract_strided_slice %1108 {offsets = [0, 5], sizes = [4, 1], strides = [1, 1]} : vector<4x9xf32> to vector<4x1xf32>
    %1129 = vector.broadcast %1128 : vector<4x1xf32> to vector<4x128xf32>
    %1130 = arith.mulf %247, %1129 : vector<4x128xf32>
    %1131 = arith.addf %1127, %1130 : vector<4x128xf32>
    %1132 = vector.extract_strided_slice %1108 {offsets = [0, 6], sizes = [4, 1], strides = [1, 1]} : vector<4x9xf32> to vector<4x1xf32>
    %1133 = vector.broadcast %1132 : vector<4x1xf32> to vector<4x128xf32>
    %1134 = arith.mulf %249, %1133 : vector<4x128xf32>
    %1135 = arith.addf %1131, %1134 : vector<4x128xf32>
    %1136 = vector.extract_strided_slice %1108 {offsets = [0, 7], sizes = [4, 1], strides = [1, 1]} : vector<4x9xf32> to vector<4x1xf32>
    %1137 = vector.broadcast %1136 : vector<4x1xf32> to vector<4x128xf32>
    %1138 = arith.mulf %251, %1137 : vector<4x128xf32>
    %1139 = arith.addf %1135, %1138 : vector<4x128xf32>
    %1140 = vector.extract_strided_slice %1108 {offsets = [0, 8], sizes = [4, 1], strides = [1, 1]} : vector<4x9xf32> to vector<4x1xf32>
    %1141 = vector.broadcast %1140 : vector<4x1xf32> to vector<4x128xf32>
    %1142 = arith.mulf %253, %1141 : vector<4x128xf32>
    %1143 = arith.addf %1139, %1142 : vector<4x128xf32>
    %c3_282 = arith.constant 3 : index
    %c0_283 = arith.constant 0 : index
    %c0_284 = arith.constant 0 : index
    %1144 = vector.load %arg7[%c3_282, %c0_283, %c0_284] : memref<5x4x4xf32, #tpu.memory_space<vmem>>, vector<1x4x4xf32>
    %1145 = vector.shape_cast %1144 : vector<1x4x4xf32> to vector<4x4xf32>
    %cst_285 = arith.constant dense<0.000000e+00> : vector<4x128xf32>
    %1146 = tpu.matmul %1145, %1143, %cst_285 {dimension_numbers = #tpu.dot_dimension_numbers<[1], [0], [0], [1], [0, 0, 1, 1], [], []>} : vector<4x4xf32>, vector<4x128xf32>, vector<4x128xf32> -> vector<4x128xf32>
    %cst_286 = arith.constant dense<0.000000e+00> : vector<4xf32>
    %1147 = vector.multi_reduction <add>, %1146, %cst_286 [1] : vector<4x128xf32> to vector<4xf32>
    %1148 = vector.shape_cast %1147 : vector<4xf32> to vector<4x1xf32>
    %cst_287 = arith.constant 7.812500e-03 : f32
    %1149 = vector.broadcast %cst_287 : f32 to vector<4x1xf32>
    %1150 = arith.mulf %1148, %1149 : vector<4x1xf32>
    %1151 = arith.mulf %1146, %1146 : vector<4x128xf32>
    %cst_288 = arith.constant dense<0.000000e+00> : vector<4xf32>
    %1152 = vector.multi_reduction <add>, %1151, %cst_288 [1] : vector<4x128xf32> to vector<4xf32>
    %1153 = vector.shape_cast %1152 : vector<4xf32> to vector<4x1xf32>
    %cst_289 = arith.constant 7.812500e-03 : f32
    %1154 = vector.broadcast %cst_289 : f32 to vector<4x1xf32>
    %1155 = arith.mulf %1153, %1154 : vector<4x1xf32>
    %1156 = arith.mulf %1150, %1150 : vector<4x1xf32>
    %1157 = arith.subf %1155, %1156 : vector<4x1xf32>
    %1158 = vector.broadcast %1150 : vector<4x1xf32> to vector<4x128xf32>
    %1159 = arith.subf %1146, %1158 : vector<4x128xf32>
    %cst_290 = arith.constant 9.99999974E-6 : f32
    %1160 = vector.broadcast %cst_290 : f32 to vector<4x1xf32>
    %1161 = arith.addf %1157, %1160 : vector<4x1xf32>
    %1162 = math.rsqrt %1161 : vector<4x1xf32>
    %1163 = vector.broadcast %1162 : vector<4x1xf32> to vector<4x128xf32>
    %1164 = arith.mulf %1159, %1163 : vector<4x128xf32>
    %c9_i32_291 = arith.constant 9 : i32
    %1165 = tpu.dynamic_rotate %1164 by %c9_i32_291 dim 1 : vector<4x128xf32>, i32 -> vector<4x128xf32>
    %1166 = vector.extract_strided_slice %0 {offsets = [0, 0], sizes = [1, 128], strides = [1, 1]} : vector<9x128xf32> to vector<1x128xf32>
    %1167 = vector.broadcast %1166 : vector<1x128xf32> to vector<4x128xf32>
    %1168 = arith.mulf %1165, %1167 : vector<4x128xf32>
    %c8_i32_292 = arith.constant 8 : i32
    %1169 = tpu.dynamic_rotate %1164 by %c8_i32_292 dim 1 : vector<4x128xf32>, i32 -> vector<4x128xf32>
    %1170 = vector.extract_strided_slice %0 {offsets = [1, 0], sizes = [1, 128], strides = [1, 1]} : vector<9x128xf32> to vector<1x128xf32>
    %1171 = vector.broadcast %1170 : vector<1x128xf32> to vector<4x128xf32>
    %1172 = arith.mulf %1169, %1171 : vector<4x128xf32>
    %c7_i32_293 = arith.constant 7 : i32
    %1173 = tpu.dynamic_rotate %1164 by %c7_i32_293 dim 1 : vector<4x128xf32>, i32 -> vector<4x128xf32>
    %1174 = vector.extract_strided_slice %0 {offsets = [2, 0], sizes = [1, 128], strides = [1, 1]} : vector<9x128xf32> to vector<1x128xf32>
    %1175 = vector.broadcast %1174 : vector<1x128xf32> to vector<4x128xf32>
    %1176 = arith.mulf %1173, %1175 : vector<4x128xf32>
    %c1_i32_294 = arith.constant 1 : i32
    %1177 = tpu.dynamic_rotate %1164 by %c1_i32_294 dim 1 : vector<4x128xf32>, i32 -> vector<4x128xf32>
    %1178 = vector.extract_strided_slice %0 {offsets = [3, 0], sizes = [1, 128], strides = [1, 1]} : vector<9x128xf32> to vector<1x128xf32>
    %1179 = vector.broadcast %1178 : vector<1x128xf32> to vector<4x128xf32>
    %1180 = arith.mulf %1177, %1179 : vector<4x128xf32>
    %1181 = vector.extract_strided_slice %0 {offsets = [4, 0], sizes = [1, 128], strides = [1, 1]} : vector<9x128xf32> to vector<1x128xf32>
    %1182 = vector.broadcast %1181 : vector<1x128xf32> to vector<4x128xf32>
    %1183 = arith.mulf %1164, %1182 : vector<4x128xf32>
    %c127_i32_295 = arith.constant 127 : i32
    %1184 = tpu.dynamic_rotate %1164 by %c127_i32_295 dim 1 : vector<4x128xf32>, i32 -> vector<4x128xf32>
    %1185 = vector.extract_strided_slice %0 {offsets = [5, 0], sizes = [1, 128], strides = [1, 1]} : vector<9x128xf32> to vector<1x128xf32>
    %1186 = vector.broadcast %1185 : vector<1x128xf32> to vector<4x128xf32>
    %1187 = arith.mulf %1184, %1186 : vector<4x128xf32>
    %c121_i32_296 = arith.constant 121 : i32
    %1188 = tpu.dynamic_rotate %1164 by %c121_i32_296 dim 1 : vector<4x128xf32>, i32 -> vector<4x128xf32>
    %1189 = vector.extract_strided_slice %0 {offsets = [6, 0], sizes = [1, 128], strides = [1, 1]} : vector<9x128xf32> to vector<1x128xf32>
    %1190 = vector.broadcast %1189 : vector<1x128xf32> to vector<4x128xf32>
    %1191 = arith.mulf %1188, %1190 : vector<4x128xf32>
    %c120_i32_297 = arith.constant 120 : i32
    %1192 = tpu.dynamic_rotate %1164 by %c120_i32_297 dim 1 : vector<4x128xf32>, i32 -> vector<4x128xf32>
    %1193 = vector.extract_strided_slice %0 {offsets = [7, 0], sizes = [1, 128], strides = [1, 1]} : vector<9x128xf32> to vector<1x128xf32>
    %1194 = vector.broadcast %1193 : vector<1x128xf32> to vector<4x128xf32>
    %1195 = arith.mulf %1192, %1194 : vector<4x128xf32>
    %c119_i32_298 = arith.constant 119 : i32
    %1196 = tpu.dynamic_rotate %1164 by %c119_i32_298 dim 1 : vector<4x128xf32>, i32 -> vector<4x128xf32>
    %1197 = vector.extract_strided_slice %0 {offsets = [8, 0], sizes = [1, 128], strides = [1, 1]} : vector<9x128xf32> to vector<1x128xf32>
    %1198 = vector.broadcast %1197 : vector<1x128xf32> to vector<4x128xf32>
    %1199 = arith.mulf %1196, %1198 : vector<4x128xf32>
    %cst_299 = arith.constant 0.000000e+00 : f32
    %1200 = vector.broadcast %cst_299 : f32 to vector<4x128xf32>
    %1201 = arith.maximumf %1168, %1200 : vector<4x128xf32>
    %cst_300 = arith.constant 0.000000e+00 : f32
    %1202 = vector.broadcast %cst_300 : f32 to vector<4x128xf32>
    %1203 = arith.maximumf %1172, %1202 : vector<4x128xf32>
    %cst_301 = arith.constant 0.000000e+00 : f32
    %1204 = vector.broadcast %cst_301 : f32 to vector<4x128xf32>
    %1205 = arith.maximumf %1176, %1204 : vector<4x128xf32>
    %cst_302 = arith.constant 0.000000e+00 : f32
    %1206 = vector.broadcast %cst_302 : f32 to vector<4x128xf32>
    %1207 = arith.maximumf %1180, %1206 : vector<4x128xf32>
    %cst_303 = arith.constant 0.000000e+00 : f32
    %1208 = vector.broadcast %cst_303 : f32 to vector<4x128xf32>
    %1209 = arith.maximumf %1183, %1208 : vector<4x128xf32>
    %cst_304 = arith.constant 0.000000e+00 : f32
    %1210 = vector.broadcast %cst_304 : f32 to vector<4x128xf32>
    %1211 = arith.maximumf %1187, %1210 : vector<4x128xf32>
    %cst_305 = arith.constant 0.000000e+00 : f32
    %1212 = vector.broadcast %cst_305 : f32 to vector<4x128xf32>
    %1213 = arith.maximumf %1191, %1212 : vector<4x128xf32>
    %cst_306 = arith.constant 0.000000e+00 : f32
    %1214 = vector.broadcast %cst_306 : f32 to vector<4x128xf32>
    %1215 = arith.maximumf %1195, %1214 : vector<4x128xf32>
    %cst_307 = arith.constant 0.000000e+00 : f32
    %1216 = vector.broadcast %cst_307 : f32 to vector<4x128xf32>
    %1217 = arith.maximumf %1199, %1216 : vector<4x128xf32>
    %c3_308 = arith.constant 3 : index
    %c0_309 = arith.constant 0 : index
    %c0_310 = arith.constant 0 : index
    %1218 = vector.load %arg8[%c3_308, %c0_309, %c0_310] : memref<5x4x9xf32, #tpu.memory_space<vmem>>, vector<1x4x9xf32>
    %1219 = vector.shape_cast %1218 : vector<1x4x9xf32> to vector<4x9xf32>
    %1220 = vector.extract_strided_slice %1219 {offsets = [0, 0], sizes = [4, 1], strides = [1, 1]} : vector<4x9xf32> to vector<4x1xf32>
    %1221 = vector.broadcast %1220 : vector<4x1xf32> to vector<4x128xf32>
    %1222 = arith.mulf %1201, %1221 : vector<4x128xf32>
    %1223 = vector.extract_strided_slice %1219 {offsets = [0, 1], sizes = [4, 1], strides = [1, 1]} : vector<4x9xf32> to vector<4x1xf32>
    %1224 = vector.broadcast %1223 : vector<4x1xf32> to vector<4x128xf32>
    %1225 = arith.mulf %1203, %1224 : vector<4x128xf32>
    %1226 = arith.addf %1222, %1225 : vector<4x128xf32>
    %1227 = vector.extract_strided_slice %1219 {offsets = [0, 2], sizes = [4, 1], strides = [1, 1]} : vector<4x9xf32> to vector<4x1xf32>
    %1228 = vector.broadcast %1227 : vector<4x1xf32> to vector<4x128xf32>
    %1229 = arith.mulf %1205, %1228 : vector<4x128xf32>
    %1230 = arith.addf %1226, %1229 : vector<4x128xf32>
    %1231 = vector.extract_strided_slice %1219 {offsets = [0, 3], sizes = [4, 1], strides = [1, 1]} : vector<4x9xf32> to vector<4x1xf32>
    %1232 = vector.broadcast %1231 : vector<4x1xf32> to vector<4x128xf32>
    %1233 = arith.mulf %1207, %1232 : vector<4x128xf32>
    %1234 = arith.addf %1230, %1233 : vector<4x128xf32>
    %1235 = vector.extract_strided_slice %1219 {offsets = [0, 4], sizes = [4, 1], strides = [1, 1]} : vector<4x9xf32> to vector<4x1xf32>
    %1236 = vector.broadcast %1235 : vector<4x1xf32> to vector<4x128xf32>
    %1237 = arith.mulf %1209, %1236 : vector<4x128xf32>
    %1238 = arith.addf %1234, %1237 : vector<4x128xf32>
    %1239 = vector.extract_strided_slice %1219 {offsets = [0, 5], sizes = [4, 1], strides = [1, 1]} : vector<4x9xf32> to vector<4x1xf32>
    %1240 = vector.broadcast %1239 : vector<4x1xf32> to vector<4x128xf32>
    %1241 = arith.mulf %1211, %1240 : vector<4x128xf32>
    %1242 = arith.addf %1238, %1241 : vector<4x128xf32>
    %1243 = vector.extract_strided_slice %1219 {offsets = [0, 6], sizes = [4, 1], strides = [1, 1]} : vector<4x9xf32> to vector<4x1xf32>
    %1244 = vector.broadcast %1243 : vector<4x1xf32> to vector<4x128xf32>
    %1245 = arith.mulf %1213, %1244 : vector<4x128xf32>
    %1246 = arith.addf %1242, %1245 : vector<4x128xf32>
    %1247 = vector.extract_strided_slice %1219 {offsets = [0, 7], sizes = [4, 1], strides = [1, 1]} : vector<4x9xf32> to vector<4x1xf32>
    %1248 = vector.broadcast %1247 : vector<4x1xf32> to vector<4x128xf32>
    %1249 = arith.mulf %1215, %1248 : vector<4x128xf32>
    %1250 = arith.addf %1246, %1249 : vector<4x128xf32>
    %1251 = vector.extract_strided_slice %1219 {offsets = [0, 8], sizes = [4, 1], strides = [1, 1]} : vector<4x9xf32> to vector<4x1xf32>
    %1252 = vector.broadcast %1251 : vector<4x1xf32> to vector<4x128xf32>
    %1253 = arith.mulf %1217, %1252 : vector<4x128xf32>
    %1254 = arith.addf %1250, %1253 : vector<4x128xf32>
    %c3_311 = arith.constant 3 : index
    %c0_312 = arith.constant 0 : index
    %c0_313 = arith.constant 0 : index
    %1255 = vector.load %arg9[%c3_311, %c0_312, %c0_313] : memref<5x4x4xf32, #tpu.memory_space<vmem>>, vector<1x4x4xf32>
    %1256 = vector.shape_cast %1255 : vector<1x4x4xf32> to vector<4x4xf32>
    %cst_314 = arith.constant dense<0.000000e+00> : vector<4x128xf32>
    %1257 = tpu.matmul %1256, %1254, %cst_314 {dimension_numbers = #tpu.dot_dimension_numbers<[1], [0], [0], [1], [0, 0, 1, 1], [], []>} : vector<4x4xf32>, vector<4x128xf32>, vector<4x128xf32> -> vector<4x128xf32>
    %cst_315 = arith.constant dense<0.000000e+00> : vector<4xf32>
    %1258 = vector.multi_reduction <add>, %1257, %cst_315 [1] : vector<4x128xf32> to vector<4xf32>
    %1259 = vector.shape_cast %1258 : vector<4xf32> to vector<4x1xf32>
    %cst_316 = arith.constant 7.812500e-03 : f32
    %1260 = vector.broadcast %cst_316 : f32 to vector<4x1xf32>
    %1261 = arith.mulf %1259, %1260 : vector<4x1xf32>
    %1262 = arith.mulf %1257, %1257 : vector<4x128xf32>
    %cst_317 = arith.constant dense<0.000000e+00> : vector<4xf32>
    %1263 = vector.multi_reduction <add>, %1262, %cst_317 [1] : vector<4x128xf32> to vector<4xf32>
    %1264 = vector.shape_cast %1263 : vector<4xf32> to vector<4x1xf32>
    %cst_318 = arith.constant 7.812500e-03 : f32
    %1265 = vector.broadcast %cst_318 : f32 to vector<4x1xf32>
    %1266 = arith.mulf %1264, %1265 : vector<4x1xf32>
    %1267 = arith.mulf %1261, %1261 : vector<4x1xf32>
    %1268 = arith.subf %1266, %1267 : vector<4x1xf32>
    %1269 = vector.broadcast %1261 : vector<4x1xf32> to vector<4x128xf32>
    %1270 = arith.subf %1257, %1269 : vector<4x128xf32>
    %cst_319 = arith.constant 9.99999974E-6 : f32
    %1271 = vector.broadcast %cst_319 : f32 to vector<4x1xf32>
    %1272 = arith.addf %1268, %1271 : vector<4x1xf32>
    %1273 = math.rsqrt %1272 : vector<4x1xf32>
    %1274 = vector.broadcast %1273 : vector<4x1xf32> to vector<4x128xf32>
    %1275 = arith.mulf %1270, %1274 : vector<4x128xf32>
    %1276 = vector.broadcast %1098 : f32 to vector<4x128xf32>
    %1277 = arith.mulf %1276, %1275 : vector<4x128xf32>
    %1278 = arith.addf %1106, %1277 : vector<4x128xf32>
    %1279 = vector.broadcast %1090 : f32 to vector<12x128xf32>
    %1280 = arith.mulf %1279, %200 : vector<12x128xf32>
    %1281 = arith.addf %1087, %1278 : vector<4x128xf32>
    %1282 = arith.addf %1089, %1280 : vector<12x128xf32>
    %c4_320 = arith.constant 4 : index
    %1283 = memref.load %arg1[%c4_320] : memref<5xf32, #tpu.memory_space<smem>>
    %c4_321 = arith.constant 4 : index
    %c1_322 = arith.constant 1 : index
    %1284 = memref.load %arg0[%c4_321, %c1_322] : memref<5x5xf32, #tpu.memory_space<smem>>
    %1285 = arith.mulf %1283, %1284 : f32
    %c4_323 = arith.constant 4 : index
    %c2_324 = arith.constant 2 : index
    %1286 = memref.load %arg0[%c4_323, %c2_324] : memref<5x5xf32, #tpu.memory_space<smem>>
    %1287 = arith.mulf %1283, %1286 : f32
    %c4_325 = arith.constant 4 : index
    %c3_326 = arith.constant 3 : index
    %1288 = memref.load %arg0[%c4_325, %c3_326] : memref<5x5xf32, #tpu.memory_space<smem>>
    %1289 = arith.mulf %1283, %1288 : f32
    %c4_327 = arith.constant 4 : index
    %c4_328 = arith.constant 4 : index
    %1290 = memref.load %arg0[%c4_327, %c4_328] : memref<5x5xf32, #tpu.memory_space<smem>>
    %1291 = arith.mulf %1283, %1290 : f32
    %1292 = vector.broadcast %1285 : f32 to vector<4x128xf32>
    %1293 = arith.mulf %1292, %750 : vector<4x128xf32>
    %1294 = vector.broadcast %1287 : f32 to vector<4x128xf32>
    %1295 = arith.mulf %1294, %870 : vector<4x128xf32>
    %1296 = arith.addf %1293, %1295 : vector<4x128xf32>
    %1297 = vector.broadcast %1289 : f32 to vector<4x128xf32>
    %1298 = arith.mulf %1297, %898 : vector<4x128xf32>
    %1299 = arith.addf %1296, %1298 : vector<4x128xf32>
    %c4_329 = arith.constant 4 : index
    %c0_330 = arith.constant 0 : index
    %c0_331 = arith.constant 0 : index
    %1300 = vector.load %arg6[%c4_329, %c0_330, %c0_331] : memref<5x4x9xf32, #tpu.memory_space<vmem>>, vector<1x4x9xf32>
    %1301 = vector.shape_cast %1300 : vector<1x4x9xf32> to vector<4x9xf32>
    %1302 = vector.extract_strided_slice %1301 {offsets = [0, 0], sizes = [4, 1], strides = [1, 1]} : vector<4x9xf32> to vector<4x1xf32>
    %1303 = vector.broadcast %1302 : vector<4x1xf32> to vector<4x128xf32>
    %1304 = arith.mulf %788, %1303 : vector<4x128xf32>
    %1305 = vector.extract_strided_slice %1301 {offsets = [0, 1], sizes = [4, 1], strides = [1, 1]} : vector<4x9xf32> to vector<4x1xf32>
    %1306 = vector.broadcast %1305 : vector<4x1xf32> to vector<4x128xf32>
    %1307 = arith.mulf %790, %1306 : vector<4x128xf32>
    %1308 = arith.addf %1304, %1307 : vector<4x128xf32>
    %1309 = vector.extract_strided_slice %1301 {offsets = [0, 2], sizes = [4, 1], strides = [1, 1]} : vector<4x9xf32> to vector<4x1xf32>
    %1310 = vector.broadcast %1309 : vector<4x1xf32> to vector<4x128xf32>
    %1311 = arith.mulf %792, %1310 : vector<4x128xf32>
    %1312 = arith.addf %1308, %1311 : vector<4x128xf32>
    %1313 = vector.extract_strided_slice %1301 {offsets = [0, 3], sizes = [4, 1], strides = [1, 1]} : vector<4x9xf32> to vector<4x1xf32>
    %1314 = vector.broadcast %1313 : vector<4x1xf32> to vector<4x128xf32>
    %1315 = arith.mulf %794, %1314 : vector<4x128xf32>
    %1316 = arith.addf %1312, %1315 : vector<4x128xf32>
    %1317 = vector.extract_strided_slice %1301 {offsets = [0, 4], sizes = [4, 1], strides = [1, 1]} : vector<4x9xf32> to vector<4x1xf32>
    %1318 = vector.broadcast %1317 : vector<4x1xf32> to vector<4x128xf32>
    %1319 = arith.mulf %796, %1318 : vector<4x128xf32>
    %1320 = arith.addf %1316, %1319 : vector<4x128xf32>
    %1321 = vector.extract_strided_slice %1301 {offsets = [0, 5], sizes = [4, 1], strides = [1, 1]} : vector<4x9xf32> to vector<4x1xf32>
    %1322 = vector.broadcast %1321 : vector<4x1xf32> to vector<4x128xf32>
    %1323 = arith.mulf %798, %1322 : vector<4x128xf32>
    %1324 = arith.addf %1320, %1323 : vector<4x128xf32>
    %1325 = vector.extract_strided_slice %1301 {offsets = [0, 6], sizes = [4, 1], strides = [1, 1]} : vector<4x9xf32> to vector<4x1xf32>
    %1326 = vector.broadcast %1325 : vector<4x1xf32> to vector<4x128xf32>
    %1327 = arith.mulf %800, %1326 : vector<4x128xf32>
    %1328 = arith.addf %1324, %1327 : vector<4x128xf32>
    %1329 = vector.extract_strided_slice %1301 {offsets = [0, 7], sizes = [4, 1], strides = [1, 1]} : vector<4x9xf32> to vector<4x1xf32>
    %1330 = vector.broadcast %1329 : vector<4x1xf32> to vector<4x128xf32>
    %1331 = arith.mulf %802, %1330 : vector<4x128xf32>
    %1332 = arith.addf %1328, %1331 : vector<4x128xf32>
    %1333 = vector.extract_strided_slice %1301 {offsets = [0, 8], sizes = [4, 1], strides = [1, 1]} : vector<4x9xf32> to vector<4x1xf32>
    %1334 = vector.broadcast %1333 : vector<4x1xf32> to vector<4x128xf32>
    %1335 = arith.mulf %804, %1334 : vector<4x128xf32>
    %1336 = arith.addf %1332, %1335 : vector<4x128xf32>
    %c4_332 = arith.constant 4 : index
    %c0_333 = arith.constant 0 : index
    %c0_334 = arith.constant 0 : index
    %1337 = vector.load %arg7[%c4_332, %c0_333, %c0_334] : memref<5x4x4xf32, #tpu.memory_space<vmem>>, vector<1x4x4xf32>
    %1338 = vector.shape_cast %1337 : vector<1x4x4xf32> to vector<4x4xf32>
    %cst_335 = arith.constant dense<0.000000e+00> : vector<4x128xf32>
    %1339 = tpu.matmul %1338, %1336, %cst_335 {dimension_numbers = #tpu.dot_dimension_numbers<[1], [0], [0], [1], [0, 0, 1, 1], [], []>} : vector<4x4xf32>, vector<4x128xf32>, vector<4x128xf32> -> vector<4x128xf32>
    %cst_336 = arith.constant dense<0.000000e+00> : vector<4xf32>
    %1340 = vector.multi_reduction <add>, %1339, %cst_336 [1] : vector<4x128xf32> to vector<4xf32>
    %1341 = vector.shape_cast %1340 : vector<4xf32> to vector<4x1xf32>
    %cst_337 = arith.constant 7.812500e-03 : f32
    %1342 = vector.broadcast %cst_337 : f32 to vector<4x1xf32>
    %1343 = arith.mulf %1341, %1342 : vector<4x1xf32>
    %1344 = arith.mulf %1339, %1339 : vector<4x128xf32>
    %cst_338 = arith.constant dense<0.000000e+00> : vector<4xf32>
    %1345 = vector.multi_reduction <add>, %1344, %cst_338 [1] : vector<4x128xf32> to vector<4xf32>
    %1346 = vector.shape_cast %1345 : vector<4xf32> to vector<4x1xf32>
    %cst_339 = arith.constant 7.812500e-03 : f32
    %1347 = vector.broadcast %cst_339 : f32 to vector<4x1xf32>
    %1348 = arith.mulf %1346, %1347 : vector<4x1xf32>
    %1349 = arith.mulf %1343, %1343 : vector<4x1xf32>
    %1350 = arith.subf %1348, %1349 : vector<4x1xf32>
    %1351 = vector.broadcast %1343 : vector<4x1xf32> to vector<4x128xf32>
    %1352 = arith.subf %1339, %1351 : vector<4x128xf32>
    %cst_340 = arith.constant 9.99999974E-6 : f32
    %1353 = vector.broadcast %cst_340 : f32 to vector<4x1xf32>
    %1354 = arith.addf %1350, %1353 : vector<4x1xf32>
    %1355 = math.rsqrt %1354 : vector<4x1xf32>
    %1356 = vector.broadcast %1355 : vector<4x1xf32> to vector<4x128xf32>
    %1357 = arith.mulf %1352, %1356 : vector<4x128xf32>
    %c9_i32_341 = arith.constant 9 : i32
    %1358 = tpu.dynamic_rotate %1357 by %c9_i32_341 dim 1 : vector<4x128xf32>, i32 -> vector<4x128xf32>
    %1359 = vector.extract_strided_slice %0 {offsets = [0, 0], sizes = [1, 128], strides = [1, 1]} : vector<9x128xf32> to vector<1x128xf32>
    %1360 = vector.broadcast %1359 : vector<1x128xf32> to vector<4x128xf32>
    %1361 = arith.mulf %1358, %1360 : vector<4x128xf32>
    %c8_i32_342 = arith.constant 8 : i32
    %1362 = tpu.dynamic_rotate %1357 by %c8_i32_342 dim 1 : vector<4x128xf32>, i32 -> vector<4x128xf32>
    %1363 = vector.extract_strided_slice %0 {offsets = [1, 0], sizes = [1, 128], strides = [1, 1]} : vector<9x128xf32> to vector<1x128xf32>
    %1364 = vector.broadcast %1363 : vector<1x128xf32> to vector<4x128xf32>
    %1365 = arith.mulf %1362, %1364 : vector<4x128xf32>
    %c7_i32_343 = arith.constant 7 : i32
    %1366 = tpu.dynamic_rotate %1357 by %c7_i32_343 dim 1 : vector<4x128xf32>, i32 -> vector<4x128xf32>
    %1367 = vector.extract_strided_slice %0 {offsets = [2, 0], sizes = [1, 128], strides = [1, 1]} : vector<9x128xf32> to vector<1x128xf32>
    %1368 = vector.broadcast %1367 : vector<1x128xf32> to vector<4x128xf32>
    %1369 = arith.mulf %1366, %1368 : vector<4x128xf32>
    %c1_i32_344 = arith.constant 1 : i32
    %1370 = tpu.dynamic_rotate %1357 by %c1_i32_344 dim 1 : vector<4x128xf32>, i32 -> vector<4x128xf32>
    %1371 = vector.extract_strided_slice %0 {offsets = [3, 0], sizes = [1, 128], strides = [1, 1]} : vector<9x128xf32> to vector<1x128xf32>
    %1372 = vector.broadcast %1371 : vector<1x128xf32> to vector<4x128xf32>
    %1373 = arith.mulf %1370, %1372 : vector<4x128xf32>
    %1374 = vector.extract_strided_slice %0 {offsets = [4, 0], sizes = [1, 128], strides = [1, 1]} : vector<9x128xf32> to vector<1x128xf32>
    %1375 = vector.broadcast %1374 : vector<1x128xf32> to vector<4x128xf32>
    %1376 = arith.mulf %1357, %1375 : vector<4x128xf32>
    %c127_i32_345 = arith.constant 127 : i32
    %1377 = tpu.dynamic_rotate %1357 by %c127_i32_345 dim 1 : vector<4x128xf32>, i32 -> vector<4x128xf32>
    %1378 = vector.extract_strided_slice %0 {offsets = [5, 0], sizes = [1, 128], strides = [1, 1]} : vector<9x128xf32> to vector<1x128xf32>
    %1379 = vector.broadcast %1378 : vector<1x128xf32> to vector<4x128xf32>
    %1380 = arith.mulf %1377, %1379 : vector<4x128xf32>
    %c121_i32_346 = arith.constant 121 : i32
    %1381 = tpu.dynamic_rotate %1357 by %c121_i32_346 dim 1 : vector<4x128xf32>, i32 -> vector<4x128xf32>
    %1382 = vector.extract_strided_slice %0 {offsets = [6, 0], sizes = [1, 128], strides = [1, 1]} : vector<9x128xf32> to vector<1x128xf32>
    %1383 = vector.broadcast %1382 : vector<1x128xf32> to vector<4x128xf32>
    %1384 = arith.mulf %1381, %1383 : vector<4x128xf32>
    %c120_i32_347 = arith.constant 120 : i32
    %1385 = tpu.dynamic_rotate %1357 by %c120_i32_347 dim 1 : vector<4x128xf32>, i32 -> vector<4x128xf32>
    %1386 = vector.extract_strided_slice %0 {offsets = [7, 0], sizes = [1, 128], strides = [1, 1]} : vector<9x128xf32> to vector<1x128xf32>
    %1387 = vector.broadcast %1386 : vector<1x128xf32> to vector<4x128xf32>
    %1388 = arith.mulf %1385, %1387 : vector<4x128xf32>
    %c119_i32_348 = arith.constant 119 : i32
    %1389 = tpu.dynamic_rotate %1357 by %c119_i32_348 dim 1 : vector<4x128xf32>, i32 -> vector<4x128xf32>
    %1390 = vector.extract_strided_slice %0 {offsets = [8, 0], sizes = [1, 128], strides = [1, 1]} : vector<9x128xf32> to vector<1x128xf32>
    %1391 = vector.broadcast %1390 : vector<1x128xf32> to vector<4x128xf32>
    %1392 = arith.mulf %1389, %1391 : vector<4x128xf32>
    %cst_349 = arith.constant 0.000000e+00 : f32
    %1393 = vector.broadcast %cst_349 : f32 to vector<4x128xf32>
    %1394 = arith.maximumf %1361, %1393 : vector<4x128xf32>
    %cst_350 = arith.constant 0.000000e+00 : f32
    %1395 = vector.broadcast %cst_350 : f32 to vector<4x128xf32>
    %1396 = arith.maximumf %1365, %1395 : vector<4x128xf32>
    %cst_351 = arith.constant 0.000000e+00 : f32
    %1397 = vector.broadcast %cst_351 : f32 to vector<4x128xf32>
    %1398 = arith.maximumf %1369, %1397 : vector<4x128xf32>
    %cst_352 = arith.constant 0.000000e+00 : f32
    %1399 = vector.broadcast %cst_352 : f32 to vector<4x128xf32>
    %1400 = arith.maximumf %1373, %1399 : vector<4x128xf32>
    %cst_353 = arith.constant 0.000000e+00 : f32
    %1401 = vector.broadcast %cst_353 : f32 to vector<4x128xf32>
    %1402 = arith.maximumf %1376, %1401 : vector<4x128xf32>
    %cst_354 = arith.constant 0.000000e+00 : f32
    %1403 = vector.broadcast %cst_354 : f32 to vector<4x128xf32>
    %1404 = arith.maximumf %1380, %1403 : vector<4x128xf32>
    %cst_355 = arith.constant 0.000000e+00 : f32
    %1405 = vector.broadcast %cst_355 : f32 to vector<4x128xf32>
    %1406 = arith.maximumf %1384, %1405 : vector<4x128xf32>
    %cst_356 = arith.constant 0.000000e+00 : f32
    %1407 = vector.broadcast %cst_356 : f32 to vector<4x128xf32>
    %1408 = arith.maximumf %1388, %1407 : vector<4x128xf32>
    %cst_357 = arith.constant 0.000000e+00 : f32
    %1409 = vector.broadcast %cst_357 : f32 to vector<4x128xf32>
    %1410 = arith.maximumf %1392, %1409 : vector<4x128xf32>
    %c4_358 = arith.constant 4 : index
    %c0_359 = arith.constant 0 : index
    %c0_360 = arith.constant 0 : index
    %1411 = vector.load %arg8[%c4_358, %c0_359, %c0_360] : memref<5x4x9xf32, #tpu.memory_space<vmem>>, vector<1x4x9xf32>
    %1412 = vector.shape_cast %1411 : vector<1x4x9xf32> to vector<4x9xf32>
    %1413 = vector.extract_strided_slice %1412 {offsets = [0, 0], sizes = [4, 1], strides = [1, 1]} : vector<4x9xf32> to vector<4x1xf32>
    %1414 = vector.broadcast %1413 : vector<4x1xf32> to vector<4x128xf32>
    %1415 = arith.mulf %1394, %1414 : vector<4x128xf32>
    %1416 = vector.extract_strided_slice %1412 {offsets = [0, 1], sizes = [4, 1], strides = [1, 1]} : vector<4x9xf32> to vector<4x1xf32>
    %1417 = vector.broadcast %1416 : vector<4x1xf32> to vector<4x128xf32>
    %1418 = arith.mulf %1396, %1417 : vector<4x128xf32>
    %1419 = arith.addf %1415, %1418 : vector<4x128xf32>
    %1420 = vector.extract_strided_slice %1412 {offsets = [0, 2], sizes = [4, 1], strides = [1, 1]} : vector<4x9xf32> to vector<4x1xf32>
    %1421 = vector.broadcast %1420 : vector<4x1xf32> to vector<4x128xf32>
    %1422 = arith.mulf %1398, %1421 : vector<4x128xf32>
    %1423 = arith.addf %1419, %1422 : vector<4x128xf32>
    %1424 = vector.extract_strided_slice %1412 {offsets = [0, 3], sizes = [4, 1], strides = [1, 1]} : vector<4x9xf32> to vector<4x1xf32>
    %1425 = vector.broadcast %1424 : vector<4x1xf32> to vector<4x128xf32>
    %1426 = arith.mulf %1400, %1425 : vector<4x128xf32>
    %1427 = arith.addf %1423, %1426 : vector<4x128xf32>
    %1428 = vector.extract_strided_slice %1412 {offsets = [0, 4], sizes = [4, 1], strides = [1, 1]} : vector<4x9xf32> to vector<4x1xf32>
    %1429 = vector.broadcast %1428 : vector<4x1xf32> to vector<4x128xf32>
    %1430 = arith.mulf %1402, %1429 : vector<4x128xf32>
    %1431 = arith.addf %1427, %1430 : vector<4x128xf32>
    %1432 = vector.extract_strided_slice %1412 {offsets = [0, 5], sizes = [4, 1], strides = [1, 1]} : vector<4x9xf32> to vector<4x1xf32>
    %1433 = vector.broadcast %1432 : vector<4x1xf32> to vector<4x128xf32>
    %1434 = arith.mulf %1404, %1433 : vector<4x128xf32>
    %1435 = arith.addf %1431, %1434 : vector<4x128xf32>
    %1436 = vector.extract_strided_slice %1412 {offsets = [0, 6], sizes = [4, 1], strides = [1, 1]} : vector<4x9xf32> to vector<4x1xf32>
    %1437 = vector.broadcast %1436 : vector<4x1xf32> to vector<4x128xf32>
    %1438 = arith.mulf %1406, %1437 : vector<4x128xf32>
    %1439 = arith.addf %1435, %1438 : vector<4x128xf32>
    %1440 = vector.extract_strided_slice %1412 {offsets = [0, 7], sizes = [4, 1], strides = [1, 1]} : vector<4x9xf32> to vector<4x1xf32>
    %1441 = vector.broadcast %1440 : vector<4x1xf32> to vector<4x128xf32>
    %1442 = arith.mulf %1408, %1441 : vector<4x128xf32>
    %1443 = arith.addf %1439, %1442 : vector<4x128xf32>
    %1444 = vector.extract_strided_slice %1412 {offsets = [0, 8], sizes = [4, 1], strides = [1, 1]} : vector<4x9xf32> to vector<4x1xf32>
    %1445 = vector.broadcast %1444 : vector<4x1xf32> to vector<4x128xf32>
    %1446 = arith.mulf %1410, %1445 : vector<4x128xf32>
    %1447 = arith.addf %1443, %1446 : vector<4x128xf32>
    %c4_361 = arith.constant 4 : index
    %c0_362 = arith.constant 0 : index
    %c0_363 = arith.constant 0 : index
    %1448 = vector.load %arg9[%c4_361, %c0_362, %c0_363] : memref<5x4x4xf32, #tpu.memory_space<vmem>>, vector<1x4x4xf32>
    %1449 = vector.shape_cast %1448 : vector<1x4x4xf32> to vector<4x4xf32>
    %cst_364 = arith.constant dense<0.000000e+00> : vector<4x128xf32>
    %1450 = tpu.matmul %1449, %1447, %cst_364 {dimension_numbers = #tpu.dot_dimension_numbers<[1], [0], [0], [1], [0, 0, 1, 1], [], []>} : vector<4x4xf32>, vector<4x128xf32>, vector<4x128xf32> -> vector<4x128xf32>
    %cst_365 = arith.constant dense<0.000000e+00> : vector<4xf32>
    %1451 = vector.multi_reduction <add>, %1450, %cst_365 [1] : vector<4x128xf32> to vector<4xf32>
    %1452 = vector.shape_cast %1451 : vector<4xf32> to vector<4x1xf32>
    %cst_366 = arith.constant 7.812500e-03 : f32
    %1453 = vector.broadcast %cst_366 : f32 to vector<4x1xf32>
    %1454 = arith.mulf %1452, %1453 : vector<4x1xf32>
    %1455 = arith.mulf %1450, %1450 : vector<4x128xf32>
    %cst_367 = arith.constant dense<0.000000e+00> : vector<4xf32>
    %1456 = vector.multi_reduction <add>, %1455, %cst_367 [1] : vector<4x128xf32> to vector<4xf32>
    %1457 = vector.shape_cast %1456 : vector<4xf32> to vector<4x1xf32>
    %cst_368 = arith.constant 7.812500e-03 : f32
    %1458 = vector.broadcast %cst_368 : f32 to vector<4x1xf32>
    %1459 = arith.mulf %1457, %1458 : vector<4x1xf32>
    %1460 = arith.mulf %1454, %1454 : vector<4x1xf32>
    %1461 = arith.subf %1459, %1460 : vector<4x1xf32>
    %1462 = vector.broadcast %1454 : vector<4x1xf32> to vector<4x128xf32>
    %1463 = arith.subf %1450, %1462 : vector<4x128xf32>
    %cst_369 = arith.constant 9.99999974E-6 : f32
    %1464 = vector.broadcast %cst_369 : f32 to vector<4x1xf32>
    %1465 = arith.addf %1461, %1464 : vector<4x1xf32>
    %1466 = math.rsqrt %1465 : vector<4x1xf32>
    %1467 = vector.broadcast %1466 : vector<4x1xf32> to vector<4x128xf32>
    %1468 = arith.mulf %1463, %1467 : vector<4x128xf32>
    %1469 = vector.broadcast %1291 : f32 to vector<4x128xf32>
    %1470 = arith.mulf %1469, %1468 : vector<4x128xf32>
    %1471 = arith.addf %1299, %1470 : vector<4x128xf32>
    %1472 = vector.broadcast %1283 : f32 to vector<12x128xf32>
    %1473 = arith.mulf %1472, %751 : vector<12x128xf32>
    %1474 = arith.addf %1281, %1471 : vector<4x128xf32>
    %1475 = arith.addf %1282, %1473 : vector<12x128xf32>
    %1476 = vector.extract_strided_slice %1474 {offsets = [0, 0], sizes = [1, 128], strides = [1, 1]} : vector<4x128xf32> to vector<1x128xf32>
    %1477 = vector.extract_strided_slice %1475 {offsets = [0, 0], sizes = [1, 128], strides = [1, 1]} : vector<12x128xf32> to vector<1x128xf32>
    %1478 = vector.extract_strided_slice %1475 {offsets = [4, 0], sizes = [1, 128], strides = [1, 1]} : vector<12x128xf32> to vector<1x128xf32>
    %1479 = vector.extract_strided_slice %1475 {offsets = [8, 0], sizes = [1, 128], strides = [1, 1]} : vector<12x128xf32> to vector<1x128xf32>
    %1480 = vector.extract_strided_slice %1474 {offsets = [1, 0], sizes = [1, 128], strides = [1, 1]} : vector<4x128xf32> to vector<1x128xf32>
    %1481 = vector.extract_strided_slice %1475 {offsets = [1, 0], sizes = [1, 128], strides = [1, 1]} : vector<12x128xf32> to vector<1x128xf32>
    %1482 = vector.extract_strided_slice %1475 {offsets = [5, 0], sizes = [1, 128], strides = [1, 1]} : vector<12x128xf32> to vector<1x128xf32>
    %1483 = vector.extract_strided_slice %1475 {offsets = [9, 0], sizes = [1, 128], strides = [1, 1]} : vector<12x128xf32> to vector<1x128xf32>
    %1484 = vector.extract_strided_slice %1474 {offsets = [2, 0], sizes = [1, 128], strides = [1, 1]} : vector<4x128xf32> to vector<1x128xf32>
    %1485 = vector.extract_strided_slice %1475 {offsets = [2, 0], sizes = [1, 128], strides = [1, 1]} : vector<12x128xf32> to vector<1x128xf32>
    %1486 = vector.extract_strided_slice %1475 {offsets = [6, 0], sizes = [1, 128], strides = [1, 1]} : vector<12x128xf32> to vector<1x128xf32>
    %1487 = vector.extract_strided_slice %1475 {offsets = [10, 0], sizes = [1, 128], strides = [1, 1]} : vector<12x128xf32> to vector<1x128xf32>
    %1488 = vector.extract_strided_slice %1474 {offsets = [3, 0], sizes = [1, 128], strides = [1, 1]} : vector<4x128xf32> to vector<1x128xf32>
    %1489 = vector.extract_strided_slice %1475 {offsets = [3, 0], sizes = [1, 128], strides = [1, 1]} : vector<12x128xf32> to vector<1x128xf32>
    %1490 = vector.extract_strided_slice %1475 {offsets = [7, 0], sizes = [1, 128], strides = [1, 1]} : vector<12x128xf32> to vector<1x128xf32>
    %1491 = vector.extract_strided_slice %1475 {offsets = [11, 0], sizes = [1, 128], strides = [1, 1]} : vector<12x128xf32> to vector<1x128xf32>
    %1492 = tpu.concatenate %1476, %1477, %1478, %1479, %1480, %1481, %1482, %1483, %1484, %1485, %1486, %1487, %1488, %1489, %1490, %1491 in 0 : vector<1x128xf32>, vector<1x128xf32>, vector<1x128xf32>, vector<1x128xf32>, vector<1x128xf32>, vector<1x128xf32>, vector<1x128xf32>, vector<1x128xf32>, vector<1x128xf32>, vector<1x128xf32>, vector<1x128xf32>, vector<1x128xf32>, vector<1x128xf32>, vector<1x128xf32>, vector<1x128xf32>, vector<1x128xf32> -> vector<16x128xf32>
    %c16 = arith.constant 16 : index
    %c0_370 = arith.constant 0 : index
    %1493 = vector.load %arg12[%c16, %c0_370] : memref<32x128xf32, #tpu.memory_space<vmem>>, vector<16x128xf32>
    tpu.vector_store %arg12[%c16, %c0_370], %1492 {strides = array<i32>} : memref<32x128xf32, #tpu.memory_space<vmem>>, vector<16x128xf32>,
    return
  }
}

</mosaic_0001>

<bundles_post_ra>
// kernel: pcdarts_cell_forward.1
= control target key start
LH: loop header
LB: loop body
LE: loop exit
PB: predicated region body
PF: predicated region fallthrough
CT: control target
= control target key end

     0   :  { %17 = vsyncpa [#allocation3], 0  ;;  %s5078_s0 = inlined_call_operand.vmem [shape: f32[5,5], index: 0, kind: input, shape index: {}]   ;;  %s5079_s1 = inlined_call_operand.vmem [shape: f32[5], index: 1, kind: input, shape index: {}]   ;;  %s5080_s2 = inlined_call_operand.vmem [shape: f32[16,128], index: 2, kind: input, shape index: {}]   ;;  %s5081_s3 = inlined_call_operand.vmem [shape: f32[16,128], index: 3, kind: input, shape index: {}]   ;;  %s5082_s4 = inlined_call_operand.vmem [shape: f32[16,16], index: 4, kind: input, shape index: {}]   ;;  %s5083_s5 = inlined_call_operand.vmem [shape: f32[16,16], index: 5, kind: input, shape index: {}]   ;;  %s5084_s6 = inlined_call_operand.vmem [shape: f32[5,4,9], index: 6, kind: input, shape index: {}]   ;;  %s5085_s7 = inlined_call_operand.vmem [shape: f32[5,4,4], index: 7, kind: input, shape index: {}]   ;;  %s5086_s8 = inlined_call_operand.vmem [shape: f32[5,4,9], index: 8, kind: input, shape index: {}]   ;;  %s5087_s9 = inlined_call_operand.vmem [shape: f32[5,4,4], index: 9, kind: input, shape index: {}]   ;;  %s5088_s10 = inlined_call_operand.vmem [shape: f32[9,128], index: 10, kind: input, shape index: {}]   ;;  %s5089_s11 = inlined_call_operand.vmem [shape: f32[1,128], index: 11, kind: input, shape index: {}]   ;;  %s5090_s12 = inlined_call_operand.vmem [shape: f32[32,128], index: 12, kind: output, shape index: {}]  }
   0x1   :  { %s25_s23 = sshll.u32 %s5078_s0, 4  ;;  %s26_s23 = int_to_ptr.vmem [resolvable:$true] %s25_s23 }
   0x2   :  { %18 = vsyncpa [#allocation5], 0  ;;  %s35_s26 = sshll.u32 %s5079_s1, 4  ;;  %s3342_s27 = scalar_lea.vmem %s26_s23, 128  ;;  %s36_s26 = int_to_ptr.vmem [resolvable:$true] %s35_s26 }
   0x3   :  { %p3343_p0 = scmp.ne.s32.totalorder %s26_s23, %s3342_s27  ;;  %p3347_p1 = scmp.lt.s32.totalorder %s26_s23, %s26_s23 }
   0x4   :  { %p3348_p2 = scmp.lt.s32.totalorder %s3342_s27, %s3342_s27 }
   0x6   :  { %p3349_p3 = por %p3348_p2, %p3347_p1 }
   0x8   :  { %p3350_p4 = pnand %p3349_p3, %p3343_p0 }
   0xa   :  { %3353 = shalt.err (!%p3350_p4)
}
   0xb   :  { %s3370_s28 = smov [#allocation2]   ;;  %s3354_s29 = scalar_lea.vmem %s36_s26, 16 }
   0xc   :  { %28 = dma.vmem_to_smem %s26_s23, 128, %s3370_s28, [#allocation3]  }
   0xd   :  { %p3355_p5 = scmp.ne.s32.totalorder %s36_s26, %s3354_s29  ;;  %p3359_p6 = scmp.lt.s32.totalorder %s36_s26, %s36_s26 }
   0xe   :  { %p3360_p7 = scmp.lt.s32.totalorder %s3354_s29, %s3354_s29 }
  0x10   :  { %p3361_p8 = por %p3360_p7, %p3359_p6 }
  0x12   :  { %p3362_p9 = pnand %p3361_p8, %p3355_p5 }
  0x14   :  { %3365 = shalt.err (!%p3362_p9)
}
  0x15   :  { %s3371_s0 = smov [#allocation4]  }
  0x16   :  { %38 = dma.vmem_to_smem %s36_s26, 16, %s3371_s0, [#allocation5]  }
  0x17   :  { %3366 = dma.done.wait [#allocation3], 128  }
  0x18   :  { %3367 = vsyncadd [#allocation3], 4294967168 }
  0x19   :  { %3368 = dma.done.wait [#allocation5], 16  }
  0x1a   :  { %3369 = vsyncadd [#allocation5], 4294967280 }
  0x1b   :  { %65 = sfence }
  0x1c   :  { %v71_v0 = vld [vmem:[%s5080_s2] sm:$0xff]  ;;  %v72_v1 = vld [vmem:[%s5080_s2 + $0x8] sm:$0xff]  ;;  %vm77_vm0 = vcmask 130048   ;;  %v5107_v14 = vmov 1   ;;  %v5109_v15 = vmov 0   ;;  %v5113_v22 = vmov 2  }
  0x1d   :  { %v185_v2 = vld [vmem:[%s5081_s3] sm:$0xff]  ;;  %v73_v3 = vmax.f32 %v71_v0, 0.0  ;;  %v74_v4 = vmax.f32 %v72_v1, 0.0  ;;  %v186_v5 = vld [vmem:[%s5081_s3 + $0x8] sm:$0xff]  ;;  %3219 = vset.pattern.permute.xlu1 %v5107_v14  ;;  %3218 = vset.pattern.permute.xlu0 %v5109_v15  ;;  %v5111_v23 = vmov 3   ;;  %v5105_v25 = vmov 4  }
  0x1e   :  { %v187_v6 = vmax.f32 %v185_v2, 0.0  ;;  %v75_v7 = vld [vmem:[%s5082_s4] sm:$0xff]  ;;  %v188_v9 = vmax.f32 %v186_v5, 0.0  ;;  %v76_v12 = vld [vmem:[%s5082_s4 + $0x8] sm:$0xff]  ;;  %v5103_v26 = vmov 5   ;;  %v5101_v27 = vmov 6  }
  0x1f   :  { %v189_v8 = vld [vmem:[%s5083_s5] sm:$0xff]  ;;  %3129 = vmatprep.mubr.msk.f32.mxu0 %vm77_vm0, %v75_v7  ;;  %v3189_v10 = vpack.c.bf16 %v74_v4, %v73_v3  ;;  %v190_v13 = vld [vmem:[%s5083_s5 + $0x8] sm:$0xff]  ;;  %v5099_v28 = vmov 7   ;;  %v5097_v30 = vmov 8   ;;  %s3381_s27 = smov 9   ;;  %s3382_s28 = smov 8   ;;  %v300_v60 = vlaneseq }
  0x20   :  { %3136 = vmatprep.mubr.msk.f32.mxu1 %vm77_vm0, %v189_v8  ;;  %v3193_v11 = vpack.c.bf16 %v188_v9, %v187_v6  ;;  %v907_v21 = vld [vmem:[%s5084_s6] sm:$0xf]  ;;  %v3507_v24 = vld [vmem:[%s5084_s6 + $0x4] sm:$0xf]  ;;  %s3383_s29 = smov 7   ;;  %s3384_s0 = smov 1  }
  0x21   :  { %3190 = vmatprep.subr.bf16.mxu0 %v3189_v10  ;;  %s3385_s1 = smov 127   ;;  %s3386_s30 = smov 121   ;;  %v5115_v57 = vmov 0.0   ;;  %vm3389_vm1 = vmmov 0   ;;  %v3593_v62 = vshrl.u32 %v300_v60, 7  ;;  %v3603_v1 = vld [vmem:[%s5088_s10] sm:$0xff] }
  0x22   :  { %3194 = vmatprep.subr.bf16.mxu1 %v3193_v11  ;;  %3192 = vmatpush3.bf16.msra.mxu0 %v3189_v10  ;;  %s3387_s13 = smov 120   ;;  %s3390_s14 = smov 119   ;;  %5162 = vst [vmem:[#allocation8_spill] sm:$0xff] %v3603_v1  ;;  %vm68_vm2 = vcmp.gt.f32.partialorder %v3603_v1, 0.5  ;;  %vm387_vm3 = vcmask 1041409   ;;  %vm390_vm4 = vcmask 1042434  }
  0x23   :  { %3196 = vmatpush3.bf16.msra.mxu1 %v3193_v11  ;;  %3139 = vmatprep.subr.mxu0 %v5115_v57  ;;  %v302_v63 = vsub.s32 0, %v3593_v62  ;;  %v309_v3 = vsub.s32 1, %v3593_v62  ;;  %v316_v6 = vsub.s32 2, %v3593_v62  ;;  %vm393_vm5 = vcmask 1043459   ;;  %s4300_s16 = sld [smem:[#allocation4 + $0x3]]  ;;  %s4302_s17 = sld [smem:[#allocation2 + $0x181]] }
  0x24   :  { %3144 = vmatprep.subr.mxu1 %v5115_v57  ;;  %vm963_vm6 = vcmask 31744   ;;  %vm573_vm7 = vcmask 1043456   ;;  %s3060_s18 = sld [smem:[#allocation2 + $0x102]]  ;;  %s3059_s20 = sld [smem:[#allocation2 + $0x101]]  ;;  %vm1623_vm9 = vcmask 1040384   ;;  %vm1625_vm10 = vcmask 1041408  }
  0x25   :  { %3130 = vmatmul.mubr.msk.f32.vlgmr.msra.gmra.mrb[0].mxu0 %vm77_vm0, %v76_v12  ;;  %v3608_v2 = vrot.slane %v3603_v1, %v302_v63  ;;  %v3616_v7 = vrot.slane %v3603_v1, %v309_v3  ;;  %s4304_s19 = sld [smem:[#allocation4 + $0x2]]  ;;  %s3074_s21 = sld [smem:[#allocation2 + $0x183]]  ;;  %vm1627_vm11 = vcmask 1042432   ;;  %vm1630_vm12 = vcmask 1044480  }
  0x26   :  { %3137 = vmatmul.mubr.msk.f32.vlgmr.msra.gmra.mrb[0].mxu1 %vm77_vm0, %v190_v13  ;;  %3141 = vmatprep.mubr.msk.f32.mxu0 %vm3389_vm1, %v5115_v57  ;;  %s3061_s22 = sld [smem:[#allocation2 + $0x103]]  ;;  %s4438_s25 = sld [smem:[#allocation2 + $0x84]]  ;;  %vm1632_vm13 = vcmask 1045504   ;;  %vm1634_vm14 = vcmask 1046528  }
  0x27   :  { %3146 = vmatprep.mubr.msk.f32.mxu1 %vm3389_vm1, %v5115_v57 }
  0x29   :  { %s2273_s2 = smul.f32 %s4302_s17, %s4300_s16 }
  0x2b   :  { %s1920_s3 = smul.f32 %s3060_s18, %s4304_s19 }
  0x2c   :  { %s1918_s24 = smul.f32 %s3059_s20, %s4304_s19  ;;  %s4410_s20 = sld [smem:[#allocation4 + $0x1]] }
  0x2d   :  { %s2277_s4 = smul.f32 %s3074_s21, %s4300_s16  ;;  %s4412_s21 = sld [smem:[#allocation2 + $0x81]] }
  0x2e   :  { %s1922_s5 = smul.f32 %s3061_s22, %s4304_s19  ;;  %s4416_s22 = sld [smem:[#allocation2 + $0x2]] }
  0x33   :  { %s1244_s26 = smul.f32 %s4412_s21, %s4410_s20 }
  0x34   :  { %s1250_s21 = smul.f32 %s4438_s25, %s4410_s20 }
  0xf8   :  { %v3492_v16 = vpop.f32.mrb[0].mxu0 }
  0xf9   :  { %v3494_v17 = vpop.f32.mrb[0].mxu1  ;;  %v150_v18 = vpop.f32.mrb[1].mxu0 }
  0xfa   :  { %v3496_v19 = vpop.f32.mrb[1].mxu1  ;;  %159 = vadd.xlane.f32.xlu0 %v150_v18  ;;  %v165_v20 = vmul.f32 %v150_v18, %v150_v18 }
  0xfb   :  { %272 = vadd.xlane.f32.xlu1 %v3496_v19  ;;  %v278_v29 = vmul.f32 %v3496_v19, %v3496_v19 }
  0xfe   :  { %167 = vadd.xlane.f32.xlu0 %v165_v20 }
 0x10c   :  { %915 = vperm.xlu1 %3219, %v907_v21  }
 0x110   :  { %3220 = vset.pattern.permute.xlu1 %v5113_v22 }
 0x111   :  { %921 = vperm.xlu1 %3220, %v907_v21  }
 0x114   :  { %910 = vperm.xlu0 %3218, %v907_v21  }
 0x115   :  { %3221 = vset.pattern.permute.xlu1 %v5111_v23 }
 0x116   :  { %927 = vperm.xlu1 %3221, %v907_v21  }
 0x118   :  { %3224 = vset.pattern.permute.xlu0 %v5105_v25 }
 0x119   :  { %933 = vperm.xlu0 %3224, %v907_v21  }
 0x11a   :  { %3222 = vset.pattern.permute.xlu1 %v5109_v15 }
 0x11b   :  { %1263 = vperm.xlu1 %3222, %v3507_v24  }
 0x11d   :  { %3226 = vset.pattern.permute.xlu0 %v5103_v26 }
 0x11e   :  { %939 = vperm.xlu0 %3226, %v907_v21  }
 0x11f   :  { %3223 = vset.pattern.permute.xlu1 %v5107_v14 }
 0x120   :  { %1268 = vperm.xlu1 %3223, %v3507_v24  }
 0x122   :  { %1292 = vperm.xlu0 %3226, %v3507_v24  }
 0x124   :  { %3225 = vset.pattern.permute.xlu1 %v5113_v22 }
 0x126   :  { %3230 = vset.pattern.permute.xlu0 %v5101_v27 }
 0x127   :  { %945 = vperm.xlu0 %3230, %v907_v21  }
 0x12b   :  { %1298 = vperm.xlu0 %3230, %v3507_v24  }
 0x12f   :  { %3232 = vset.pattern.permute.xlu0 %v5099_v28 }
 0x144   :  { %280 = vadd.xlane.f32.xlu1 %v278_v29 }
 0x155   :  { %1274 = vperm.xlu1 %3225, %v3507_v24  }
 0x159   :  { %3227 = vset.pattern.permute.xlu1 %v5111_v23 }
 0x15a   :  { %1280 = vperm.xlu1 %3227, %v3507_v24  }
 0x15e   :  { %3228 = vset.pattern.permute.xlu1 %v5105_v25 }
 0x15f   :  { %1286 = vperm.xlu1 %3228, %v3507_v24  }
 0x163   :  { %3229 = vset.pattern.permute.xlu1 %v5099_v28 }
 0x164   :  { %951 = vperm.xlu1 %3229, %v907_v21  }
 0x168   :  { %3231 = vset.pattern.permute.xlu1 %v5097_v30 }
 0x169   :  { %957 = vperm.xlu1 %3231, %v907_v21   ;;  %v323_v21 = vsub.s32 3, %v3593_v62 }
 0x16d   :  { %3234 = vset.pattern.permute.xlu1 %v5109_v15 }
 0x187   :  { %v160_v31 = vpop.xlane.xlu0 %159 }
 0x188   :  { %v163_v32 = vmul.f32 0.0078125, %v160_v31  ;;  %v273_v41 = vpop.xlane.xlu1 %272 }
 0x189   :  { %v276_v47 = vmul.f32 0.0078125, %v273_v41 }
 0x18a   :  { %v173_v33 = vmul.f32 %v163_v32, %v163_v32  ;;  %v177_v38 = vsub.f32 %v150_v18, %v163_v32  ;;  %v3627_v18 = vrot.slane %v3603_v1, %v316_v6 }
 0x18b   :  { %v168_v34 = vpop.xlane.xlu0 %167  ;;  %v286_v49 = vmul.f32 %v276_v47, %v276_v47  ;;  %v290_v53 = vsub.f32 %v3496_v19, %v276_v47 }
 0x18c   :  { %v171_v35 = vmul.f32 0.0078125, %v168_v34  ;;  %v3540_v42 = vpop.permute.xlu1 %915 }
 0x18e   :  { %v175_v36 = vsub.f32 %v171_v35, %v173_v33 }
 0x190   :  { %v179_v37 = vadd.f32 1e-05, %v175_v36  ;;  %v3542_v43 = vpop.permute.xlu1 %921 }
 0x192   :  { %3301 = vrsqrt.f32 %v179_v37 }
 0x195   :  { %v3544_v44 = vpop.permute.xlu1 %927 }
 0x19a   :  { %v3546_v45 = vpop.permute.xlu1 %1263 }
 0x19c   :  { %v3302_v39 = vpop.eup %3301 }
 0x19d   :  { %v3530_v40 = vmul.f32 %v3302_v39, %v177_v38 }
 0x19f   :  { %298 = vrot.lane.b32.xlu1 %v3530_v40, %s3381_s27  ;;  %v3548_v46 = vpop.permute.xlu1 %1268 }
 0x1a3   :  { %305 = vrot.lane.b32.xlu1 %v3530_v40, %s3382_s28 }
 0x1a7   :  { %312 = vrot.lane.b32.xlu1 %v3530_v40, %s3383_s29 }
 0x1ab   :  { %319 = vrot.lane.b32.xlu1 %v3530_v40, %s3384_s0 }
 0x1d1   :  { %v281_v48 = vpop.xlane.xlu1 %280 }
 0x1d2   :  { %v284_v50 = vmul.f32 0.0078125, %v281_v48  ;;  %v3653_v48 = vrot.slane %v3603_v1, %v323_v21 }
 0x1d4   :  { %v288_v51 = vsub.f32 %v284_v50, %v286_v49  ;;  %5166 = vst [vmem:[#allocation12_spill] sm:$0xff] %v3653_v48 }
 0x1d5   :  { %v3568_v56 = vpop.permute.xlu1 %1274 }
 0x1d6   :  { %v292_v52 = vadd.f32 1e-05, %v288_v51 }
 0x1d8   :  { %3303 = vrsqrt.f32 %v292_v52 }
 0x1d9   :  { %v3581_v58 = vpop.permute.xlu1 %1280 }
 0x1de   :  { %v3585_v59 = vpop.permute.xlu1 %1286 }
 0x1e2   :  { %v3304_v54 = vpop.eup %3303 }
 0x1e3   :  { %v3551_v55 = vmul.f32 %v3304_v54, %v290_v53  ;;  %v3591_v61 = vpop.permute.xlu1 %951 }
 0x1e5   :  { %619 = vrot.lane.b32.xlu0 %v3551_v55, %s3381_s27  ;;  %622 = vrot.lane.b32.xlu1 %v3551_v55, %s3382_s28 }
 0x1e8   :  { %v3598_v0 = vpop.permute.xlu1 %957 }
 0x1e9   :  { %628 = vrot.lane.b32.xlu0 %v3551_v55, %s3384_s0  ;;  %625 = vrot.lane.b32.xlu1 %v3551_v55, %s3383_s29 }
 0x1ed   :  { %331 = vrot.lane.b32.xlu1 %v3530_v40, %s3385_s1  ;;  %1304 = vperm.xlu0 %3232, %v3507_v24  }
 0x1f1   :  { %338 = vrot.lane.b32.xlu1 %v3530_v40, %s3386_s30  ;;  %3233 = vset.pattern.permute.xlu0 %v5097_v30 }
 0x1f2   :  { %1310 = vperm.xlu0 %3233, %v3507_v24   ;;  %v328_v24 = vsub.s32 4, %v3593_v62 }
 0x1f4   :  { %v3656_v49 = vrot.slane %v3603_v1, %v328_v24 }
 0x1f5   :  { %345 = vrot.lane.b32.xlu1 %v3530_v40, %s3387_s13 }
 0x1f6   :  { %3235 = vset.pattern.permute.xlu0 %v5107_v14  ;;  %5167 = vst [vmem:[#allocation13_spill] sm:$0xff] %v3656_v49 }
 0x1f9   :  { %632 = vrot.lane.b32.xlu1 %v3551_v55, %s3385_s1 }
 0x1fd   :  { %352 = vrot.lane.b32.xlu1 %v3530_v40, %s3390_s14 }
 0x201   :  { %635 = vrot.lane.b32.xlu1 %v3551_v55, %s3386_s30 }
 0x205   :  { %638 = vrot.lane.b32.xlu1 %v3551_v55, %s3387_s13 }
 0x209   :  { %641 = vrot.lane.b32.xlu1 %v3551_v55, %s3390_s14 }
 0x211   :  { %v299_v4 = vpop.permute.xlu1 %298 }
 0x212   :  { %v3612_v5 = vmul.f32 %v3608_v2, %v299_v4 }
 0x214   :  { %5163 = vst [vmem:[#allocation9_spill] sm:$0xff] %v3612_v5  ;;  %v371_v8 = vrot.slane %v3612_v5, 1  ;;  %v372_v9 = vrot.slane %v3612_v5, 2  ;;  %v373_v11 = vrot.slane %v3612_v5, 3  ;;  %v378_v29 = vsel %vm68_vm2, %v3612_v5, -inf }
 0x215   :  { %v306_v10 = vpop.permute.xlu1 %305 }
 0x216   :  { %v379_v12 = vsel %vm68_vm2, %v371_v8, -inf  ;;  %v380_v13 = vsel %vm68_vm2, %v372_v9, -inf  ;;  %v3630_v20 = vmul.f32 %v3616_v7, %v306_v10  ;;  %v381_v36 = vsel %vm68_vm2, %v373_v11, -inf }
 0x217   :  { %v386_v19 = vrot.slane %v379_v12, 7  ;;  %v389_v31 = vrot.slane %v380_v13, 6  ;;  %v392_v52 = vrot.slane %v381_v36, 5 }
 0x218   :  { %5164 = vst [vmem:[#allocation10_spill] sm:$0xff] %v3630_v20  ;;  %v398_v33 = vrot.slane %v3630_v20, 7  ;;  %v399_v34 = vrot.slane %v3630_v20, 1  ;;  %v400_v37 = vrot.slane %v3630_v20, 2  ;;  %v589_v38 = vadd.f32 %v3630_v20, %v3612_v5 }
 0x219   :  { %v388_v32 = vsel %vm387_vm3, %v386_v19, %v378_v29  ;;  %v313_v35 = vpop.permute.xlu1 %312  ;;  %v406_v53 = vsel %vm68_vm2, %v3630_v20, -inf  ;;  %v3678_v19 = vmul.f32 %v3656_v49, %v3530_v40 }
 0x21a   :  { %v3646_v39 = vmul.f32 %v3627_v18, %v313_v35  ;;  %v405_v41 = vsel %vm68_vm2, %v398_v33, -inf  ;;  %v407_v47 = vsel %vm68_vm2, %v399_v34, -inf  ;;  %v391_v51 = vsel %vm390_vm4, %v389_v31, %v388_v32 }
 0x21b   :  { %v413_v50 = vrot.slane %v405_v41, 1  ;;  %v408_v4 = vsel %vm68_vm2, %v400_v37, -inf  ;;  %v415_v8 = vrot.slane %v407_v47, 7  ;;  %v394_v13 = vsel %vm393_vm5, %v392_v52, %v391_v51  ;;  %5169 = vst [vmem:[#allocation15_spill] sm:$0xff] %v3678_v19 }
 0x21c   :  { %5165 = vst [vmem:[#allocation11_spill] sm:$0xff] %v3646_v39  ;;  %v422_v54 = vrot.slane %v3646_v39, 6  ;;  %v423_v60 = vrot.slane %v3646_v39, 7  ;;  %v424_v9 = vrot.slane %v3646_v39, 1  ;;  %v417_v31 = vrot.slane %v408_v4, 6 }
 0x21d   :  { %v320_v3 = vpop.permute.xlu1 %319  ;;  %v414_v6 = vsel %vm387_vm3, %v406_v53, %v413_v50  ;;  %v431_v32 = vsel %vm68_vm2, %v3646_v39, -inf  ;;  %v396_v36 = vmax.f32 %v3678_v19, %v394_v13 }
 0x21e   :  { %v429_v10 = vsel %vm68_vm2, %v422_v54, -inf  ;;  %v430_v11 = vsel %vm68_vm2, %v423_v60, -inf  ;;  %v3673_v12 = vmul.f32 %v3653_v48, %v320_v3  ;;  %v432_v21 = vsel %vm68_vm2, %v424_v9, -inf }
 0x21f   :  { %v437_v24 = vrot.slane %v429_v10, 2  ;;  %v438_v29 = vrot.slane %v430_v11, 1  ;;  %v416_v37 = vsel %vm390_vm4, %v415_v8, %v414_v6  ;;  %v441_v47 = vrot.slane %v432_v21, 7 }
 0x220   :  { %5168 = vst [vmem:[#allocation14_spill] sm:$0xff] %v3673_v12  ;;  %v446_v33 = vrot.slane %v3673_v12, 5  ;;  %v447_v34 = vrot.slane %v3673_v12, 6  ;;  %v448_v35 = vrot.slane %v3673_v12, 7  ;;  %v418_v52 = vsel %vm393_vm5, %v417_v31, %v416_v37 }
 0x221   :  { %v439_v41 = vsel %vm387_vm3, %v438_v29, %v437_v24  ;;  %v420_v3 = vmax.f32 %v396_v36, %v418_v52  ;;  %v590_v10 = vadd.f32 %v589_v38, %v3646_v39  ;;  %v456_v13 = vsel %vm68_vm2, %v3673_v12, -inf }
 0x222   :  { %v453_v50 = vsel %vm68_vm2, %v446_v33, -inf  ;;  %v454_v51 = vsel %vm68_vm2, %v447_v34, -inf  ;;  %v455_v53 = vsel %vm68_vm2, %v448_v35, -inf  ;;  %v440_v6 = vsel %vm390_vm4, %v431_v32, %v439_v41  ;;  %v911_v32 = vpop.permute.xlu0 %910 }
 0x223   :  { %v461_v54 = vrot.slane %v453_v50, 3  ;;  %v462_v60 = vrot.slane %v454_v51, 2  ;;  %v464_v4 = vrot.slane %v455_v53, 1  ;;  %v442_v8 = vsel %vm393_vm5, %v441_v47, %v440_v6 }
 0x224   :  { %v444_v11 = vmax.f32 %v420_v3, %v442_v8  ;;  %v3708_v29 = vadd.f32 %v590_v10, %v3673_v12  ;;  %v5096_v38 = vmax.f32 %v3630_v20, 0.0  ;;  %v5095_v36 = vmax.f32 %v3612_v5, 0.0 }
 0x225   :  { %v463_v9 = vsel %vm387_vm3, %v462_v60, %v461_v54  ;;  %v5094_v37 = vmax.f32 %v3646_v39, 0.0  ;;  %v5093_v50 = vmax.f32 %v3673_v12, 0.0  ;;  %v3732_v53 = vmul.f32 %v3656_v49, %v3551_v55 }
 0x226   :  { %v465_v21 = vsel %vm390_vm4, %v464_v4, %v463_v9  ;;  %v934_v33 = vpop.permute.xlu0 %933  ;;  %v918_v47 = vmul.f32 %v3540_v42, %v5096_v38  ;;  %v913_v51 = vmul.f32 %v911_v32, %v5095_v36  ;;  %v5092_v42 = vmax.f32 %v3678_v19, 0.0 }
 0x227   :  { %v466_v24 = vsel %vm393_vm5, %v456_v13, %v465_v21  ;;  %v924_v52 = vmul.f32 %v3542_v43, %v5094_v37  ;;  %5170 = vst [vmem:[#allocation16_spill] sm:$0xff] %v3732_v53  ;;  %v930_v60 = vmul.f32 %v3544_v44, %v5093_v50  ;;  %v335_v6 = vsub.s32 5, %v3593_v62 }
 0x228   :  { %v3710_v31 = vmax.f32 %v444_v11, %v466_v24  ;;  %v919_v54 = vadd.f32 %v918_v47, %v913_v51  ;;  %v342_v8 = vsub.s32 6, %v3593_v62  ;;  %v5091_v43 = vmax.f32 %v3732_v53, 0.0  ;;  %v3747_v11 = vld [vmem:[%s5088_s10 + $0x8] sm:$0x1]  ;;  %s3073_s10 = sld [smem:[#allocation2 + $0x182]] }
 0x229   :  { %v349_v9 = vsub.s32 7, %v3593_v62  ;;  %5171 = vst [vmem:[#allocation17_spill] sm:$0xff] %v3747_v11  ;;  %v936_v44 = vmul.f32 %v934_v33, %v5092_v42  ;;  %v3758_v47 = vrot.slane %v3603_v1, %v335_v6  ;;  %vm69_vm8 = vcmp.gt.f32.partialorder %v3747_v11, 0.5 }
 0x22a   :  { %v3712_v34 = vpop.permute.xlu0 %939  ;;  %v925_v4 = vadd.f32 %v924_v52, %v919_v54  ;;  %v3761_v51 = vrot.slane %v3603_v1, %v342_v8  ;;  %v3766_v52 = vmul.f32 %v3585_v59, %v5091_v43  ;;  %v3774_v54 = vrot.slane %v3747_v11, %v302_v63 }
 0x22b   :  { %5174 = vst [vmem:[#allocation20_spill] sm:$0xff] %v3758_v47  ;;  %v3769_v33 = vrot.slane %v3603_v1, %v349_v9 }
 0x22c   :  { %v931_v10 = vadd.f32 %v930_v60, %v925_v4  ;;  %5175 = vst [vmem:[#allocation21_spill] sm:$0xff] %v3761_v51 }
 0x22d   :  { %5176 = vst [vmem:[#allocation22_spill] sm:$0xff] %v3769_v33 }
 0x22e   :  { %v3714_v35 = vpop.permute.xlu0 %1292  ;;  %v3776_v60 = vadd.f32 %v936_v44, %v931_v10  ;;  %s2275_s23 = smul.f32 %s3073_s10, %s4300_s16 }
 0x232   :  { %v3719_v41 = vpop.permute.xlu0 %945 }
 0x236   :  { %v3737_v3 = vpop.permute.xlu0 %1298 }
 0x257   :  { %v623_v13 = vpop.permute.xlu1 %622  ;;  %v620_v21 = vpop.permute.xlu0 %619 }
 0x258   :  { %v3752_v24 = vmul.f32 %v623_v13, %v3616_v7  ;;  %v3755_v32 = vmul.f32 %v620_v21, %v3608_v2 }
 0x25a   :  { %5172 = vst [vmem:[#allocation18_spill] sm:$0xff] %v3752_v24  ;;  %5173 = vst [vmem:[#allocation19_spill] sm:$0xff] %v3755_v32  ;;  %v678_v4 = vrot.slane %v3752_v24, 7  ;;  %v679_v6 = vrot.slane %v3752_v24, 1  ;;  %v680_v8 = vrot.slane %v3752_v24, 2  ;;  %v686_v59 = vsel %vm68_vm2, %v3752_v24, -inf }
 0x25b   :  { %v654_v9 = vrot.slane %v3755_v32, 1  ;;  %v655_v13 = vrot.slane %v3755_v32, 2  ;;  %v656_v62 = vrot.slane %v3755_v32, 3  ;;  %v661_v63 = vsel %vm68_vm2, %v3755_v32, -inf  ;;  %v626_v10 = vpop.permute.xlu1 %625  ;;  %v629_v50 = vpop.permute.xlu0 %628 }
 0x25c   :  { %v685_v44 = vsel %vm68_vm2, %v678_v4, -inf  ;;  %v3794_v21 = vsel %vm68_vm2, %v679_v6, -inf  ;;  %v3798_v43 = vsel %vm68_vm2, %v680_v8, -inf  ;;  %v3802_v42 = vadd.f32 %v3752_v24, %v3755_v32 }
 0x25d   :  { %v693_v37 = vrot.slane %v685_v44, 1  ;;  %v662_v4 = vsel %vm68_vm2, %v654_v9, -inf  ;;  %v663_v6 = vsel %vm68_vm2, %v655_v13, -inf  ;;  %v3812_v8 = vsel %vm68_vm2, %v656_v62, -inf }
 0x25e   :  { %v669_v30 = vrot.slane %v662_v4, 7  ;;  %v3815_v28 = vmul.f32 %v626_v10, %v3627_v18  ;;  %v671_v27 = vrot.slane %v663_v6, 6  ;;  %v673_v26 = vrot.slane %v3812_v8, 5 }
 0x25f   :  { %v694_v44 = vsel %vm387_vm3, %v686_v59, %v693_v37  ;;  %v3820_v25 = vmul.f32 %v629_v50, %v3653_v48  ;;  %v332_v9 = vpop.permute.xlu1 %331  ;;  %v5182_v12 = vmax.f32 %v3755_v32, 0.0 }
 0x260   :  { %5177 = vst [vmem:[#allocation23_spill] sm:$0xff] %v3815_v28  ;;  %v670_v14 = vsel %vm387_vm3, %v669_v30, %v661_v63  ;;  %v702_v13 = vrot.slane %v3815_v28, 6  ;;  %v703_v62 = vrot.slane %v3815_v28, 7  ;;  %v704_v4 = vrot.slane %v3815_v28, 1 }
 0x261   :  { %5178 = vst [vmem:[#allocation24_spill] sm:$0xff] %v3820_v25  ;;  %v3829_v10 = vsel %vm68_vm2, %v3815_v28, -inf  ;;  %v726_v37 = vrot.slane %v3820_v25, 5  ;;  %v727_v59 = vrot.slane %v3820_v25, 6  ;;  %v3839_v6 = vmul.f32 %v3758_v47, %v332_v9 }
 0x262   :  { %v709_v30 = vsel %vm68_vm2, %v702_v13, -inf  ;;  %v710_v63 = vsel %vm68_vm2, %v703_v62, -inf }
 0x263   :  { %5179 = vst [vmem:[#allocation25_spill] sm:$0xff] %v3839_v6  ;;  %v717_v15 = vrot.slane %v709_v30, 2  ;;  %v718_v23 = vrot.slane %v710_v63, 1  ;;  %v3844_v22 = vsel %vm68_vm2, %v726_v37, -inf  ;;  %v3848_v57 = vsel %vm68_vm2, %v727_v59, -inf  ;;  %v339_v50 = vpop.permute.xlu1 %338 }
 0x264   :  { %v741_v13 = vrot.slane %v3844_v22, 3  ;;  %v742_v62 = vrot.slane %v3848_v57, 2  ;;  %v5120_v9 = vmax.f32 %v3839_v6, 0.0  ;;  %v470_v38 = vrot.slane %v3839_v6, 3 }
 0x265   :  { %v471_v30 = vrot.slane %v3839_v6, 4  ;;  %v3858_v36 = vmul.f32 %v3761_v51, %v339_v50  ;;  %v5127_v37 = vmax.f32 %v3820_v25, 0.0  ;;  %v1266_v57 = vmul.f32 %v3546_v45, %v5182_v12 }
 0x266   :  { %v3862_v59 = vsel %vm68_vm2, %v470_v38, -inf  ;;  %v942_v22 = vmul.f32 %v3712_v34, %v5120_v9  ;;  %v672_v12 = vsel %vm390_vm4, %v671_v27, %v670_v14  ;;  %v719_v14 = vsel %vm387_vm3, %v718_v23, %v717_v15 }
 0x267   :  { %5180 = vst [vmem:[#allocation26_spill] sm:$0xff] %v3858_v36  ;;  %v3871_v63 = vsel %vm68_vm2, %v471_v30, -inf  ;;  %v5122_v50 = vmax.f32 %v3858_v36, 0.0  ;;  %v346_v38 = vpop.permute.xlu1 %345  ;;  %v1283_v45 = vmul.f32 %v3581_v58, %v5127_v37  ;;  %v712_v58 = vsel %vm68_vm2, %v704_v4, -inf }
 0x268   :  { %v3880_v9 = vmul.f32 %v3769_v33, %v346_v38  ;;  %v943_v8 = vadd.f32 %v942_v22, %v3776_v60  ;;  %v5183_v38 = vmax.f32 %v3752_v24, 0.0  ;;  %v720_v15 = vsel %vm390_vm4, %v3829_v10, %v719_v14 }
 0x269   :  { %v948_v30 = vmul.f32 %v3719_v41, %v5122_v50  ;;  %v5184_v41 = vmax.f32 %v3815_v28, 0.0  ;;  %v743_v10 = vsel %vm387_vm3, %v742_v62, %v741_v13 }
 0x26a   :  { %5181 = vst [vmem:[#allocation27_spill] sm:$0xff] %v3880_v9  ;;  %v5129_v34 = vmax.f32 %v3880_v9, 0.0  ;;  %v1271_v60 = vmul.f32 %v3548_v46, %v5183_v38 }
 0x26b   :  { %v633_v22 = vpop.permute.xlu1 %632  ;;  %v949_v20 = vadd.f32 %v948_v30, %v943_v8  ;;  %v1277_v50 = vmul.f32 %v3568_v56, %v5184_v41  ;;  %v674_v8 = vsel %vm393_vm5, %v673_v26, %v672_v12  ;;  %v5186_v56 = vrot.slane %v3794_v21, 7 }
 0x26c   :  { %v3904_v5 = vmul.f32 %v633_v22, %v3758_v47  ;;  %v954_v39 = vmul.f32 %v3591_v61, %v5129_v34  ;;  %v1272_v46 = vadd.f32 %v1271_v60, %v1266_v57  ;;  %v676_v30 = vmax.f32 %v3732_v53, %v674_v8 }
 0x26d   :  { %v696_v38 = vsel %vm390_vm4, %v5186_v56, %v694_v44  ;;  %v5187_v44 = vrot.slane %v3798_v43, 6  ;;  %v721_v12 = vrot.slane %v712_v58, 7 }
 0x26e   :  { %5185 = vst [vmem:[#allocation28_spill] sm:$0xff] %v3904_v5  ;;  %v750_v27 = vrot.slane %v3904_v5, 3  ;;  %v751_v22 = vrot.slane %v3904_v5, 4  ;;  %v752_v61 = vrot.slane %v3904_v5, 5  ;;  %v955_v57 = vadd.f32 %v954_v39, %v949_v20 }
 0x26f   :  { %v353_v26 = vpop.permute.xlu1 %352  ;;  %v5126_v60 = vmax.f32 %v3904_v5, 0.0  ;;  %v1278_v21 = vadd.f32 %v1277_v50, %v1272_v46  ;;  %v698_v41 = vsel %vm393_vm5, %v5187_v44, %v696_v38  ;;  %v5189_v20 = vrot.slane %v3820_v25, 7 }
 0x270   :  { %v3927_v23 = vmul.f32 %v3774_v54, %v353_v26  ;;  %v700_v4 = vmax.f32 %v676_v30, %v698_v41  ;;  %v736_v50 = vsel %vm68_vm2, %v3820_v25, -inf  ;;  %v722_v30 = vsel %vm393_vm5, %v721_v12, %v720_v15 }
 0x271   :  { %v735_v39 = vsel %vm68_vm2, %v5189_v20, -inf  ;;  %v1284_v8 = vadd.f32 %v1283_v45, %v1278_v21  ;;  %v1295_v43 = vmul.f32 %v3714_v35, %v5126_v60  ;;  %v753_v38 = vrot.slane %v3904_v5, 6 }
 0x272   :  { %5188 = vst [vmem:[#allocation29_spill] sm:$0xff] %v3927_v23  ;;  %v5128_v46 = vmax.f32 %v3927_v23, 0.0  ;;  %v744_v56 = vrot.slane %v735_v39, 1  ;;  %v724_v14 = vmax.f32 %v700_v4, %v722_v30  ;;  %v758_v35 = vsel %vm68_vm2, %v750_v27, -inf }
 0x273   :  { %v636_v58 = vpop.permute.xlu1 %635  ;;  %v1290_v45 = vadd.f32 %v3766_v52, %v1284_v8  ;;  %v759_v26 = vsel %vm68_vm2, %v751_v22, -inf  ;;  %v760_v44 = vsel %vm68_vm2, %v752_v61, -inf  ;;  %v761_v27 = vsel %vm68_vm2, %v753_v38, -inf  ;;  %v1305_v61 = vpop.permute.xlu0 %1304 }
 0x274   :  { %v3949_v21 = vmul.f32 %v636_v58, %v3761_v51  ;;  %v960_v13 = vmul.f32 %v3598_v0, %v5128_v46  ;;  %v745_v62 = vsel %vm390_vm4, %v744_v56, %v743_v10  ;;  %v766_v15 = vrot.slane %v758_v35, 5  ;;  %v962_v0 = vld [vmem:[%s5085_s7] sm:$0xf] }
 0x275   :  { %v1296_v52 = vadd.f32 %v1295_v43, %v1290_v45  ;;  %v746_v41 = vsel %vm393_vm5, %v736_v50, %v745_v62  ;;  %v767_v43 = vrot.slane %v759_v26, 4  ;;  %v769_v50 = vrot.slane %v760_v44, 3 }
 0x276   :  { %5190 = vst [vmem:[#allocation30_spill] sm:$0xff] %v3949_v21  ;;  %v776_v22 = vrot.slane %v3949_v21, 2  ;;  %v777_v4 = vrot.slane %v3949_v21, 3  ;;  %v961_v12 = vadd.f32 %v960_v13, %v955_v57  ;;  %v5125_v20 = vmax.f32 %v3949_v21, 0.0 }
 0x277   :  { %v639_v39 = vpop.permute.xlu1 %638  ;;  %v748_v8 = vmax.f32 %v724_v14, %v746_v41  ;;  %v771_v10 = vrot.slane %v761_v27, 2  ;;  %v778_v56 = vrot.slane %v3949_v21, 4  ;;  %v779_v38 = vrot.slane %v3949_v21, 5 }
 0x278   :  { %v3967_v30 = vmul.f32 %v639_v39, %v3769_v33  ;;  %3140 = vmatpush3.msk.msra.mxu0 %vm573_vm7, %v961_v12  ;;  %v1301_v57 = vmul.f32 %v3737_v3, %v5125_v20  ;;  %v5192_v58 = vmov 0.0   ;;  %v768_v45 = vsel %vm387_vm3, %v767_v43, %v766_v15 }
 0x279   :  { %3142 = vmatmul.mubr.msk.f32.vlgmr.msra.gmra.mrb[2].mxu0 %vm963_vm6, %v962_v0  ;;  %3149 = vmatprep.subr.mxu0 %v5192_v58  ;;  %v784_v14 = vsel %vm68_vm2, %v776_v22, -inf  ;;  %v785_v35 = vsel %vm68_vm2, %v777_v4, -inf  ;;  %v5193_v26 = vrot.slane %v3839_v6, 5  ;;  %v770_v44 = vsel %vm390_vm4, %v769_v50, %v768_v45  ;;  %v1311_v50 = vpop.permute.xlu0 %1310 }
 0x27a   :  { %5191 = vst [vmem:[#allocation31_spill] sm:$0xff] %v3967_v30  ;;  %v5124_v13 = vmax.f32 %v3967_v30, 0.0  ;;  %v1302_v62 = vadd.f32 %v1301_v57, %v1296_v52  ;;  %3151 = vmatprep.mubr.msk.f32.mxu0 %vm3389_vm1, %v5192_v58  ;;  %v786_v41 = vsel %vm68_vm2, %v778_v56, -inf  ;;  %v772_v15 = vsel %vm393_vm5, %v771_v10, %v770_v44 }
 0x27b   :  { %v3986_v3 = vsel %vm68_vm2, %v5193_v26, -inf  ;;  %v642_v27 = vpop.permute.xlu1 %641  ;;  %v787_v22 = vsel %vm68_vm2, %v779_v38, -inf  ;;  %v792_v4 = vrot.slane %v784_v14, 6  ;;  %v793_v12 = vrot.slane %v785_v35, 5 }
 0x27c   :  { %v3999_v0 = vmul.f32 %v642_v27, %v3774_v54  ;;  %v1307_v52 = vmul.f32 %v1305_v61, %v5124_v13  ;;  %v774_v39 = vmax.f32 %v748_v8, %v772_v15  ;;  %v795_v43 = vrot.slane %v786_v41, 4 }
 0x27d   :  { %v794_v57 = vsel %vm387_vm3, %v793_v12, %v792_v4  ;;  %v797_v56 = vrot.slane %v787_v22, 3  ;;  %v802_v45 = vrot.slane %v3967_v30, 1  ;;  %v803_v10 = vrot.slane %v3967_v30, 2 }
 0x27e   :  { %5194 = vst [vmem:[#allocation32_spill] sm:$0xff] %v3999_v0  ;;  %v1308_v26 = vadd.f32 %v1307_v52, %v1302_v62  ;;  %v5123_v38 = vmax.f32 %v3999_v0, 0.0  ;;  %v796_v14 = vsel %vm390_vm4, %v795_v43, %v794_v57  ;;  %v804_v35 = vrot.slane %v3967_v30, 3 }
 0x27f   :  { %v798_v44 = vsel %vm393_vm5, %v797_v56, %v796_v14  ;;  %v805_v61 = vrot.slane %v3967_v30, 4  ;;  %v810_v8 = vsel %vm68_vm2, %v802_v45, -inf  ;;  %v811_v41 = vsel %vm68_vm2, %v803_v10, -inf  ;;  %v3051_v56 = vld [vmem:[%s5085_s7 + $0x4] sm:$0xf] }
 0x280   :  { %v1313_v27 = vmul.f32 %v1311_v50, %v5123_v38  ;;  %v800_v62 = vmax.f32 %v774_v39, %v798_v44  ;;  %v812_v15 = vsel %vm68_vm2, %v804_v35, -inf  ;;  %v818_v22 = vrot.slane %v810_v8, 7 }
 0x281   :  { %v813_v4 = vsel %vm68_vm2, %v805_v61, -inf  ;;  %v819_v12 = vrot.slane %v811_v41, 6  ;;  %v821_v52 = vrot.slane %v812_v15, 5  ;;  %v828_v43 = vrot.slane %v3999_v0, 1 }
 0x282   :  { %v1314_v57 = vadd.f32 %v1313_v27, %v1308_v26  ;;  %v823_v45 = vrot.slane %v813_v4, 4  ;;  %v829_v50 = vrot.slane %v3999_v0, 2  ;;  %v830_v39 = vrot.slane %v3999_v0, 3 }
 0x283   :  { %v820_v10 = vsel %vm387_vm3, %v819_v12, %v818_v22  ;;  %v835_v14 = vsel %vm69_vm8, %v3999_v0, -inf  ;;  %v836_v35 = vsel %vm69_vm8, %v828_v43, -inf  ;;  %v5195_v26 = vrot.slane %v3839_v6, 6 }
 0x284   :  { %3150 = vmatpush3.msk.msra.mxu0 %vm573_vm7, %v1314_v57  ;;  %v822_v61 = vsel %vm390_vm4, %v821_v52, %v820_v10  ;;  %v837_v8 = vsel %vm69_vm8, %v829_v50, -inf  ;;  %v838_v41 = vsel %vm69_vm8, %v830_v39, -inf  ;;  %v843_v27 = vrot.slane %v836_v35, 7 }
 0x285   :  { %v481_v44 = vsel %vm68_vm2, %v5195_v26, -inf  ;;  %3152 = vmatmul.mubr.msk.f32.vlgmr.msra.gmra.mrb[4].mxu0 %vm963_vm6, %v3051_v56  ;;  %v824_v15 = vsel %vm393_vm5, %v823_v45, %v822_v61  ;;  %v845_v22 = vrot.slane %v837_v8, 6  ;;  %v847_v4 = vrot.slane %v838_v41, 5  ;;  %3159 = vmatprep.subr.mxu0 %v5192_v58 }
 0x286   :  { %v5196_v12 = vrot.slane %v3862_v59, 5  ;;  %v5197_v43 = vrot.slane %v3871_v63, 4  ;;  %v826_v52 = vmax.f32 %v800_v62, %v824_v15  ;;  %v844_v50 = vsel %vm387_vm3, %v843_v27, %v835_v14  ;;  %3161 = vmatprep.mubr.msk.f32.mxu0 %vm3389_vm1, %v5192_v58 }
 0x287   :  { %v489_v39 = vrot.slane %v3986_v3, 3  ;;  %v491_v10 = vrot.slane %v481_v44, 2  ;;  %v846_v56 = vsel %vm390_vm4, %v845_v22, %v844_v50  ;;  %v499_v45 = vrot.slane %v3858_v36, 5 }
 0x288   :  { %v488_v57 = vsel %vm387_vm3, %v5197_v43, %v5196_v12  ;;  %v5198_v59 = vrot.slane %v3858_v36, 2  ;;  %v5199_v35 = vrot.slane %v3858_v36, 3  ;;  %v848_v3 = vsel %vm393_vm5, %v847_v4, %v846_v56 }
 0x289   :  { %v490_v14 = vsel %vm390_vm4, %v489_v39, %v488_v57  ;;  %v5200_v26 = vrot.slane %v3858_v36, 4  ;;  %v4071_v8 = vmax.f32 %v826_v52, %v848_v3  ;;  %v507_v27 = vsel %vm68_vm2, %v499_v45, -inf }
 0x28a   :  { %v504_v63 = vsel %vm68_vm2, %v5198_v59, -inf  ;;  %v505_v62 = vsel %vm68_vm2, %v5199_v35, -inf  ;;  %v492_v41 = vsel %vm393_vm5, %v491_v10, %v490_v14  ;;  %v524_v4 = vrot.slane %v3880_v9, 3 }
 0x28b   :  { %v506_v44 = vsel %vm68_vm2, %v5200_v26, -inf  ;;  %v512_v61 = vrot.slane %v504_v63, 6  ;;  %v513_v15 = vrot.slane %v505_v62, 5  ;;  %v494_v22 = vmax.f32 %v3710_v31, %v492_v41 }
 0x28c   :  { %v515_v12 = vrot.slane %v506_v44, 4  ;;  %v592_v43 = vadd.f32 %v3708_v29, %v3678_v19  ;;  %v517_v50 = vrot.slane %v507_v27, 3  ;;  %v525_v52 = vrot.slane %v3880_v9, 4 }
 0x28d   :  { %v514_v57 = vsel %vm387_vm3, %v513_v15, %v512_v61  ;;  %v5201_v39 = vrot.slane %v3880_v9, 1  ;;  %v5202_v31 = vrot.slane %v3880_v9, 2  ;;  %v532_v29 = vsel %vm68_vm2, %v524_v4, -inf }
 0x28e   :  { %v516_v56 = vsel %vm390_vm4, %v515_v12, %v514_v57  ;;  %v533_v35 = vsel %vm68_vm2, %v525_v52, -inf  ;;  %v541_v3 = vrot.slane %v532_v29, 5  ;;  %v550_v26 = vrot.slane %v3927_v23, 1 }
 0x28f   :  { %v530_v10 = vsel %vm68_vm2, %v5201_v39, -inf  ;;  %v531_v45 = vsel %vm68_vm2, %v5202_v31, -inf  ;;  %v518_v63 = vsel %vm393_vm5, %v517_v50, %v516_v56  ;;  %v551_v44 = vrot.slane %v3927_v23, 2 }
 0x290   :  { %v538_v59 = vrot.slane %v530_v10, 7  ;;  %v539_v62 = vrot.slane %v531_v45, 6  ;;  %v520_v14 = vmax.f32 %v494_v22, %v518_v63  ;;  %v543_v41 = vrot.slane %v533_v35, 4 }
 0x291   :  { %v552_v27 = vrot.slane %v3927_v23, 3  ;;  %v593_v15 = vadd.f32 %v592_v43, %v3839_v6  ;;  %v558_v4 = vsel %vm69_vm8, %v550_v26, -inf  ;;  %v559_v57 = vsel %vm69_vm8, %v551_v44, -inf }
 0x292   :  { %v540_v61 = vsel %vm387_vm3, %v539_v62, %v538_v59  ;;  %v867_v22 = vadd.f32 %v3802_v42, %v3815_v28  ;;  %v565_v39 = vrot.slane %v558_v4, 7  ;;  %v567_v10 = vrot.slane %v559_v57, 6 }
 0x293   :  { %v542_v12 = vsel %vm390_vm4, %v541_v3, %v540_v61  ;;  %v560_v52 = vsel %vm69_vm8, %v552_v27, -inf  ;;  %v557_v43 = vsel %vm69_vm8, %v3927_v23, -inf  ;;  %v594_v31 = vadd.f32 %v593_v15, %v3858_v36 }
 0x294   :  { %v544_v50 = vsel %vm393_vm5, %v543_v41, %v542_v12  ;;  %v868_v45 = vadd.f32 %v867_v22, %v3820_v25  ;;  %v566_v29 = vsel %vm387_vm3, %v565_v39, %v557_v43  ;;  %v569_v59 = vrot.slane %v560_v52, 5 }
 0x295   :  { %v546_v56 = vmax.f32 %v520_v14, %v544_v50  ;;  %v568_v42 = vsel %vm390_vm4, %v567_v10, %v566_v29  ;;  %v595_v63 = vadd.f32 %v594_v31, %v3880_v9  ;;  %v5203_v43 = vmov 2  }
 0x296   :  { %v869_v35 = vadd.f32 %v868_v45, %v3732_v53  ;;  %v570_v62 = vsel %vm393_vm5, %v569_v59, %v568_v42  ;;  %v5204_v31 = vmov 3   ;;  %v3054_v45 = vld [vmem:[%s5086_s8 + $0x4] sm:$0xf]  ;;  %v5205_v29 = vmov 0  }
 0x297   :  { %v4121_v3 = vmax.f32 %v546_v56, %v570_v62  ;;  %v4124_v14 = vadd.f32 %v595_v63, %v3927_v23  ;;  %v1089_v56 = vld [vmem:[%s5086_s8] sm:$0xf]  ;;  %v5206_v59 = vmov 1   ;;  %v5207_v42 = vmov 4  }
 0x298   :  { %v870_v26 = vadd.f32 %v869_v35, %v3904_v5  ;;  %v5208_v63 = vmov 5   ;;  %v5209_v35 = vmov 6   ;;  %v5210_v62 = vmov 7  }
 0x29a   :  { %v871_v44 = vadd.f32 %v870_v26, %v3949_v21  ;;  %v5211_v26 = vmov 8  }
 0x29c   :  { %v872_v61 = vadd.f32 %v871_v44, %v3967_v30 }
 0x29e   :  { %v4130_v41 = vadd.f32 %v872_v61, %v3999_v0 }
 0x34c   :  { %v4132_v27 = vpop.f32.mrb[2].mxu0 }
 0x34d   :  { %v3143_v15 = vpop.f32.mrb[3].mxu0  ;;  %v1040_v12 = vsel %vm573_vm7, %v4132_v27, 0.0  ;;  %v1044_v4 = vmul.f32 %v4132_v27, %v4132_v27 }
 0x34e   :  { %1041 = vadd.xlane.f32.xlu0 %v1040_v12 }
 0x34f   :  { %v1045_v57 = vsel %vm573_vm7, %v1044_v4, 0.0 }
 0x350   :  { %1046 = vadd.xlane.f32.xlu1 %v1045_v57 }
 0x358   :  { %v4139_v22 = vpop.f32.mrb[4].mxu0 }
 0x359   :  { %v1393_v50 = vsel %vm573_vm7, %v4139_v22, 0.0  ;;  %v1397_v52 = vmul.f32 %v4139_v22, %v4139_v22  ;;  %v3153_v39 = vpop.f32.mrb[5].mxu0 }
 0x35a   :  { %1394 = vadd.xlane.f32.xlu0 %v1393_v50 }
 0x35b   :  { %v1398_v10 = vsel %vm573_vm7, %v1397_v52, 0.0 }
 0x35e   :  { %1399 = vadd.xlane.f32.xlu0 %v1398_v10 }
 0x361   :  { %1092 = vperm.xlu1 %3234, %v1089_v56  }
 0x365   :  { %3236 = vset.pattern.permute.xlu1 %v5203_v43 }
 0x366   :  { %1103 = vperm.xlu1 %3236, %v1089_v56  }
 0x36a   :  { %3237 = vset.pattern.permute.xlu1 %v5204_v31 }
 0x36b   :  { %1109 = vperm.xlu1 %3237, %v1089_v56  }
 0x36f   :  { %3238 = vset.pattern.permute.xlu1 %v5205_v29 }
 0x370   :  { %1446 = vperm.xlu1 %3238, %v3054_v45  }
 0x374   :  { %3239 = vset.pattern.permute.xlu1 %v5206_v59  ;;  %1097 = vperm.xlu0 %3235, %v1089_v56  }
 0x375   :  { %1451 = vperm.xlu1 %3239, %v3054_v45  }
 0x378   :  { %3241 = vset.pattern.permute.xlu0 %v5203_v43 }
 0x379   :  { %3240 = vset.pattern.permute.xlu1 %v5207_v42  ;;  %1457 = vperm.xlu0 %3241, %v3054_v45  }
 0x37a   :  { %1115 = vperm.xlu1 %3240, %v1089_v56  }
 0x37d   :  { %3243 = vset.pattern.permute.xlu0 %v5204_v31 }
 0x37e   :  { %1463 = vperm.xlu0 %3243, %v3054_v45   ;;  %3242 = vset.pattern.permute.xlu1 %v5208_v63 }
 0x37f   :  { %1121 = vperm.xlu1 %3242, %v1089_v56  }
 0x382   :  { %3245 = vset.pattern.permute.xlu0 %v5207_v42 }
 0x383   :  { %1469 = vperm.xlu0 %3245, %v3054_v45   ;;  %3244 = vset.pattern.permute.xlu1 %v5209_v35 }
 0x384   :  { %1127 = vperm.xlu1 %3244, %v1089_v56  }
 0x387   :  { %3246 = vset.pattern.permute.xlu0 %v5210_v62 }
 0x388   :  { %3247 = vset.pattern.permute.xlu1 %v5208_v63  ;;  %1133 = vperm.xlu0 %3246, %v1089_v56  }
 0x389   :  { %1475 = vperm.xlu1 %3247, %v3054_v45  }
 0x38c   :  { %3248 = vset.pattern.permute.xlu0 %v5211_v26 }
 0x38d   :  { %3249 = vset.pattern.permute.xlu1 %v5209_v35  ;;  %1139 = vperm.xlu0 %3248, %v1089_v56  }
 0x38e   :  { %1481 = vperm.xlu1 %3249, %v3054_v45  }
 0x392   :  { %3250 = vset.pattern.permute.xlu1 %v5210_v62 }
 0x393   :  { %1487 = vperm.xlu1 %3250, %v3054_v45  }
 0x397   :  { %3251 = vset.pattern.permute.xlu1 %v5205_v29 }
 0x3db   :  { %v1042_v44 = vpop.xlane.xlu0 %1041 }
 0x3dc   :  { %v1043_v61 = vmul.f32 0.0078125, %v1042_v44 }
 0x3dd   :  { %v1047_v15 = vpop.xlane.xlu1 %1046 }
 0x3de   :  { %v1049_v12 = vmul.f32 %v1043_v61, %v1043_v61  ;;  %v1048_v4 = vmul.f32 0.0078125, %v1047_v15  ;;  %v1051_v56 = vsub.f32 %v4132_v27, %v1043_v61 }
 0x3e0   :  { %v1050_v57 = vsub.f32 %v1048_v4, %v1049_v12 }
 0x3e2   :  { %v1052_v50 = vadd.f32 1e-05, %v1050_v57 }
 0x3e4   :  { %3305 = vrsqrt.f32 %v1052_v50 }
 0x3e7   :  { %v1395_v52 = vpop.xlane.xlu0 %1394 }
 0x3e8   :  { %v1396_v39 = vmul.f32 0.0078125, %v1395_v52 }
 0x3ea   :  { %v1402_v10 = vmul.f32 %v1396_v39, %v1396_v39 }
 0x3eb   :  { %v1400_v38 = vpop.xlane.xlu0 %1399 }
 0x3ec   :  { %v1401_v13 = vmul.f32 0.0078125, %v1400_v38  ;;  %v1404_v38 = vsub.f32 %v4139_v22, %v1396_v39  ;;  %v578_v22 = vmul.f32 %v4121_v3, %v4121_v3 }
 0x3ee   :  { %v3306_v20 = vpop.eup %3305  ;;  %v1403_v60 = vsub.f32 %v1401_v13, %v1402_v10  ;;  %v579_v44 = vsel %vm573_vm7, %v578_v22, 0.0  ;;  %v855_v10 = vmul.f32 %v4071_v8, %v4071_v8 }
 0x3ef   :  { %v4169_v37 = vmul.f32 %v3306_v20, %v1051_v56  ;;  %v851_v20 = vsel %vm573_vm7, %v4071_v8, 0.0 }
 0x3f0   :  { %v1405_v46 = vadd.f32 1e-05, %v1403_v60  ;;  %v1093_v60 = vpop.permute.xlu1 %1092 }
 0x3f1   :  { %1055 = vrot.lane.b32.xlu1 %v4169_v37, %s3381_s27  ;;  %1077 = vrot.lane.b32.xlu0 %v4169_v37, %s3390_s14  ;;  %v1067_v9 = vmul.f32 %v4169_v37, %v3656_v49 }
 0x3f2   :  { %3307 = vrsqrt.f32 %v1405_v46 }
 0x3f3   :  { %v1084_v19 = vmax.f32 %v1067_v9, 0.0 }
 0x3f4   :  { %v1104_v46 = vpop.permute.xlu1 %1103 }
 0x3f5   :  { %1058 = vrot.lane.b32.xlu1 %v4169_v37, %s3382_s28 }
 0x3f8   :  { %v1110_v15 = vpop.permute.xlu1 %1109 }
 0x3f9   :  { %1061 = vrot.lane.b32.xlu1 %v4169_v37, %s3383_s29 }
 0x3fc   :  { %v3308_v27 = vpop.eup %3307  ;;  %v4223_v57 = vpop.permute.xlu1 %1446 }
 0x3fd   :  { %v4180_v13 = vmul.f32 %v3308_v27, %v1404_v38  ;;  %1064 = vrot.lane.b32.xlu1 %v4169_v37, %s3384_s0  ;;  %v856_v38 = vsel %vm573_vm7, %v855_v10, 0.0 }
 0x3ff   :  { %1411 = vrot.lane.b32.xlu0 %v4180_v13, %s3382_s28 }
 0x400   :  { %v4230_v39 = vpop.permute.xlu1 %1451 }
 0x401   :  { %1068 = vrot.lane.b32.xlu1 %v4169_v37, %s3385_s1 }
 0x403   :  { %1421 = vrot.lane.b32.xlu0 %v4180_v13, %s3385_s1 }
 0x404   :  { %v1116_v56 = vpop.permute.xlu1 %1115 }
 0x405   :  { %1071 = vrot.lane.b32.xlu1 %v4169_v37, %s3386_s30 }
 0x407   :  { %1493 = vperm.xlu0 %3248, %v3054_v45   ;;  %v3036_v45 = vld [vmem:[%s5089_s11] ss:$0 sm:$0xff] }
 0x408   :  { %v4216_v61 = vmul.f32 %v3036_v45, %v4124_v14  ;;  %v4221_v4 = vmul.f32 %v3036_v45, %v4130_v41  ;;  %v574_v41 = vsel %vm573_vm7, %v4121_v3, 0.0 }
 0x409   :  { %1074 = vrot.lane.b32.xlu1 %v4169_v37, %s3387_s13 }
 0x40a   :  { %v604_v12 = vsel %vm573_vm7, %v4216_v61, 0.0  ;;  %v875_v50 = vsel %vm573_vm7, %v4221_v4, 0.0  ;;  %v879_v52 = vmul.f32 %v4221_v4, %v4221_v4  ;;  %v608_v27 = vmul.f32 %v4216_v61, %v4216_v61 }
 0x40b   :  { %1430 = vrot.lane.b32.xlu0 %v4180_v13, %s3390_s14 }
 0x40c   :  { %3252 = vset.pattern.permute.xlu0 %v5206_v59  ;;  %v880_v14 = vsel %vm573_vm7, %v879_v52, 0.0  ;;  %v609_v22 = vsel %vm573_vm7, %v608_v27, 0.0 }
 0x40d   :  { %1408 = vrot.lane.b32.xlu1 %v4180_v13, %s3381_s27 }
 0x411   :  { %1414 = vrot.lane.b32.xlu1 %v4180_v13, %s3383_s29 }
 0x415   :  { %1417 = vrot.lane.b32.xlu1 %v4180_v13, %s3384_s0 }
 0x419   :  { %1424 = vrot.lane.b32.xlu1 %v4180_v13, %s3386_s30 }
 0x41d   :  { %1427 = vrot.lane.b32.xlu1 %v4180_v13, %s3387_s13 }
 0x42a   :  { %852 = vadd.xlane.f32.xlu0 %v851_v20  ;;  %v1122_v20 = vpop.permute.xlu1 %1121 }
 0x42e   :  { %580 = vadd.xlane.f32.xlu0 %v579_v44  ;;  %v1128_v45 = vpop.permute.xlu1 %1127  ;;  %v166_v44 = vmul.f32 %v3492_v16, %v3492_v16 }
 0x432   :  { %605 = vadd.xlane.f32.xlu0 %v604_v12  ;;  %v4244_v12 = vpop.permute.xlu1 %1475 }
 0x436   :  { %876 = vadd.xlane.f32.xlu0 %v875_v50  ;;  %v1098_v50 = vpop.permute.xlu0 %1097  ;;  %v4246_v52 = vpop.permute.xlu1 %1481 }
 0x43a   :  { %881 = vadd.xlane.f32.xlu0 %v880_v14  ;;  %v4248_v14 = vpop.permute.xlu0 %1457 }
 0x43e   :  { %274 = vadd.xlane.f32.xlu0 %v3494_v17  ;;  %v4252_v10 = vpop.permute.xlu0 %1463 }
 0x441   :  { %575 = vadd.xlane.f32.xlu1 %v574_v41  ;;  %v4250_v41 = vpop.permute.xlu1 %1487 }
 0x442   :  { %v4254_v27 = vpop.permute.xlu0 %1469 }
 0x445   :  { %857 = vadd.xlane.f32.xlu1 %v856_v38 }
 0x446   :  { %v1134_v1 = vpop.permute.xlu0 %1133 }
 0x449   :  { %610 = vadd.xlane.f32.xlu1 %v609_v22 }
 0x44a   :  { %v1140_v23 = vpop.permute.xlu0 %1139 }
 0x44d   :  { %161 = vadd.xlane.f32.xlu1 %v3492_v16 }
 0x451   :  { %169 = vadd.xlane.f32.xlu1 %v166_v44 }
 0x463   :  { %v1056_v38 = vpop.permute.xlu1 %1055 }
 0x464   :  { %v1057_v34 = vmul.f32 %v1056_v38, %v3608_v2 }
 0x466   :  { %v1080_v30 = vmax.f32 %v1057_v34, 0.0 }
 0x467   :  { %v1059_v22 = vpop.permute.xlu1 %1058 }
 0x468   :  { %v1060_v11 = vmul.f32 %v1059_v22, %v3616_v7  ;;  %v1095_v28 = vmul.f32 %v1093_v60, %v1080_v30  ;;  %v1118_v30 = vmul.f32 %v1116_v56, %v1084_v19 }
 0x46a   :  { %v1081_v44 = vmax.f32 %v1060_v11, 0.0 }
 0x46b   :  { %v1062_v0 = vpop.permute.xlu1 %1061 }
 0x46c   :  { %v1063_v21 = vmul.f32 %v1062_v0, %v3627_v18  ;;  %v1100_v5 = vmul.f32 %v1098_v50, %v1081_v44 }
 0x46e   :  { %v1082_v53 = vmax.f32 %v1063_v21, 0.0  ;;  %v1101_v38 = vadd.f32 %v1100_v5, %v1095_v28  ;;  %v1078_v21 = vpop.permute.xlu0 %1077 }
 0x46f   :  { %v1065_v25 = vpop.permute.xlu1 %1064 }
 0x470   :  { %v1106_v32 = vmul.f32 %v1104_v46, %v1082_v53  ;;  %v1066_v24 = vmul.f32 %v1065_v25, %v3653_v48  ;;  %v1079_v25 = vmul.f32 %v1078_v21, %v3774_v54 }
 0x472   :  { %v1083_v36 = vmax.f32 %v1066_v24, 0.0  ;;  %v1107_v11 = vadd.f32 %v1106_v32, %v1101_v38  ;;  %v1412_v5 = vpop.permute.xlu0 %1411  ;;  %v1088_v32 = vmax.f32 %v1079_v25, 0.0 }
 0x473   :  { %v1069_v22 = vpop.permute.xlu1 %1068  ;;  %v1413_v38 = vmul.f32 %v1412_v5, %v3616_v7 }
 0x474   :  { %v1112_v6 = vmul.f32 %v1110_v15, %v1083_v36  ;;  %v1070_v34 = vmul.f32 %v1069_v22, %v3758_v47 }
 0x475   :  { %v1434_v21 = vmax.f32 %v1413_v38, 0.0 }
 0x476   :  { %v1113_v0 = vadd.f32 %v1112_v6, %v1107_v11  ;;  %v1085_v50 = vmax.f32 %v1070_v34, 0.0  ;;  %v1142_v11 = vmul.f32 %v1140_v23, %v1088_v32  ;;  %v1422_v34 = vpop.permute.xlu0 %1421 }
 0x477   :  { %v1072_v44 = vpop.permute.xlu1 %1071 }
 0x478   :  { %v1073_v53 = vmul.f32 %v1072_v44, %v3761_v51  ;;  %v1119_v60 = vadd.f32 %v1118_v30, %v1113_v0  ;;  %v1124_v46 = vmul.f32 %v1122_v20, %v1085_v50  ;;  %v1144_v30 = vld [vmem:[%s5087_s9] sm:$0xf] }
 0x47a   :  { %v1086_v37 = vmax.f32 %v1073_v53, 0.0  ;;  %v1125_v15 = vadd.f32 %v1124_v46, %v1119_v60  ;;  %v1420_v53 = vmul.f32 %v4180_v13, %v3656_v49  ;;  %v1454_v46 = vmul.f32 %v4230_v39, %v1434_v21 }
 0x47b   :  { %v1075_v28 = vpop.permute.xlu1 %1074 }
 0x47c   :  { %v1130_v24 = vmul.f32 %v1128_v45, %v1086_v37  ;;  %v1076_v36 = vmul.f32 %v1075_v28, %v3769_v33  ;;  %v1423_v37 = vmul.f32 %v1422_v34, %v3758_v47  ;;  %v1437_v13 = vmax.f32 %v1420_v53, 0.0 }
 0x47e   :  { %v1087_v9 = vmax.f32 %v1076_v36, 0.0  ;;  %v1131_v22 = vadd.f32 %v1130_v24, %v1125_v15  ;;  %v1438_v15 = vmax.f32 %v1423_v37, 0.0  ;;  %v1472_v38 = vmul.f32 %v4254_v27, %v1437_v13 }
 0x47f   :  { %v1409_v6 = vpop.permute.xlu1 %1408 }
 0x480   :  { %v1136_v19 = vmul.f32 %v1134_v1, %v1087_v9  ;;  %v1410_v56 = vmul.f32 %v1409_v6, %v3608_v2 }
 0x482   :  { %v1137_v0 = vadd.f32 %v1136_v19, %v1131_v22  ;;  %v1433_v20 = vmax.f32 %v1410_v56, 0.0 }
 0x483   :  { %v1415_v50 = vpop.permute.xlu1 %1414 }
 0x484   :  { %v1143_v44 = vadd.f32 %v1142_v11, %v1137_v0  ;;  %v1416_v45 = vmul.f32 %v1415_v50, %v3627_v18  ;;  %v1449_v1 = vmul.f32 %v4223_v57, %v1433_v20  ;;  %v1478_v11 = vmul.f32 %v4244_v12, %v1438_v15 }
 0x486   :  { %v1435_v25 = vmax.f32 %v1416_v45, 0.0  ;;  %3145 = vmatpush3.msk.msra.mxu1 %vm573_vm7, %v1143_v44  ;;  %v1494_v23 = vpop.permute.xlu0 %1493  ;;  %v1455_v57 = vadd.f32 %v1454_v46, %v1449_v1  ;;  %v3055_v1 = vld [vmem:[%s5087_s9 + $0x4] sm:$0xf] }
 0x487   :  { %v1418_v60 = vpop.permute.xlu1 %1417  ;;  %3147 = vmatmul.mubr.msk.f32.vlgmr.msra.gmra.mrb[2].mxu1 %vm963_vm6, %v1144_v30  ;;  %3154 = vmatprep.subr.mxu1 %v5192_v58 }
 0x488   :  { %v1460_v28 = vmul.f32 %v4248_v14, %v1435_v25  ;;  %v1419_v5 = vmul.f32 %v1418_v60, %v3653_v48  ;;  %3156 = vmatprep.mubr.msk.f32.mxu1 %vm3389_vm1, %v5192_v58 }
 0x48a   :  { %v1436_v24 = vmax.f32 %v1419_v5, 0.0  ;;  %v1431_v36 = vpop.permute.xlu0 %1430  ;;  %v1461_v9 = vadd.f32 %v1460_v28, %v1455_v57 }
 0x48b   :  { %v1425_v32 = vpop.permute.xlu1 %1424  ;;  %v1432_v14 = vmul.f32 %v1431_v36, %v3774_v54 }
 0x48c   :  { %v1466_v6 = vmul.f32 %v4252_v10, %v1436_v24  ;;  %v1426_v39 = vmul.f32 %v1425_v32, %v3761_v51 }
 0x48d   :  { %v1441_v20 = vmax.f32 %v1432_v14, 0.0 }
 0x48e   :  { %v1467_v22 = vadd.f32 %v1466_v6, %v1461_v9  ;;  %v1439_v19 = vmax.f32 %v1426_v39, 0.0 }
 0x48f   :  { %v1428_v56 = vpop.permute.xlu1 %1427  ;;  %v1496_v30 = vmul.f32 %v1494_v23, %v1441_v20 }
 0x490   :  { %v1473_v34 = vadd.f32 %v1472_v38, %v1467_v22  ;;  %v1429_v0 = vmul.f32 %v1428_v56, %v3769_v33  ;;  %v1484_v21 = vmul.f32 %v4246_v52, %v1439_v19 }
 0x492   :  { %v1479_v50 = vadd.f32 %v1478_v11, %v1473_v34  ;;  %v1440_v44 = vmax.f32 %v1429_v0, 0.0 }
 0x494   :  { %v1485_v10 = vadd.f32 %v1484_v21, %v1479_v50  ;;  %v1490_v45 = vmul.f32 %v4250_v41, %v1440_v44 }
 0x496   :  { %v1491_v27 = vadd.f32 %v1490_v45, %v1485_v10 }
 0x498   :  { %v1497_v53 = vadd.f32 %v1496_v30, %v1491_v27 }
 0x49a   :  { %3155 = vmatpush3.msk.msra.mxu1 %vm573_vm7, %v1497_v53  ;;  %v1927_v53 = vstv %s1920_s3  ;;  %s4422_s3 = sld [smem:[#allocation2 + $0x1]] }
 0x49b   :  { %3157 = vmatmul.mubr.msk.f32.vlgmr.msra.gmra.mrb[4].mxu1 %vm963_vm6, %v3055_v1  ;;  %3164 = vmatprep.subr.mxu1 %v5192_v58  ;;  %v2280_v1 = vstv %s2273_s2  ;;  %s4420_s2 = sld [smem:[#allocation4]] }
 0x49c   :  { %3166 = vmatprep.mubr.msk.f32.mxu1 %vm3389_vm1, %v5192_v58 }
 0x4a1   :  { %s894_s15 = smul.f32 %s4416_s22, %s4420_s2 }
 0x4a2   :  { %s892_s17 = smul.f32 %s4422_s3, %s4420_s2  ;;  %s3087_s3 = sld [smem:[#allocation2 + $0x203]] }
 0x4b7   :  { %v853_v12 = vpop.xlane.xlu0 %852 }
 0x4b8   :  { %v854_v13 = vmul.f32 0.0078125, %v853_v12  ;;  %v2282_v12 = vstv %s2275_s23  ;;  %s4426_s23 = sld [smem:[#allocation2 + $0x3]] }
 0x4ba   :  { %v860_v9 = vmul.f32 %v854_v13, %v854_v13  ;;  %v862_v10 = vsub.f32 %v4071_v8, %v854_v13  ;;  %v2281_v8 = vmul.f32 %v2280_v1, %v3551_v55 }
 0x4bb   :  { %v581_v52 = vpop.xlane.xlu0 %580 }
 0x4bc   :  { %v582_v24 = vmul.f32 0.0078125, %v581_v52 }
 0x4be   :  { %s896_s18 = smul.f32 %s4426_s23, %s4420_s2 }
 0x4bf   :  { %v606_v25 = vpop.xlane.xlu0 %605 }
 0x4c0   :  { %v607_v6 = vmul.f32 0.0078125, %v606_v25 }
 0x4c2   :  { %v613_v56 = vmul.f32 %v607_v6, %v607_v6 }
 0x4c3   :  { %v877_v41 = vpop.xlane.xlu0 %876 }
 0x4c4   :  { %v878_v60 = vmul.f32 0.0078125, %v877_v41  ;;  %v2285_v41 = vstv %s2277_s4  ;;  %s4430_s4 = sld [smem:[#allocation2 + $0x4]] }
 0x4c6   :  { %v884_v37 = vmul.f32 %v878_v60, %v878_v60  ;;  %v886_v45 = vsub.f32 %v4221_v4, %v878_v60 }
 0x4c7   :  { %v882_v23 = vpop.xlane.xlu0 %881 }
 0x4c8   :  { %v883_v46 = vmul.f32 0.0078125, %v882_v23  ;;  %v1925_v23 = vstv %s1918_s24  ;;  %s4428_s24 = sld [smem:[#allocation2 + $0x83]] }
 0x4ca   :  { %v885_v28 = vsub.f32 %v883_v46, %v884_v37  ;;  %v1930_v37 = vstv %s1922_s5 }
 0x4cc   :  { %v887_v32 = vadd.f32 1e-05, %v885_v28 }
 0x4ce   :  { %v576_v5 = vpop.xlane.xlu1 %575  ;;  %3309 = vrsqrt.f32 %v887_v32  ;;  %s1248_s10 = smul.f32 %s4428_s24, %s4410_s20 }
 0x4cf   :  { %v577_v57 = vmul.f32 0.0078125, %v576_v5  ;;  %v1926_v5 = vmul.f32 %v1925_v23, %v3530_v40  ;;  %v275_v23 = vpop.xlane.xlu0 %274 }
 0x4d1   :  { %v583_v36 = vmul.f32 %v577_v57, %v577_v57  ;;  %v585_v21 = vsub.f32 %v4121_v3, %v577_v57  ;;  %v615_v3 = vsub.f32 %v4216_v61, %v607_v6 }
 0x4d2   :  { %v858_v15 = vpop.xlane.xlu1 %857 }
 0x4d3   :  { %v584_v39 = vsub.f32 %v582_v24, %v583_v36  ;;  %v859_v38 = vmul.f32 0.0078125, %v858_v15 }
 0x4d5   :  { %v586_v22 = vadd.f32 1e-05, %v584_v39  ;;  %v861_v14 = vsub.f32 %v859_v38, %v860_v9 }
 0x4d6   :  { %v611_v19 = vpop.xlane.xlu1 %610 }
 0x4d7   :  { %3311 = vrsqrt.f32 %v586_v22  ;;  %v863_v11 = vadd.f32 1e-05, %v861_v14  ;;  %v612_v34 = vmul.f32 0.0078125, %v611_v19  ;;  %v3063_v14 = vld [vmem:[%s5084_s6 + $0x8] sm:$0xf] }
 0x4d8   :  { %v3310_v50 = vpop.eup %3309 }
 0x4d9   :  { %3313 = vrsqrt.f32 %v863_v11  ;;  %v614_v0 = vsub.f32 %v612_v34, %v613_v56  ;;  %v4318_v52 = vmul.f32 %v3310_v50, %v886_v45  ;;  %v4370_v50 = vld [vmem:[%s5084_s6 + $0x10] sm:$0xf] }
 0x4db   :  { %v616_v20 = vadd.f32 1e-05, %v614_v0  ;;  %v2286_v28 = vmul.f32 %v2285_v41, %v4318_v52  ;;  %v279_v0 = vmul.f32 %v3494_v17, %v3494_v17 }
 0x4dd   :  { %3315 = vrsqrt.f32 %v616_v20  ;;  %v3076_v20 = vld [vmem:[%s5084_s6 + $0xc] sm:$0xf]  ;;  %s4406_s6 = sld [smem:[#allocation2 + $0x82]] }
 0x4e1   :  { %v3312_v44 = vpop.eup %3311 }
 0x4e2   :  { %v4315_v30 = vmul.f32 %v3312_v44, %v585_v21  ;;  %v162_v21 = vpop.xlane.xlu1 %161 }
 0x4e3   :  { %v3314_v27 = vpop.eup %3313  ;;  %s1246_s5 = smul.f32 %s4406_s6, %s4410_s20 }
 0x4e4   :  { %v4320_v25 = vmul.f32 %v3314_v27, %v862_v10  ;;  %v1928_v46 = vmul.f32 %v1927_v53, %v4315_v30  ;;  %s898_s6 = smul.f32 %s4430_s4, %s4420_s2 }
 0x4e6   :  { %v2283_v4 = vmul.f32 %v2282_v12, %v4320_v25  ;;  %v1929_v24 = vadd.f32 %v1928_v46, %v1926_v5  ;;  %v170_v44 = vpop.xlane.xlu1 %169 }
 0x4e7   :  { %v3316_v60 = vpop.eup %3315 }
 0x4e8   :  { %v2284_v13 = vadd.f32 %v2283_v4, %v2281_v8  ;;  %v4328_v57 = vmul.f32 %v3316_v60, %v615_v3  ;;  %v4400_v3 = vmul.f32 0.0078125, %v162_v21  ;;  %v172_v4 = vmul.f32 0.0078125, %v170_v44 }
 0x4e9   :  { %v1253_v44 = vstv %s1246_s5 }
 0x4ea   :  { %v1931_v36 = vmul.f32 %v1930_v37, %v4328_v57  ;;  %v4331_v32 = vadd.f32 %v2286_v28, %v2284_v13  ;;  %v174_v60 = vmul.f32 %v4400_v3, %v4400_v3 }
 0x4ec   :  { %5212 = vst [vmem:[#allocation33_spill] sm:$0xff] %v4331_v32  ;;  %v4333_v61 = vadd.f32 %v1931_v36, %v1929_v24  ;;  %v176_v13 = vsub.f32 %v172_v4, %v174_v60  ;;  %v899_v4 = vstv %s892_s17  ;;  %v904_v60 = vstv %s896_s18 }
 0x4ee   :  { %5213 = vst [vmem:[#allocation34_spill] sm:$0xff] %v4333_v61 }
 0x55a   :  { %v4335_v15 = vpop.f32.mrb[2].mxu1 }
 0x55b   :  { %v1225_v9 = vmul.f32 %v4335_v15, %v4335_v15  ;;  %v3148_v6 = vpop.f32.mrb[3].mxu1  ;;  %v1221_v39 = vsel %vm573_vm7, %v4335_v15, 0.0 }
 0x55c   :  { %1222 = vadd.xlane.f32.xlu1 %v1221_v39  ;;  %v4424_v6 = vmul.f32 0.0078125, %v275_v23  ;;  %v1254_v23 = vmul.f32 %v1253_v44, %v4320_v25  ;;  %v900_v25 = vmul.f32 %v899_v4, %v3530_v40 }
 0x55d   :  { %v1226_v38 = vsel %vm573_vm7, %v1225_v9, 0.0 }
 0x560   :  { %1227 = vadd.xlane.f32.xlu1 %v1226_v38  ;;  %v180_v38 = vadd.f32 1e-05, %v176_v13 }
 0x56e   :  { %v4342_v22 = vpop.f32.mrb[4].mxu1 }
 0x56f   :  { %v1576_v19 = vsel %vm573_vm7, %v4342_v22, 0.0  ;;  %v1580_v56 = vmul.f32 %v4342_v22, %v4342_v22  ;;  %v3158_v11 = vpop.f32.mrb[5].mxu1 }
 0x570   :  { %1577 = vadd.xlane.f32.xlu0 %v1576_v19  ;;  %v287_v11 = vmul.f32 %v4424_v6, %v4424_v6 }
 0x571   :  { %1937 = vperm.xlu1 %3251, %v3063_v14   ;;  %v1581_v34 = vsel %vm573_vm7, %v1580_v56, 0.0 }
 0x574   :  { %1582 = vadd.xlane.f32.xlu0 %v1581_v34 }
 0x575   :  { %3253 = vset.pattern.permute.xlu1 %v5203_v43 }
 0x576   :  { %1948 = vperm.xlu1 %3253, %v3063_v14  }
 0x578   :  { %282 = vadd.xlane.f32.xlu0 %v279_v0 }
 0x57a   :  { %3254 = vset.pattern.permute.xlu1 %v5204_v31 }
 0x57b   :  { %1954 = vperm.xlu1 %3254, %v3063_v14  }
 0x57f   :  { %3255 = vset.pattern.permute.xlu1 %v5205_v29 }
 0x580   :  { %2292 = vperm.xlu1 %3255, %v3076_v20  }
 0x584   :  { %3256 = vset.pattern.permute.xlu1 %v5206_v59 }
 0x585   :  { %2297 = vperm.xlu1 %3256, %v3076_v20  }
 0x589   :  { %3257 = vset.pattern.permute.xlu1 %v5207_v42 }
 0x58a   :  { %1960 = vperm.xlu1 %3257, %v3063_v14  }
 0x58e   :  { %1942 = vperm.xlu0 %3252, %v3063_v14   ;;  %3258 = vset.pattern.permute.xlu1 %v5203_v43 }
 0x58f   :  { %2303 = vperm.xlu1 %3258, %v3076_v20  }
 0x592   :  { %3263 = vset.pattern.permute.xlu0 %v5207_v42 }
 0x593   :  { %2315 = vperm.xlu0 %3263, %v3076_v20   ;;  %3259 = vset.pattern.permute.xlu1 %v5208_v63 }
 0x594   :  { %1966 = vperm.xlu1 %3259, %v3063_v14  }
 0x597   :  { %3267 = vset.pattern.permute.xlu0 %v5211_v26 }
 0x598   :  { %1984 = vperm.xlu0 %3267, %v3063_v14   ;;  %3260 = vset.pattern.permute.xlu1 %v5204_v31 }
 0x599   :  { %2309 = vperm.xlu1 %3260, %v3076_v20  }
 0x59c   :  { %3268 = vset.pattern.permute.xlu0 %v5208_v63 }
 0x59d   :  { %2321 = vperm.xlu0 %3268, %v3076_v20   ;;  %3261 = vset.pattern.permute.xlu1 %v5206_v59 }
 0x59e   :  { %2655 = vperm.xlu1 %3261, %v4370_v50  }
 0x5a1   :  { %2679 = vperm.xlu0 %3268, %v4370_v50  }
 0x5a2   :  { %3262 = vset.pattern.permute.xlu1 %v5209_v35 }
 0x5a3   :  { %1972 = vperm.xlu1 %3262, %v3063_v14  }
 0x5a5   :  { %3272 = vset.pattern.permute.xlu0 %v5205_v29 }
 0x5a6   :  { %2650 = vperm.xlu0 %3272, %v4370_v50  }
 0x5a7   :  { %3264 = vset.pattern.permute.xlu1 %v5203_v43 }
 0x5a8   :  { %2661 = vperm.xlu1 %3264, %v4370_v50  }
 0x5ac   :  { %3265 = vset.pattern.permute.xlu1 %v5210_v62 }
 0x5ad   :  { %1978 = vperm.xlu1 %3265, %v3063_v14  }
 0x5b1   :  { %3266 = vset.pattern.permute.xlu1 %v5204_v31 }
 0x5b2   :  { %2667 = vperm.xlu1 %3266, %v4370_v50  }
 0x5b6   :  { %3269 = vset.pattern.permute.xlu1 %v5209_v35 }
 0x5b7   :  { %2327 = vperm.xlu1 %3269, %v3076_v20  }
 0x5bb   :  { %3270 = vset.pattern.permute.xlu1 %v5207_v42 }
 0x5bc   :  { %2673 = vperm.xlu1 %3270, %v4370_v50  }
 0x5c0   :  { %3271 = vset.pattern.permute.xlu1 %v5210_v62 }
 0x5c1   :  { %2333 = vperm.xlu1 %3271, %v3076_v20  }
 0x5c5   :  { %3273 = vset.pattern.permute.xlu1 %v5211_v26 }
 0x5c6   :  { %2339 = vperm.xlu1 %3273, %v3076_v20  }
 0x5ca   :  { %3274 = vset.pattern.permute.xlu1 %v5209_v35 }
 0x5cb   :  { %2685 = vperm.xlu1 %3274, %v4370_v50  }
 0x5cf   :  { %3275 = vset.pattern.permute.xlu1 %v5210_v62 }
 0x5e9   :  { %v1223_v10 = vpop.xlane.xlu1 %1222 }
 0x5ea   :  { %v4394_v53 = vmul.f32 0.0078125, %v1223_v10 }
 0x5ec   :  { %v1230_v41 = vmul.f32 %v4394_v53, %v4394_v53 }
 0x5ed   :  { %v1228_v45 = vpop.xlane.xlu1 %1227 }
 0x5ee   :  { %v1229_v12 = vmul.f32 0.0078125, %v1228_v45 }
 0x5f0   :  { %v1231_v46 = vsub.f32 %v1229_v12, %v1230_v41  ;;  %v901_v12 = vstv %s894_s15  ;;  %v1251_v41 = vstv %s1244_s26 }
 0x5f1   :  { %v4392_v27 = vpop.permute.xlu1 %1937  ;;  %v1252_v13 = vmul.f32 %v1251_v41, %v3551_v55 }
 0x5f2   :  { %v1233_v28 = vadd.f32 1e-05, %v1231_v46  ;;  %v1232_v46 = vsub.f32 %v4335_v15, %v4394_v53  ;;  %v905_v15 = vmul.f32 %v904_v60, %v4328_v57 }
 0x5f4   :  { %3317 = vrsqrt.f32 %v1233_v28  ;;  %v902_v28 = vmul.f32 %v901_v12, %v4315_v30  ;;  %v178_v30 = vsub.f32 %v3492_v16, %v4400_v3 }
 0x5f5   :  { %v4396_v1 = vpop.permute.xlu1 %1948  ;;  %3319 = vrsqrt.f32 %v180_v38  ;;  %v1239_v38 = vstv %s4420_s2  ;;  %s3086_s2 = sld [smem:[#allocation2 + $0x202]] }
 0x5f6   :  { %v1240_v57 = vmul.f32 %v1239_v38, %v3530_v40 }
 0x5fa   :  { %v4402_v8 = vpop.permute.xlu1 %1954 }
 0x5fd   :  { %v1578_v37 = vpop.xlane.xlu0 %1577 }
 0x5fe   :  { %v4408_v5 = vmul.f32 0.0078125, %v1578_v37  ;;  %v3318_v45 = vpop.eup %3317 }
 0x5ff   :  { %v4414_v24 = vpop.permute.xlu1 %2292 }
 0x600   :  { %v1585_v36 = vmul.f32 %v4408_v5, %v4408_v5  ;;  %v1587_v53 = vsub.f32 %v4342_v22, %v4408_v5  ;;  %v291_v5 = vsub.f32 %v3494_v17, %v4424_v6 }
 0x601   :  { %v1583_v9 = vpop.xlane.xlu0 %1582 }
 0x602   :  { %v1584_v39 = vmul.f32 0.0078125, %v1583_v9  ;;  %v1594_v9 = vstv %s4410_s20  ;;  %s4487_s20 = sld [smem:[#allocation4 + $0x4]] }
 0x604   :  { %v1586_v14 = vsub.f32 %v1584_v39, %v1585_v36  ;;  %v4432_v19 = vpop.permute.xlu1 %2297  ;;  %v1235_v36 = vmul.f32 %v3318_v45, %v1232_v46  ;;  %v1256_v39 = vstv %s1248_s10 }
 0x605   :  { %v283_v56 = vpop.xlane.xlu0 %282  ;;  %v1257_v44 = vmul.f32 %v1256_v39, %v4318_v52  ;;  %v5214_v52 = vld [vmem:[#allocation10_spill] sm:$0xff] }
 0x606   :  { %v1588_v34 = vadd.f32 1e-05, %v1586_v14  ;;  %v285_v0 = vmul.f32 0.0078125, %v283_v56  ;;  %v1236_v14 = vstv %s898_s6  ;;  %v3320_v56 = vpop.eup %3319 }
 0x607   :  { %v1237_v45 = vmul.f32 %v1236_v14, %v1235_v36  ;;  %v184_v22 = vmul.f32 %v3320_v56, %v178_v30  ;;  %v2623_v30 = vstv %s4300_s16 }
 0x608   :  { %3321 = vrsqrt.f32 %v1588_v34  ;;  %v289_v20 = vsub.f32 %v285_v0, %v287_v11  ;;  %v1255_v11 = vadd.f32 %v1254_v23, %v1252_v13  ;;  %v1591_v0 = vstv %s1250_s21  ;;  %s2633_s24 = smul.f32 %s3086_s2, %s4487_s20 }
 0x609   :  { %v4446_v21 = vpop.permute.xlu1 %1960  ;;  %s2635_s4 = smul.f32 %s3087_s3, %s4487_s20 }
 0x60a   :  { %v293_v10 = vadd.f32 1e-05, %v289_v20  ;;  %v1595_v20 = vmul.f32 %v1594_v9, %v3551_v55  ;;  %v1258_v3 = vadd.f32 %v1257_v44, %v1255_v11 }
 0x60c   :  { %3323 = vrsqrt.f32 %v293_v10  ;;  %v903_v10 = vadd.f32 %v902_v28, %v900_v25  ;;  %v1598_v60 = vadd.f32 %v1595_v20, %v1240_v57  ;;  %v5215_v28 = vmax.f32 %v5214_v52, 0.0 }
 0x60d   :  { %v1943_v41 = vpop.permute.xlu0 %1942  ;;  %v2268_v25 = vstv %s4304_s19 }
 0x60e   :  { %v4459_v37 = vpop.permute.xlu1 %2303  ;;  %v906_v16 = vadd.f32 %v905_v15, %v903_v10  ;;  %v1945_v13 = vmul.f32 %v1943_v41, %v5215_v28  ;;  %v2270_v15 = vmul.f32 %v2268_v25, %v184_v22  ;;  %v1615_v10 = vrot.slane %v1598_v60, 5 }
 0x610   :  { %v1238_v36 = vadd.f32 %v1237_v45, %v906_v16 }
 0x612   :  { %v3322_v34 = vpop.eup %3321 }
 0x613   :  { %v1590_v12 = vmul.f32 %v3322_v34, %v1587_v53  ;;  %v4473_v23 = vpop.permute.xlu1 %1966  ;;  %v1241_v53 = vmul.f32 %v1239_v38, %v184_v22  ;;  %v5216_v34 = vld [vmem:[#allocation9_spill] sm:$0xff]  ;;  %v2624_v38 = vmul.f32 %v2623_v30, %v3551_v55 }
 0x614   :  { %v5217_v32 = vmax.f32 %v5216_v34, 0.0 }
 0x615   :  { %v1592_v46 = vmul.f32 %v1591_v0, %v1590_v12  ;;  %v1601_v0 = vrot.slane %v1598_v60, 3  ;;  %v5218_v12 = vld [vmem:[#allocation11_spill] sm:$0xff] }
 0x616   :  { %v3324_v4 = vpop.eup %3323  ;;  %v1940_v56 = vmul.f32 %v4392_v27, %v5217_v32  ;;  %v5219_v41 = vmax.f32 %v5218_v12, 0.0 }
 0x617   :  { %v1593_v39 = vadd.f32 %v1592_v46, %v1258_v3  ;;  %v297_v14 = vmul.f32 %v3324_v4, %v291_v5  ;;  %v1619_v3 = vrot.slane %v1598_v60, 2 }
 0x618   :  { %v4485_v61 = vpop.permute.xlu1 %2309  ;;  %v1946_v20 = vadd.f32 %v1945_v13, %v1940_v56  ;;  %v1951_v32 = vmul.f32 %v4396_v1, %v5219_v41 }
 0x619   :  { %v1597_v17 = vadd.f32 %v1593_v39, %v1238_v36  ;;  %v1596_v6 = vmul.f32 %v1594_v9, %v297_v14  ;;  %v2625_v11 = vmul.f32 %v2623_v30, %v297_v14  ;;  %v5220_v39 = vld [vmem:[#allocation14_spill] sm:$0xff] }
 0x61a   :  { %v1952_v46 = vadd.f32 %v1951_v32, %v1946_v20  ;;  %v5221_v14 = vmax.f32 %v5220_v39, 0.0 }
 0x61b   :  { %v1613_v44 = vrot.slane %v1597_v17, 2  ;;  %v1599_v45 = vadd.f32 %v1596_v6, %v1241_v53  ;;  %v1624_v27 = vsel %vm1623_vm9, %v1597_v17, %v1601_v0  ;;  %v2628_v57 = vadd.f32 %v2625_v11, %v2270_v15 }
 0x61c   :  { %v1609_v4 = vrot.slane %v1597_v17, 5  ;;  %v1617_v52 = vrot.slane %v1597_v17, 7  ;;  %v1957_v53 = vmul.f32 %v4402_v8, %v5221_v14  ;;  %v2269_v17 = vmul.f32 %v2268_v25, %v3530_v40  ;;  %v5223_v25 = vld [vmem:[#allocation15_spill] sm:$0xff] }
 0x61d   :  { %v1604_v9 = vrot.slane %v1599_v45, 6  ;;  %v1606_v22 = vrot.slane %v1599_v45, 1  ;;  %v1611_v5 = vrot.slane %v1599_v45, 3  ;;  %v4494_v16 = vpop.permute.xlu1 %2655  ;;  %v1636_v55 = vsel %vm1623_vm9, %v1613_v44, %v1615_v10 }
 0x61e   :  { %v1637_v28 = vsel %vm1625_vm10, %v1636_v55, %v1599_v45  ;;  %v1621_v34 = vrot.slane %v1599_v45, 5  ;;  %v2981_v6 = vstv %s4487_s20  ;;  %v1958_v10 = vadd.f32 %v1957_v53, %v1952_v46 }
 0x61f   :  { %v1626_v1 = vsel %vm1625_vm10, %v1624_v27, %v1604_v9  ;;  %v1638_v36 = vsel %vm1627_vm11, %v1637_v28, %v1611_v5  ;;  %v2627_v12 = vadd.f32 %v2624_v38, %v2269_v17  ;;  %v5224_v32 = vmax.f32 %v5223_v25, 0.0 }
 0x620   :  { %v1628_v13 = vsel %vm1627_vm11, %v1626_v1, %v1606_v22  ;;  %v1639_v30 = vsel %vm573_vm7, %v1638_v36, %v1617_v52  ;;  %v5231_v36 = vld [vmem:[#allocation27_spill] sm:$0xff] }
 0x621   :  { %v1629_v56 = vsel %vm573_vm7, %v1628_v13, %v1609_v4  ;;  %v1640_v15 = vsel %vm1630_vm12, %v1639_v30, %v1619_v3  ;;  %v1963_v38 = vmul.f32 %v4446_v21, %v5224_v32  ;;  %v5227_v3 = vld [vmem:[#allocation25_spill] sm:$0xff]  ;;  %v5229_v4 = vld [vmem:[#allocation26_spill] sm:$0xff]  ;;  %v5232_v39 = vmax.f32 %v5231_v36, 0.0 }
 0x622   :  { %v1631_v11 = vsel %vm1630_vm12, %v1629_v56, %v1598_v60  ;;  %v1973_v0 = vpop.permute.xlu1 %1972  ;;  %v1641_v44 = vsel %vm1632_vm13, %v1640_v15, %v1621_v34  ;;  %v5228_v55 = vmax.f32 %v5227_v3, 0.0  ;;  %v5230_v21 = vmax.f32 %v5229_v4, 0.0  ;;  %v5243_v3 = vld [vmem:[#allocation16_spill] sm:$0xff] }
 0x623   :  { %v1633_v20 = vsel %vm1632_vm13, %v1631_v11, %v1611_v5  ;;  %v1642_v41 = vsel %vm1634_vm14, %v1641_v44, %v1599_v45  ;;  %v2316_v45 = vpop.permute.xlu0 %2315  ;;  %v1964_v22 = vadd.f32 %v1963_v38, %v1958_v10  ;;  %v5235_v11 = vld [vmem:[#allocation18_spill] sm:$0xff] }
 0x624   :  { %v4513_v8 = vsel %vm1634_vm14, %v1633_v20, %v1604_v9  ;;  %1644 = vst [vmem:[%s5090_s12 + $0x8] sm:$0xff] %v1642_v41  ;;  %v2983_v60 = vmul.f32 %v2981_v6, %v1642_v41  ;;  %v1969_v46 = vmul.f32 %v4473_v23, %v5228_v55  ;;  %v1975_v52 = vmul.f32 %v1973_v0, %v5230_v21  ;;  %v5233_v23 = vld [vmem:[#allocation29_spill] sm:$0xff]  ;;  %v5237_v20 = vld [vmem:[#allocation19_spill] sm:$0xff]  ;;  %v5245_v21 = vld [vmem:[#allocation28_spill] sm:$0xff] }
 0x625   :  { %5222 = vst [vmem:[#allocation10_spill] sm:$0xff] %v4513_v8  ;;  %1643 = vst [vmem:[%s5090_s12] sm:$0xff] %v4513_v8  ;;  %v2982_v40 = vmul.f32 %v2981_v6, %v4513_v8  ;;  %1648 = vrot.lane.b32.xlu0 %v4513_v8, %s3382_s28  ;;  %1645 = vrot.lane.b32.xlu1 %v4513_v8, %s3381_s27  ;;  %v5234_v53 = vmax.f32 %v5233_v23, 0.0  ;;  %v3064_v6 = vld [vmem:[%s5085_s7 + $0x8] sm:$0xf]  ;;  %v5236_v15 = vmax.f32 %v5235_v11, 0.0  ;;  %v5238_v44 = vmax.f32 %v5237_v20, 0.0 }
 0x626   :  { %v4533_v9 = vadd.f32 %v2983_v60, %v2628_v57  ;;  %v1970_v1 = vadd.f32 %v1969_v46, %v1964_v22  ;;  %v5244_v55 = vmax.f32 %v5243_v3, 0.0 }
 0x627   :  { %v4531_v27 = vadd.f32 %v2982_v40, %v2627_v12  ;;  %v4535_v5 = vpop.permute.xlu1 %2661  ;;  %v1985_v28 = vpop.permute.xlu0 %1984  ;;  %v2300_v0 = vmul.f32 %v4432_v19, %v5236_v15  ;;  %v2295_v10 = vmul.f32 %v4414_v24, %v5238_v44  ;;  %v5239_v12 = vld [vmem:[#allocation23_spill] sm:$0xff]  ;;  %v5241_v19 = vld [vmem:[#allocation24_spill] sm:$0xff] }
 0x628   :  { %5226 = vst [vmem:[#allocation11_spill] sm:$0xff] %v4533_v9  ;;  %v1976_v13 = vadd.f32 %v1975_v52, %v1970_v1  ;;  %v1987_v34 = vmul.f32 %v1985_v28, %v5234_v53  ;;  %v5240_v41 = vmax.f32 %v5239_v12, 0.0  ;;  %v5242_v60 = vmax.f32 %v5241_v19, 0.0  ;;  %v5247_v28 = vld [vmem:[#allocation30_spill] sm:$0xff] }
 0x629   :  { %5225 = vst [vmem:[#allocation9_spill] sm:$0xff] %v4531_v27  ;;  %1654 = vrot.lane.b32.xlu0 %v4513_v8, %s3384_s0  ;;  %1651 = vrot.lane.b32.xlu1 %v4513_v8, %s3383_s29  ;;  %v2318_v46 = vmul.f32 %v2316_v45, %v5244_v55  ;;  %v5246_v52 = vmax.f32 %v5245_v21, 0.0  ;;  %v3077_v45 = vld [vmem:[%s5085_s7 + $0xc] sm:$0xf] }
 0x62a   :  { %v2306_v40 = vmul.f32 %v4459_v37, %v5240_v41  ;;  %v2312_v25 = vmul.f32 %v4485_v61, %v5242_v60 }
 0x62b   :  { %v2322_v38 = vpop.permute.xlu0 %2321 }
 0x62c   :  { %v1979_v57 = vpop.permute.xlu1 %1978  ;;  %v2324_v1 = vmul.f32 %v2322_v38, %v5246_v52 }
 0x62d   :  { %v1981_v14 = vmul.f32 %v1979_v57, %v5232_v39  ;;  %1658 = vrot.lane.b32.xlu0 %v4513_v8, %s3385_s1  ;;  %2691 = vperm.xlu1 %3275, %v4370_v50   ;;  %v5248_v57 = vmax.f32 %v5247_v28, 0.0  ;;  %v5249_v39 = vld [vmem:[#allocation31_spill] sm:$0xff] }
 0x62f   :  { %v1982_v56 = vadd.f32 %v1981_v14, %v1976_v13  ;;  %v5250_v14 = vmax.f32 %v5249_v39, 0.0 }
 0x631   :  { %v1988_v30 = vadd.f32 %v1987_v34, %v1982_v56  ;;  %1661 = vrot.lane.b32.xlu0 %v4513_v8, %s3386_s30  ;;  %3276 = vset.pattern.permute.xlu1 %v5211_v26  ;;  %v4556_v17 = vpop.permute.xlu1 %2667 }
 0x632   :  { %2697 = vperm.xlu1 %3276, %v4370_v50   ;;  %v2301_v50 = vadd.f32 %v2300_v0, %v2295_v10  ;;  %v4602_v0 = vpop.permute.xlu0 %2679  ;;  %v4610_v10 = vmul.f32 %v4513_v8, %v3656_v49 }
 0x633   :  { %3160 = vmatpush3.msk.msra.mxu0 %vm573_vm7, %v1988_v30  ;;  %v5251_v30 = vld [vmem:[#allocation32_spill] sm:$0xff] }
 0x634   :  { %3162 = vmatmul.mubr.msk.f32.vlgmr.msra.gmra.mrb[6].mxu0 %vm963_vm6, %v3064_v6  ;;  %3169 = vmatprep.subr.mxu0 %v5192_v58  ;;  %v2307_v37 = vadd.f32 %v2306_v40, %v2301_v50  ;;  %v5252_v6 = vmax.f32 %v5251_v30, 0.0  ;;  %v1674_v12 = vmax.f32 %v4610_v10, 0.0 }
 0x635   :  { %1664 = vrot.lane.b32.xlu0 %v4513_v8, %s3387_s13  ;;  %3171 = vmatprep.mubr.msk.f32.mxu0 %vm3389_vm1, %v5192_v58 }
 0x636   :  { %1667 = vrot.lane.b32.xlu1 %v4513_v8, %s3390_s14  ;;  %v2328_v24 = vpop.permute.xlu1 %2327  ;;  %v2313_v32 = vadd.f32 %v2312_v25, %v2307_v37  ;;  %v4604_v20 = vpop.permute.xlu0 %2650 }
 0x637   :  { %3277 = vset.pattern.permute.xlu1 %v5206_v59  ;;  %v2330_v61 = vmul.f32 %v2328_v24, %v5248_v57 }
 0x638   :  { %v2319_v4 = vadd.f32 %v2318_v46, %v2313_v32 }
 0x63a   :  { %v2325_v36 = vadd.f32 %v2324_v1, %v2319_v4 }
 0x63b   :  { %v2674_v22 = vpop.permute.xlu1 %2673 }
 0x63c   :  { %v2331_v53 = vadd.f32 %v2330_v61, %v2325_v36  ;;  %v4619_v60 = vmul.f32 %v2674_v22, %v1674_v12 }
 0x640   :  { %v2334_v13 = vpop.permute.xlu1 %2333 }
 0x641   :  { %v2336_v23 = vmul.f32 %v2334_v13, %v5250_v14 }
 0x643   :  { %v2337_v56 = vadd.f32 %v2336_v23, %v2331_v53 }
 0x645   :  { %v2340_v34 = vpop.permute.xlu1 %2339 }
 0x646   :  { %v2342_v11 = vmul.f32 %v2340_v34, %v5252_v6 }
 0x648   :  { %v2343_v15 = vadd.f32 %v2342_v11, %v2337_v56 }
 0x64a   :  { %3170 = vmatpush3.msk.msra.mxu0 %vm573_vm7, %v2343_v15  ;;  %v4606_v44 = vpop.permute.xlu1 %2685 }
 0x64b   :  { %3172 = vmatmul.mubr.msk.f32.vlgmr.msra.gmra.mrb[8].mxu0 %vm963_vm6, %v3077_v45  ;;  %3179 = vmatprep.subr.mxu0 %v5192_v58 }
 0x64c   :  { %3181 = vmatprep.mubr.msk.f32.mxu0 %vm3389_vm1, %v5192_v58 }
 0x697   :  { %v1649_v41 = vpop.permute.xlu0 %1648  ;;  %v1646_v40 = vpop.permute.xlu1 %1645 }
 0x698   :  { %v4614_v50 = vmul.f32 %v1649_v41, %v3616_v7  ;;  %v4617_v19 = vmul.f32 %v1646_v40, %v3608_v2 }
 0x69a   :  { %v1704_v25 = vrot.slane %v4614_v50, 7  ;;  %v1705_v24 = vrot.slane %v4614_v50, 1  ;;  %v1706_v37 = vrot.slane %v4614_v50, 2  ;;  %v1712_v38 = vsel %vm68_vm2, %v4614_v50, -inf }
 0x69b   :  { %v1680_v3 = vrot.slane %v4617_v19, 1  ;;  %v1681_v55 = vrot.slane %v4617_v19, 2  ;;  %v1682_v46 = vrot.slane %v4617_v19, 3  ;;  %v1687_v22 = vsel %vm68_vm2, %v4617_v19, -inf  ;;  %v1655_v4 = vpop.permute.xlu0 %1654  ;;  %v1652_v57 = vpop.permute.xlu1 %1651 }
 0x69c   :  { %v1711_v21 = vsel %vm68_vm2, %v1704_v25, -inf  ;;  %v1713_v52 = vsel %vm68_vm2, %v1705_v24, -inf  ;;  %v4639_v1 = vsel %vm68_vm2, %v1706_v37, -inf  ;;  %v1892_v28 = vadd.f32 %v4614_v50, %v4617_v19 }
 0x69d   :  { %v1719_v61 = vrot.slane %v1711_v21, 1  ;;  %v1721_v13 = vrot.slane %v1713_v52, 7  ;;  %v1688_v39 = vsel %vm68_vm2, %v1680_v3, -inf  ;;  %v1689_v14 = vsel %vm68_vm2, %v1681_v55, -inf }
 0x69e   :  { %v4650_v23 = vsel %vm68_vm2, %v1682_v46, -inf  ;;  %v1695_v53 = vrot.slane %v1688_v39, 7  ;;  %v4653_v34 = vmul.f32 %v1655_v4, %v3653_v48  ;;  %v1697_v30 = vrot.slane %v1689_v14, 6 }
 0x69f   :  { %v1720_v56 = vsel %vm387_vm3, %v1712_v38, %v1719_v61  ;;  %v4658_v11 = vmul.f32 %v1652_v57, %v3627_v18  ;;  %v1659_v15 = vpop.permute.xlu0 %1658 }
 0x6a0   :  { %v4661_v45 = vsel %vm390_vm4, %v1721_v13, %v1720_v56  ;;  %v1696_v12 = vsel %vm387_vm3, %v1695_v53, %v1687_v22  ;;  %v1752_v41 = vrot.slane %v4653_v34, 5  ;;  %v1753_v40 = vrot.slane %v4653_v34, 6 }
 0x6a1   :  { %v4667_v25 = vsel %vm390_vm4, %v1697_v30, %v1696_v12  ;;  %v1754_v24 = vrot.slane %v4653_v34, 7  ;;  %v4673_v37 = vsel %vm68_vm2, %v4653_v34, -inf  ;;  %v1728_v38 = vrot.slane %v4658_v11, 6 }
 0x6a2   :  { %v4678_v3 = vsel %vm68_vm2, %v1752_v41, -inf  ;;  %v4682_v55 = vsel %vm68_vm2, %v1753_v40, -inf  ;;  %v1729_v46 = vrot.slane %v4658_v11, 7  ;;  %v1730_v22 = vrot.slane %v4658_v11, 1 }
 0x6a3   :  { %v4688_v4 = vsel %vm68_vm2, %v1754_v24, -inf  ;;  %v1735_v57 = vsel %vm68_vm2, %v1728_v38, -inf  ;;  %v1662_v61 = vpop.permute.xlu0 %1661  ;;  %v1737_v14 = vsel %vm68_vm2, %v4658_v11, -inf  ;;  %v1893_v41 = vadd.f32 %v1892_v28, %v4658_v11 }
 0x6a4   :  { %v1736_v39 = vsel %vm68_vm2, %v1729_v46, -inf  ;;  %v1738_v53 = vsel %vm68_vm2, %v1730_v22, -inf  ;;  %v1743_v56 = vrot.slane %v1735_v57, 2  ;;  %v1660_v40 = vmul.f32 %v1659_v15, %v3758_v47 }
 0x6a5   :  { %v1744_v30 = vrot.slane %v1736_v39, 1  ;;  %v1747_v12 = vrot.slane %v1738_v53, 7  ;;  %v4705_v24 = vmul.f32 %v1662_v61, %v3761_v51  ;;  %v1670_v38 = vmax.f32 %v4617_v19, 0.0 }
 0x6a6   :  { %v1671_v46 = vmax.f32 %v4614_v50, 0.0  ;;  %v1672_v52 = vmax.f32 %v4658_v11, 0.0  ;;  %v1673_v22 = vmax.f32 %v4653_v34, 0.0  ;;  %v1894_v57 = vadd.f32 %v1893_v41, %v4653_v34 }
 0x6a7   :  { %v1745_v13 = vsel %vm387_vm3, %v1744_v30, %v1743_v56  ;;  %v1776_v28 = vrot.slane %v1660_v40, 3  ;;  %v1777_v53 = vrot.slane %v1660_v40, 4  ;;  %v1778_v15 = vrot.slane %v1660_v40, 5  ;;  %v1665_v36 = vpop.permute.xlu0 %1664 }
 0x6a8   :  { %v1746_v39 = vsel %vm390_vm4, %v1737_v14, %v1745_v13  ;;  %v1779_v21 = vrot.slane %v1660_v40, 6  ;;  %v1802_v61 = vrot.slane %v4705_v24, 2  ;;  %v1803_v19 = vrot.slane %v4705_v24, 3 }
 0x6a9   :  { %v1804_v50 = vrot.slane %v4705_v24, 4  ;;  %v1784_v11 = vsel %vm68_vm2, %v1776_v28, -inf  ;;  %v1785_v56 = vsel %vm68_vm2, %v1777_v53, -inf  ;;  %v1786_v34 = vsel %vm68_vm2, %v1778_v15, -inf }
 0x6aa   :  { %v1805_v13 = vrot.slane %v4705_v24, 5  ;;  %v1792_v14 = vrot.slane %v1784_v11, 5  ;;  %v1793_v30 = vrot.slane %v1785_v56, 4  ;;  %v1795_v41 = vrot.slane %v1786_v34, 3 }
 0x6ab   :  { %v1810_v6 = vsel %vm68_vm2, %v1802_v61, -inf  ;;  %v1811_v9 = vsel %vm68_vm2, %v1803_v19, -inf  ;;  %v4729_v28 = vmul.f32 %v1665_v36, %v3769_v33  ;;  %v1675_v58 = vmax.f32 %v1660_v40, 0.0 }
 0x6ac   :  { %v1818_v27 = vrot.slane %v1810_v6, 6  ;;  %v2692_v53 = vpop.permute.xlu1 %2691  ;;  %v1819_v51 = vrot.slane %v1811_v9, 5  ;;  %v1676_v15 = vmax.f32 %v4705_v24, 0.0  ;;  %v2653_v47 = vmul.f32 %v4604_v20, %v1670_v38 }
 0x6ad   :  { %v2658_v11 = vmul.f32 %v4494_v16, %v1671_v46  ;;  %v1828_v56 = vrot.slane %v4729_v28, 1  ;;  %v1829_v61 = vrot.slane %v4729_v28, 2  ;;  %v1830_v34 = vrot.slane %v4729_v28, 3 }
 0x6ae   :  { %v1677_v6 = vmax.f32 %v4729_v28, 0.0  ;;  %v2664_v36 = vmul.f32 %v4535_v5, %v1672_v52  ;;  %v2670_v33 = vmul.f32 %v4556_v17, %v1673_v22  ;;  %v2682_v9 = vmul.f32 %v4602_v0, %v1675_v58 }
 0x6af   :  { %v2659_v19 = vadd.f32 %v2658_v11, %v2653_v47  ;;  %v2688_v8 = vmul.f32 %v4606_v44, %v1676_v15  ;;  %v1895_v16 = vadd.f32 %v1894_v57, %v4610_v10  ;;  %v5254_v38 = vrot.slane %v4650_v23, 5 }
 0x6b0   :  { %v2694_v20 = vmul.f32 %v2692_v53, %v1677_v6  ;;  %v5255_v5 = vrot.slane %v4639_v1, 6  ;;  %v1748_v58 = vsel %vm393_vm5, %v1747_v12, %v1746_v39  ;;  %v5256_v44 = vrot.slane %v4678_v3, 3 }
 0x6b1   :  { %v1700_v46 = vsel %vm393_vm5, %v5254_v38, %v4667_v25  ;;  %v2665_v48 = vadd.f32 %v2664_v36, %v2659_v19  ;;  %v2698_v49 = vpop.permute.xlu1 %2697  ;;  %v1896_v0 = vadd.f32 %v1895_v16, %v1660_v40  ;;  %v5257_v52 = vrot.slane %v4682_v55, 2 }
 0x6b2   :  { %v1702_v47 = vmax.f32 %v4610_v10, %v1700_v46  ;;  %v1724_v17 = vsel %vm393_vm5, %v5255_v5, %v4661_v45  ;;  %v1787_v25 = vsel %vm68_vm2, %v1779_v21, -inf  ;;  %v1794_v22 = vsel %vm387_vm3, %v1793_v30, %v1792_v14 }
 0x6b3   :  { %v1769_v23 = vsel %vm387_vm3, %v5257_v52, %v5256_v44  ;;  %v2671_v10 = vadd.f32 %v2670_v33, %v2665_v48  ;;  %v5258_v1 = vrot.slane %v4688_v4, 1  ;;  %v1796_v12 = vsel %vm390_vm4, %v1795_v41, %v1794_v22 }
 0x6b4   :  { %v1726_v57 = vmax.f32 %v1702_v47, %v1724_v17  ;;  %v1897_v40 = vadd.f32 %v1896_v0, %v4705_v24  ;;  %v1797_v55 = vrot.slane %v1787_v25, 2  ;;  %v1812_v39 = vsel %vm68_vm2, %v1804_v50, -inf }
 0x6b5   :  { %v1771_v45 = vsel %vm390_vm4, %v5258_v1, %v1769_v23  ;;  %v2677_v21 = vadd.f32 %v4619_v60, %v2671_v10  ;;  %v1668_v14 = vpop.permute.xlu1 %1667  ;;  %v1813_v33 = vsel %vm68_vm2, %v1805_v13, -inf  ;;  %v1820_v4 = vsel %vm387_vm3, %v1819_v51, %v1818_v27 }
 0x6b6   :  { %v1772_v3 = vsel %vm393_vm5, %v4673_v37, %v1771_v45  ;;  %v1750_v48 = vmax.f32 %v1726_v57, %v1748_v58  ;;  %v1669_v30 = vmul.f32 %v1668_v14, %v3774_v54  ;;  %v1898_v24 = vadd.f32 %v1897_v40, %v4729_v28 }
 0x6b7   :  { %v1798_v41 = vsel %vm393_vm5, %v1797_v55, %v1796_v12  ;;  %v1821_v37 = vrot.slane %v1812_v39, 4  ;;  %v2683_v53 = vadd.f32 %v2682_v9, %v2677_v21  ;;  %v1823_v11 = vrot.slane %v1813_v33, 3 }
 0x6b8   :  { %v1774_v15 = vmax.f32 %v1750_v48, %v1772_v3  ;;  %v1831_v50 = vrot.slane %v4729_v28, 4  ;;  %v1678_v60 = vmax.f32 %v1669_v30, 0.0  ;;  %v4778_v6 = vadd.f32 %v1898_v24, %v1669_v30 }
 0x6b9   :  { %v1822_v19 = vsel %vm390_vm4, %v1821_v37, %v1820_v4  ;;  %v2689_v13 = vadd.f32 %v2688_v8, %v2683_v53  ;;  %v1836_v27 = vsel %vm68_vm2, %v1828_v56, -inf  ;;  %v1854_v16 = vrot.slane %v1669_v30, 1  ;;  %v3090_v56 = vld [vmem:[%s5085_s7 + $0x10] sm:$0xf] }
 0x6ba   :  { %v1800_v36 = vmax.f32 %v1774_v15, %v1798_v41  ;;  %v1824_v51 = vsel %vm393_vm5, %v1823_v11, %v1822_v19  ;;  %v2700_v38 = vmul.f32 %v2698_v49, %v1678_v60  ;;  %v1837_v9 = vsel %vm68_vm2, %v1829_v61, -inf  ;;  %v4818_v15 = vld [vmem:[%s5086_s8 + $0x8] sm:$0xf]  ;;  %v4825_v11 = vld [vmem:[%s5086_s8 + $0xc] sm:$0xf] }
 0x6bb   :  { %v1838_v28 = vsel %vm68_vm2, %v1830_v34, -inf  ;;  %v2695_v46 = vadd.f32 %v2694_v20, %v2689_v13  ;;  %v1839_v5 = vsel %vm68_vm2, %v1831_v50, -inf  ;;  %v1844_v8 = vrot.slane %v1836_v27, 7 }
 0x6bc   :  { %v1826_v47 = vmax.f32 %v1800_v36, %v1824_v51  ;;  %v1845_v17 = vrot.slane %v1837_v9, 6  ;;  %v1847_v58 = vrot.slane %v1838_v28, 5  ;;  %v1855_v49 = vrot.slane %v1669_v30, 2 }
 0x6bd   :  { %v2701_v0 = vadd.f32 %v2700_v38, %v2695_v46  ;;  %v1856_v44 = vrot.slane %v1669_v30, 3  ;;  %v1849_v52 = vrot.slane %v1839_v5, 4  ;;  %v1862_v34 = vsel %vm69_vm8, %v1854_v16, -inf }
 0x6be   :  { %v1846_v61 = vsel %vm387_vm3, %v1845_v17, %v1844_v8  ;;  %v1863_v20 = vsel %vm69_vm8, %v1855_v49, -inf  ;;  %v1869_v22 = vrot.slane %v1862_v34, 7  ;;  %v1861_v57 = vsel %vm69_vm8, %v1669_v30, -inf }
 0x6bf   :  { %3180 = vmatpush3.msk.msra.mxu0 %vm573_vm7, %v2701_v0  ;;  %v1848_v32 = vsel %vm390_vm4, %v1847_v58, %v1846_v61  ;;  %v1864_v25 = vsel %vm69_vm8, %v1856_v44, -inf  ;;  %v1871_v1 = vrot.slane %v1863_v20, 6 }
 0x6c0   :  { %3182 = vmatmul.mubr.msk.f32.vlgmr.msra.gmra.mrb[10].mxu0 %vm963_vm6, %v3090_v56  ;;  %v1850_v10 = vsel %vm393_vm5, %v1849_v52, %v1848_v32  ;;  %v1870_v12 = vsel %vm387_vm3, %v1869_v22, %v1861_v57  ;;  %v1873_v40 = vrot.slane %v1864_v25, 5  ;;  %v3341_v52 = vld [vmem:[%s5089_s11] ss:$0 sm:$0xff] }
 0x6c1   :  { %v1852_v45 = vmax.f32 %v1826_v47, %v1850_v10  ;;  %v1872_v3 = vsel %vm390_vm4, %v1871_v1, %v1870_v12  ;;  %v4864_v23 = vmul.f32 %v3341_v52, %v4778_v6  ;;  %v4894_v1 = vld [vmem:[%s5086_s8 + $0x10] sm:$0xf]  ;;  %s3085_s8 = sld [smem:[#allocation2 + $0x201]] }
 0x6c2   :  { %v1874_v55 = vsel %vm393_vm5, %v1873_v40, %v1872_v3 }
 0x6c3   :  { %v4809_v39 = vmax.f32 %v1852_v45, %v1874_v55  ;;  %v1905_v34 = vmul.f32 %v4864_v23, %v4864_v23  ;;  %v1901_v10 = vsel %vm573_vm7, %v4864_v23, 0.0 }
 0x6c5   :  { %v1906_v32 = vsel %vm573_vm7, %v1905_v34, 0.0  ;;  %v1881_v20 = vmul.f32 %v4809_v39, %v4809_v39 }
 0x6c7   :  { %v1882_v22 = vsel %vm573_vm7, %v1881_v20, 0.0  ;;  %s2631_s23 = smul.f32 %s3085_s8, %s4487_s20 }
 0x707   :  { %v2063_v21 = vpop.f32.mrb[6].mxu0 }
 0x708   :  { %v2071_v14 = vmul.f32 %v2063_v21, %v2063_v21  ;;  %v3163_v48 = vpop.f32.mrb[7].mxu0  ;;  %v2067_v33 = vsel %vm573_vm7, %v2063_v21, 0.0 }
 0x709   :  { %2068 = vadd.xlane.f32.xlu0 %v2067_v33 }
 0x70a   :  { %v2072_v4 = vsel %vm573_vm7, %v2071_v14, 0.0 }
 0x70b   :  { %2073 = vadd.xlane.f32.xlu1 %v2072_v4 }
 0x71e   :  { %v2418_v30 = vpop.f32.mrb[8].mxu0 }
 0x71f   :  { %v2422_v24 = vsel %vm573_vm7, %v2418_v30, 0.0  ;;  %v2426_v41 = vmul.f32 %v2418_v30, %v2418_v30  ;;  %v3173_v37 = vpop.f32.mrb[9].mxu0 }
 0x720   :  { %2423 = vadd.xlane.f32.xlu0 %v2422_v24 }
 0x721   :  { %v2427_v53 = vsel %vm573_vm7, %v2426_v41, 0.0 }
 0x724   :  { %2428 = vadd.xlane.f32.xlu0 %v2427_v53 }
 0x73a   :  { %2120 = vperm.xlu0 %3272, %v4818_v15  }
 0x73e   :  { %3283 = vset.pattern.permute.xlu0 %v5203_v43 }
 0x73f   :  { %2486 = vperm.xlu0 %3283, %v4825_v11  }
 0x743   :  { %3285 = vset.pattern.permute.xlu0 %v5204_v31 }
 0x793   :  { %v4829_v50 = vpop.f32.mrb[10].mxu0 }
 0x794   :  { %v3183_v60 = vpop.f32.mrb[11].mxu0  ;;  %v2784_v25 = vmul.f32 %v4829_v50, %v4829_v50  ;;  %v2780_v57 = vsel %vm573_vm7, %v4829_v50, 0.0 }
 0x796   :  { %v2069_v19 = vpop.xlane.xlu0 %2068  ;;  %v2785_v6 = vsel %vm573_vm7, %v2784_v25, 0.0 }
 0x797   :  { %v2070_v13 = vmul.f32 0.0078125, %v2069_v19 }
 0x798   :  { %v2074_v36 = vpop.xlane.xlu1 %2073 }
 0x799   :  { %v2076_v51 = vmul.f32 %v2070_v13, %v2070_v13  ;;  %v2075_v27 = vmul.f32 0.0078125, %v2074_v36  ;;  %v2078_v9 = vsub.f32 %v2063_v21, %v2070_v13 }
 0x79b   :  { %v2077_v16 = vsub.f32 %v2075_v27, %v2076_v51  ;;  %v5260_v27 = vld [vmem:[#allocation13_spill] sm:$0xff] }
 0x79d   :  { %v2079_v38 = vadd.f32 1e-05, %v2077_v16  ;;  %v5261_v16 = vld [vmem:[#allocation12_spill] sm:$0xff] }
 0x79f   :  { %3325 = vrsqrt.f32 %v2079_v38 }
 0x7a9   :  { %v3326_v28 = vpop.eup %3325 }
 0x7aa   :  { %v4831_v46 = vmul.f32 %v3326_v28, %v2078_v9 }
 0x7ac   :  { %2082 = vrot.lane.b32.xlu1 %v4831_v46, %s3381_s27 }
 0x7ad   :  { %v2424_v47 = vpop.xlane.xlu0 %2423 }
 0x7ae   :  { %v2425_v5 = vmul.f32 0.0078125, %v2424_v47 }
 0x7b0   :  { %v2431_v8 = vmul.f32 %v2425_v5, %v2425_v5  ;;  %2125 = vperm.xlu1 %3277, %v4818_v15   ;;  %v2433_v49 = vsub.f32 %v2418_v30, %v2425_v5 }
 0x7b1   :  { %v2429_v17 = vpop.xlane.xlu0 %2428 }
 0x7b2   :  { %v2430_v58 = vmul.f32 0.0078125, %v2429_v17 }
 0x7b4   :  { %v2432_v0 = vsub.f32 %v2430_v58, %v2431_v8  ;;  %3278 = vset.pattern.permute.xlu1 %v5203_v43 }
 0x7b5   :  { %2131 = vperm.xlu1 %3278, %v4818_v15  }
 0x7b6   :  { %v2434_v56 = vadd.f32 1e-05, %v2432_v0 }
 0x7b8   :  { %3327 = vrsqrt.f32 %v2434_v56 }
 0x7b9   :  { %2085 = vrot.lane.b32.xlu1 %v4831_v46, %s3382_s28  ;;  %v2121_v3 = vpop.permute.xlu0 %2120 }
 0x7ba   :  { %3279 = vset.pattern.permute.xlu1 %v5204_v31 }
 0x7bd   :  { %2137 = vperm.xlu1 %3279, %v4818_v15  }
 0x7c1   :  { %3280 = vset.pattern.permute.xlu1 %v5205_v29 }
 0x7c2   :  { %v3328_v44 = vpop.eup %3327  ;;  %2475 = vperm.xlu1 %3280, %v4825_v11  }
 0x7c3   :  { %v4844_v61 = vmul.f32 %v3328_v44, %v2433_v49 }
 0x7c5   :  { %2440 = vrot.lane.b32.xlu0 %v4844_v61, %s3382_s28 }
 0x7c6   :  { %3281 = vset.pattern.permute.xlu1 %v5206_v59 }
 0x7c7   :  { %2480 = vperm.xlu1 %3281, %v4825_v11  }
 0x7cb   :  { %2088 = vrot.lane.b32.xlu1 %v4831_v46, %s3383_s29 }
 0x7cc   :  { %3282 = vset.pattern.permute.xlu1 %v5207_v42 }
 0x7cf   :  { %2143 = vperm.xlu1 %3282, %v4818_v15  }
 0x7d3   :  { %2091 = vrot.lane.b32.xlu1 %v4831_v46, %s3384_s0 }
 0x7d4   :  { %3284 = vset.pattern.permute.xlu1 %v5208_v63 }
 0x7d7   :  { %2437 = vrot.lane.b32.xlu1 %v4844_v61, %s3381_s27 }
 0x7db   :  { %2149 = vperm.xlu1 %3284, %v4818_v15  }
 0x7df   :  { %3286 = vset.pattern.permute.xlu1 %v5205_v29  ;;  %v1877_v29 = vsel %vm573_vm7, %v4809_v39, 0.0 }
 0x7e4   :  { %1907 = vadd.xlane.f32.xlu0 %v1906_v32 }
 0x7e8   :  { %1883 = vadd.xlane.f32.xlu0 %v1882_v22 }
 0x7ec   :  { %2786 = vadd.xlane.f32.xlu0 %v2785_v6 }
 0x7ff   :  { %1902 = vadd.xlane.f32.xlu1 %v1901_v10 }
 0x802   :  { %2492 = vperm.xlu0 %3285, %v4825_v11  }
 0x803   :  { %1878 = vadd.xlane.f32.xlu1 %v1877_v29 }
 0x806   :  { %2443 = vrot.lane.b32.xlu0 %v4844_v61, %s3383_s29 }
 0x807   :  { %2781 = vadd.xlane.f32.xlu1 %v2780_v57  ;;  %3289 = vset.pattern.permute.xlu0 %v5207_v42 }
 0x80a   :  { %2498 = vperm.xlu0 %3289, %v4825_v11  }
 0x80e   :  { %2446 = vrot.lane.b32.xlu0 %v4844_v61, %s3384_s0 }
 0x80f   :  { %3292 = vset.pattern.permute.xlu0 %v5208_v63 }
 0x812   :  { %2504 = vperm.xlu0 %3292, %v4825_v11  }
 0x816   :  { %3295 = vset.pattern.permute.xlu0 %v5209_v35 }
 0x817   :  { %2510 = vperm.xlu0 %3295, %v4825_v11  }
 0x818   :  { %2833 = vperm.xlu1 %3286, %v4894_v1  }
 0x81b   :  { %2450 = vrot.lane.b32.xlu0 %v4844_v61, %s3385_s1 }
 0x81c   :  { %3287 = vset.pattern.permute.xlu1 %v5206_v59 }
 0x81d   :  { %2838 = vperm.xlu1 %3287, %v4894_v1  }
 0x81e   :  { %v2083_v45 = vpop.permute.xlu1 %2082 }
 0x81f   :  { %v2084_v12 = vmul.f32 %v2083_v45, %v3608_v2  ;;  %2453 = vrot.lane.b32.xlu0 %v4844_v61, %s3386_s30 }
 0x821   :  { %v2107_v40 = vmax.f32 %v2084_v12, 0.0  ;;  %3288 = vset.pattern.permute.xlu1 %v5209_v35 }
 0x822   :  { %2155 = vperm.xlu1 %3288, %v4818_v15  }
 0x823   :  { %v2123_v55 = vmul.f32 %v2121_v3, %v2107_v40  ;;  %2868 = vperm.xlu0 %3295, %v4894_v1  }
 0x826   :  { %3290 = vset.pattern.permute.xlu1 %v5203_v43  ;;  %v4919_v43 = vpop.permute.xlu0 %2486 }
 0x827   :  { %2844 = vperm.xlu1 %3290, %v4894_v1   ;;  %3299 = vset.pattern.permute.xlu0 %v5210_v62 }
 0x828   :  { %2516 = vperm.xlu0 %3299, %v4825_v11  }
 0x82b   :  { %2095 = vrot.lane.b32.xlu1 %v4831_v46, %s3385_s1 }
 0x82c   :  { %3291 = vset.pattern.permute.xlu1 %v5210_v62 }
 0x82f   :  { %2161 = vperm.xlu1 %3291, %v4818_v15   ;;  %v2126_v59 = vpop.permute.xlu1 %2125 }
 0x833   :  { %3293 = vset.pattern.permute.xlu1 %v5204_v31 }
 0x834   :  { %2850 = vperm.xlu1 %3293, %v4894_v1   ;;  %v2132_v35 = vpop.permute.xlu1 %2131 }
 0x837   :  { %v2441_v4 = vpop.permute.xlu0 %2440 }
 0x838   :  { %2098 = vrot.lane.b32.xlu1 %v4831_v46, %s3386_s30  ;;  %v2086_v21 = vpop.permute.xlu1 %2085  ;;  %v2442_v30 = vmul.f32 %v2441_v4, %v3616_v7 }
 0x839   :  { %v2087_v14 = vmul.f32 %v2086_v21, %v3616_v7  ;;  %3294 = vset.pattern.permute.xlu1 %v5211_v26 }
 0x83a   :  { %v2463_v41 = vmax.f32 %v2442_v30, 0.0 }
 0x83b   :  { %v2108_v48 = vmax.f32 %v2087_v14, 0.0 }
 0x83c   :  { %2167 = vperm.xlu1 %3294, %v4818_v15   ;;  %v2138_v62 = vpop.permute.xlu1 %2137 }
 0x83d   :  { %v2128_v33 = vmul.f32 %v2126_v59, %v2108_v48 }
 0x83f   :  { %v2129_v31 = vadd.f32 %v2128_v33, %v2123_v55 }
 0x840   :  { %3296 = vset.pattern.permute.xlu1 %v5207_v42 }
 0x841   :  { %2856 = vperm.xlu1 %3296, %v4894_v1   ;;  %v2476_v24 = vpop.permute.xlu1 %2475 }
 0x845   :  { %2101 = vrot.lane.b32.xlu1 %v4831_v46, %s3387_s13 }
 0x846   :  { %v2481_v37 = vpop.permute.xlu1 %2480  ;;  %3297 = vset.pattern.permute.xlu1 %v5208_v63  ;;  %v2094_v63 = vmul.f32 %v4831_v46, %v5260_v27 }
 0x847   :  { %v2483_v53 = vmul.f32 %v2481_v37, %v2463_v41 }
 0x848   :  { %v2111_v47 = vmax.f32 %v2094_v63, 0.0 }
 0x849   :  { %2862 = vperm.xlu1 %3297, %v4894_v1  }
 0x84a   :  { %v2089_v15 = vpop.permute.xlu1 %2088 }
 0x84b   :  { %v2090_v60 = vmul.f32 %v2089_v15, %v3627_v18  ;;  %v2640_v15 = vstv %s2633_s24 }
 0x84d   :  { %v2109_v19 = vmax.f32 %v2090_v60, 0.0  ;;  %2104 = vrot.lane.b32.xlu1 %v4831_v46, %s3390_s14 }
 0x84e   :  { %v2144_v42 = vpop.permute.xlu1 %2143  ;;  %3298 = vset.pattern.permute.xlu1 %v5211_v26 }
 0x84f   :  { %v2134_v13 = vmul.f32 %v2132_v35, %v2109_v19  ;;  %v2146_v17 = vmul.f32 %v2144_v42, %v2111_v47  ;;  %v2643_v19 = vstv %s2635_s4  ;;  %v5262_v42 = vld [vmem:[#allocation10_spill] sm:$0xff] }
 0x851   :  { %v2135_v36 = vadd.f32 %v2134_v13, %v2129_v31  ;;  %2522 = vperm.xlu1 %3298, %v4825_v11  }
 0x852   :  { %v2092_v51 = vpop.permute.xlu1 %2091 }
 0x853   :  { %v2093_v38 = vmul.f32 %v2092_v51, %v5261_v16 }
 0x855   :  { %v2110_v9 = vmax.f32 %v2093_v38, 0.0  ;;  %2456 = vrot.lane.b32.xlu1 %v4844_v61, %s3387_s13 }
 0x856   :  { %v2438_v28 = vpop.permute.xlu1 %2437 }
 0x857   :  { %v2140_v5 = vmul.f32 %v2138_v62, %v2110_v9  ;;  %v2439_v8 = vmul.f32 %v2438_v28, %v3608_v2 }
 0x859   :  { %v2141_v58 = vadd.f32 %v2140_v5, %v2135_v36  ;;  %v2462_v0 = vmax.f32 %v2439_v8, 0.0  ;;  %v5263_v5 = vld [vmem:[#allocation20_spill] sm:$0xff] }
 0x85a   :  { %v2150_v46 = vpop.permute.xlu1 %2149 }
 0x85b   :  { %v2478_v56 = vmul.f32 %v2476_v24, %v2462_v0  ;;  %v4944_v11 = vadd.f32 %v2146_v17, %v2141_v58 }
 0x85d   :  { %v4946_v49 = vadd.f32 %v2483_v53, %v2478_v56  ;;  %v2638_v53 = vstv %s2631_s23 }
 0x85e   :  { %v2639_v13 = vmul.f32 %v2638_v53, %v5262_v42 }
 0x871   :  { %v1908_v44 = vpop.xlane.xlu0 %1907 }
 0x872   :  { %v1909_v32 = vmul.f32 0.0078125, %v1908_v44 }
 0x875   :  { %v1884_v25 = vpop.xlane.xlu0 %1883 }
 0x876   :  { %v1885_v29 = vmul.f32 0.0078125, %v1884_v25 }
 0x879   :  { %v2787_v12 = vpop.xlane.xlu0 %2786 }
 0x87a   :  { %v2788_v3 = vmul.f32 0.0078125, %v2787_v12 }
 0x88c   :  { %v1903_v52 = vpop.xlane.xlu1 %1902 }
 0x88d   :  { %v1904_v34 = vmul.f32 0.0078125, %v1903_v52 }
 0x88f   :  { %v1910_v20 = vmul.f32 %v1904_v34, %v1904_v34  ;;  %v1912_v4 = vsub.f32 %v4864_v23, %v1904_v34 }
 0x890   :  { %v1879_v22 = vpop.xlane.xlu1 %1878 }
 0x891   :  { %v1911_v6 = vsub.f32 %v1909_v32, %v1910_v20  ;;  %v1880_v10 = vmul.f32 0.0078125, %v1879_v22  ;;  %v5264_v20 = vld [vmem:[#allocation21_spill] sm:$0xff] }
 0x893   :  { %v1913_v57 = vadd.f32 1e-05, %v1911_v6  ;;  %v1886_v45 = vmul.f32 %v1880_v10, %v1880_v10  ;;  %v1888_v41 = vsub.f32 %v4809_v39, %v1880_v10 }
 0x894   :  { %v2782_v40 = vpop.xlane.xlu1 %2781 }
 0x895   :  { %3329 = vrsqrt.f32 %v1913_v57  ;;  %v1887_v55 = vsub.f32 %v1885_v29, %v1886_v45  ;;  %v2783_v59 = vmul.f32 0.0078125, %v2782_v40 }
 0x897   :  { %v1889_v35 = vadd.f32 1e-05, %v1887_v55  ;;  %v2789_v21 = vmul.f32 %v2783_v59, %v2783_v59  ;;  %v2791_v51 = vsub.f32 %v4829_v50, %v2783_v59 }
 0x898   :  { %v4948_v14 = vpop.permute.xlu1 %2833 }
 0x899   :  { %3331 = vrsqrt.f32 %v1889_v35  ;;  %v2790_v48 = vsub.f32 %v2788_v3, %v2789_v21 }
 0x89b   :  { %v2792_v62 = vadd.f32 1e-05, %v2790_v48  ;;  %v3068_v48 = vld [vmem:[%s5087_s9 + $0x8] sm:$0xf] }
 0x89c   :  { %v4950_v33 = vpop.permute.xlu1 %2838 }
 0x89d   :  { %3333 = vrsqrt.f32 %v2792_v62  ;;  %v5266_v62 = vmov 0.0  }
 0x89f   :  { %v3330_v31 = vpop.eup %3329 }
 0x8a0   :  { %v1915_v30 = vmul.f32 %v3330_v31, %v1912_v4  ;;  %v2493_v4 = vpop.permute.xlu0 %2492 }
 0x8a1   :  { %v2156_v24 = vpop.permute.xlu1 %2155 }
 0x8a2   :  { %v2644_v38 = vmul.f32 %v2643_v19, %v1915_v30 }
 0x8a3   :  { %v3332_v37 = vpop.eup %3331 }
 0x8a4   :  { %v1891_v60 = vmul.f32 %v3332_v37, %v1888_v41  ;;  %v2444_v31 = vpop.permute.xlu0 %2443 }
 0x8a6   :  { %v2641_v36 = vmul.f32 %v2640_v15, %v1891_v60  ;;  %v4959_v63 = vpop.permute.xlu1 %2844  ;;  %v2445_v15 = vmul.f32 %v2444_v31, %v3627_v18 }
 0x8a7   :  { %v3334_v23 = vpop.eup %3333 }
 0x8a8   :  { %v2642_v9 = vadd.f32 %v2641_v36, %v2639_v13  ;;  %v2794_v28 = vmul.f32 %v3334_v23, %v2791_v51  ;;  %v2499_v30 = vpop.permute.xlu0 %2498  ;;  %v2464_v13 = vmax.f32 %v2445_v15, 0.0 }
 0x8aa   :  { %v4961_v47 = vadd.f32 %v2644_v38, %v2642_v9  ;;  %2798 = vrot.lane.b32.xlu0 %v2794_v28, %s3382_s28  ;;  %2795 = vrot.lane.b32.xlu1 %v2794_v28, %s3381_s27  ;;  %v2096_v39 = vpop.permute.xlu1 %2095  ;;  %v2489_v23 = vmul.f32 %v4919_v43, %v2464_v13 }
 0x8ab   :  { %v2097_v8 = vmul.f32 %v2096_v39, %v5263_v5 }
 0x8ad   :  { %v2112_v17 = vmax.f32 %v2097_v8, 0.0 }
 0x8ae   :  { %2801 = vrot.lane.b32.xlu0 %v2794_v28, %s3383_s29  ;;  %2459 = vrot.lane.b32.xlu1 %v4844_v61, %s3390_s14  ;;  %v2162_v50 = vpop.permute.xlu1 %2161 }
 0x8af   :  { %v2152_v58 = vmul.f32 %v2150_v46, %v2112_v17  ;;  %v2807_v46 = vmul.f32 %v2794_v28, %v5260_v27  ;;  %v2490_v17 = vadd.f32 %v2489_v23, %v4946_v49 }
 0x8b1   :  { %v2153_v0 = vadd.f32 %v2152_v58, %v4944_v11  ;;  %v2824_v11 = vmax.f32 %v2807_v46, 0.0 }
 0x8b2   :  { %2874 = vperm.xlu0 %3299, %v4894_v1   ;;  %2804 = vrot.lane.b32.xlu1 %v2794_v28, %s3384_s0 }
 0x8b3   :  { %v4972_v56 = vpop.permute.xlu1 %2850 }
 0x8b6   :  { %2808 = vrot.lane.b32.xlu1 %v2794_v28, %s3385_s1  ;;  %3300 = vset.pattern.permute.xlu0 %v5211_v26  ;;  %v5265_v26 = vld [vmem:[#allocation22_spill] sm:$0xff] }
 0x8b7   :  { %v2099_v44 = vpop.permute.xlu1 %2098  ;;  %2880 = vperm.xlu0 %3300, %v4894_v1  }
 0x8b8   :  { %v2100_v25 = vmul.f32 %v2099_v44, %v5264_v20 }
 0x8ba   :  { %2811 = vrot.lane.b32.xlu1 %v2794_v28, %s3386_s30  ;;  %v2113_v10 = vmax.f32 %v2100_v25, 0.0 }
 0x8bb   :  { %v2168_v52 = vpop.permute.xlu1 %2167 }
 0x8bc   :  { %v2158_v57 = vmul.f32 %v2156_v24, %v2113_v10  ;;  %v2447_v24 = vpop.permute.xlu0 %2446 }
 0x8bd   :  { %v2448_v60 = vmul.f32 %v2447_v24, %v5261_v16 }
 0x8be   :  { %2814 = vrot.lane.b32.xlu1 %v2794_v28, %s3387_s13  ;;  %v2159_v3 = vadd.f32 %v2158_v57, %v2153_v0 }
 0x8bf   :  { %v2465_v36 = vmax.f32 %v2448_v60, 0.0 }
 0x8c0   :  { %v2857_v34 = vpop.permute.xlu1 %2856  ;;  %v2505_v41 = vpop.permute.xlu0 %2504 }
 0x8c1   :  { %v4980_v32 = vmul.f32 %v2857_v34, %v2824_v11  ;;  %v2495_v39 = vmul.f32 %v2493_v4, %v2465_v36 }
 0x8c2   :  { %2817 = vrot.lane.b32.xlu1 %v2794_v28, %s3390_s14  ;;  %v2449_v28 = vmul.f32 %v4844_v61, %v5260_v27  ;;  %s3075_s14 = sld [smem:[#allocation2 + $0x184]] }
 0x8c4   :  { %v2102_v22 = vpop.permute.xlu1 %2101  ;;  %v2511_v37 = vpop.permute.xlu0 %2510  ;;  %v2466_v44 = vmax.f32 %v2449_v28, 0.0 }
 0x8c5   :  { %v2103_v6 = vmul.f32 %v2102_v22, %v5265_v26 }
 0x8c6   :  { %v2501_v11 = vmul.f32 %v2499_v30, %v2466_v44 }
 0x8c7   :  { %v2114_v29 = vmax.f32 %v2103_v6, 0.0 }
 0x8c8   :  { %v4985_v1 = vpop.permute.xlu1 %2862  ;;  %v2451_v53 = vpop.permute.xlu0 %2450  ;;  %s2279_s5 = smul.f32 %s3075_s14, %s4300_s16 }
 0x8c9   :  { %v2164_v12 = vmul.f32 %v2162_v50, %v2114_v29  ;;  %v2452_v38 = vmul.f32 %v2451_v53, %v5263_v5 }
 0x8cb   :  { %v2165_v59 = vadd.f32 %v2164_v12, %v2159_v3  ;;  %v2467_v50 = vmax.f32 %v2452_v38, 0.0 }
 0x8cc   :  { %v2105_v45 = vpop.permute.xlu1 %2104  ;;  %v2454_v19 = vpop.permute.xlu0 %2453 }
 0x8cd   :  { %v2106_v40 = vmul.f32 %v2105_v45, %v3774_v54  ;;  %v2455_v8 = vmul.f32 %v2454_v19, %v5264_v20  ;;  %v2507_v43 = vmul.f32 %v2505_v41, %v2467_v50 }
 0x8cf   :  { %v2115_v55 = vmax.f32 %v2106_v40, 0.0  ;;  %v2468_v46 = vmax.f32 %v2455_v8, 0.0 }
 0x8d0   :  { %v2523_v42 = vpop.permute.xlu1 %2522  ;;  %v4998_v51 = vpop.permute.xlu0 %2868 }
 0x8d1   :  { %v2170_v35 = vmul.f32 %v2168_v52, %v2115_v55  ;;  %v2496_v52 = vadd.f32 %v2495_v39, %v2490_v17  ;;  %v2513_v10 = vmul.f32 %v2511_v37, %v2468_v46 }
 0x8d3   :  { %v2171_v21 = vadd.f32 %v2170_v35, %v2165_v59  ;;  %v2502_v27 = vadd.f32 %v2501_v11, %v2496_v52 }
 0x8d4   :  { %v2457_v9 = vpop.permute.xlu1 %2456  ;;  %v2517_v0 = vpop.permute.xlu0 %2516 }
 0x8d5   :  { %3165 = vmatpush3.msk.msra.mxu1 %vm573_vm7, %v2171_v21  ;;  %v2458_v58 = vmul.f32 %v2457_v9, %v5265_v26  ;;  %v2508_v29 = vadd.f32 %v2507_v43, %v2502_v27 }
 0x8d6   :  { %3167 = vmatmul.mubr.msk.f32.vlgmr.msra.gmra.mrb[6].mxu1 %vm963_vm6, %v3068_v48  ;;  %3174 = vmatprep.subr.mxu1 %v5266_v62 }
 0x8d7   :  { %3176 = vmatprep.mubr.msk.f32.mxu1 %vm3389_vm1, %v5266_v62  ;;  %v2469_v34 = vmax.f32 %v2458_v58, 0.0  ;;  %v2514_v59 = vadd.f32 %v2513_v10, %v2508_v29 }
 0x8d9   :  { %v2519_v49 = vmul.f32 %v2517_v0, %v2469_v34 }
 0x8db   :  { %v2520_v48 = vadd.f32 %v2519_v49, %v2514_v59 }
 0x91c   :  { %v2799_v25 = vpop.permute.xlu0 %2798  ;;  %v2796_v22 = vpop.permute.xlu1 %2795 }
 0x91d   :  { %v2800_v6 = vmul.f32 %v2799_v25, %v3616_v7  ;;  %v2797_v61 = vmul.f32 %v2796_v22, %v3608_v2 }
 0x91f   :  { %v2821_v12 = vmax.f32 %v2800_v6, 0.0  ;;  %v2820_v40 = vmax.f32 %v2797_v61, 0.0 }
 0x920   :  { %v2802_v57 = vpop.permute.xlu0 %2801  ;;  %v2460_v45 = vpop.permute.xlu1 %2459 }
 0x921   :  { %v2803_v3 = vmul.f32 %v2802_v57, %v3627_v18  ;;  %v2461_v55 = vmul.f32 %v2460_v45, %v3774_v54  ;;  %v2841_v7 = vmul.f32 %v4950_v33, %v2821_v12  ;;  %v2836_v2 = vmul.f32 %v4948_v14, %v2820_v40  ;;  %v3081_v18 = vld [vmem:[%s5087_s9 + $0xc] sm:$0xf] }
 0x923   :  { %v2822_v35 = vmax.f32 %v2803_v3, 0.0  ;;  %v2470_v21 = vmax.f32 %v2461_v55, 0.0  ;;  %v2842_v15 = vadd.f32 %v2841_v7, %v2836_v2  ;;  %v5267_v7 = vld [vmem:[#allocation34_spill] sm:$0xff] }
 0x924   :  { %v2805_v4 = vpop.permute.xlu1 %2804 }
 0x925   :  { %v2525_v31 = vmul.f32 %v2523_v42, %v2470_v21  ;;  %v2806_v30 = vmul.f32 %v2805_v4, %v5261_v16  ;;  %v2847_v24 = vmul.f32 %v4959_v63, %v2822_v35 }
 0x927   :  { %v2526_v41 = vadd.f32 %v2525_v31, %v2520_v48  ;;  %v2823_v37 = vmax.f32 %v2806_v30, 0.0  ;;  %v2848_v16 = vadd.f32 %v2847_v24, %v2842_v15 }
 0x928   :  { %v2809_v53 = vpop.permute.xlu1 %2808 }
 0x929   :  { %v2853_v60 = vmul.f32 %v4972_v56, %v2823_v37  ;;  %v2810_v19 = vmul.f32 %v2809_v53, %v5263_v5  ;;  %3175 = vmatpush3.msk.msra.mxu1 %vm573_vm7, %v2526_v41 }
 0x92a   :  { %3177 = vmatmul.mubr.msk.f32.vlgmr.msra.gmra.mrb[8].mxu1 %vm963_vm6, %v3081_v18  ;;  %3184 = vmatprep.subr.mxu1 %v5266_v62 }
 0x92b   :  { %3186 = vmatprep.mubr.msk.f32.mxu1 %vm3389_vm1, %v5266_v62  ;;  %v2854_v33 = vadd.f32 %v2853_v60, %v2848_v16  ;;  %v2825_v63 = vmax.f32 %v2810_v19, 0.0  ;;  %v2620_v16 = vstv %s2279_s5 }
 0x92c   :  { %v2812_v14 = vpop.permute.xlu1 %2811 }
 0x92d   :  { %v2813_v42 = vmul.f32 %v2812_v14, %v5264_v20  ;;  %v2860_v56 = vadd.f32 %v4980_v32, %v2854_v33  ;;  %v2865_v5 = vmul.f32 %v4985_v1, %v2825_v63  ;;  %v3094_v32 = vld [vmem:[%s5087_s9 + $0x10] sm:$0xf]  ;;  %s3062_s9 = sld [smem:[#allocation2 + $0x104]] }
 0x92f   :  { %v2826_v13 = vmax.f32 %v2813_v42, 0.0  ;;  %v2866_v8 = vadd.f32 %v2865_v5, %v2860_v56  ;;  %v5268_v5 = vld [vmem:[#allocation33_spill] sm:$0xff] }
 0x930   :  { %v2815_v36 = vpop.permute.xlu1 %2814 }
 0x931   :  { %v2816_v23 = vmul.f32 %v2815_v36, %v5265_v26  ;;  %v2875_v38 = vpop.permute.xlu0 %2874  ;;  %v2871_v9 = vmul.f32 %v4998_v51, %v2826_v13 }
 0x933   :  { %v2827_v28 = vmax.f32 %v2816_v23, 0.0  ;;  %v2872_v58 = vadd.f32 %v2871_v9, %v2866_v8  ;;  %s1924_s13 = smul.f32 %s3062_s9, %s4304_s19  ;;  %s3088_s19 = sld [smem:[#allocation2 + $0x204]] }
 0x934   :  { %v2818_v39 = vpop.permute.xlu1 %2817 }
 0x935   :  { %v2877_v62 = vmul.f32 %v2875_v38, %v2827_v28  ;;  %v2819_v17 = vmul.f32 %v2818_v39, %v3774_v54  ;;  %v2265_v21 = vstv %s1924_s13 }
 0x936   :  { %v2881_v50 = vpop.permute.xlu0 %2880 }
 0x937   :  { %v2828_v20 = vmax.f32 %v2819_v17, 0.0  ;;  %v2878_v0 = vadd.f32 %v2877_v62, %v2872_v58  ;;  %v5269_v58 = vld [vmem:[#allocation9_spill] sm:$0xff] }
 0x939   :  { %v2883_v44 = vmul.f32 %v2881_v50, %v2828_v20  ;;  %s2637_s25 = smul.f32 %s3088_s19, %s4487_s20  ;;  %v2988_v20 = vrot.slane %v5269_v58, 3 }
 0x93b   :  { %v2884_v52 = vadd.f32 %v2883_v44, %v2878_v0  ;;  %v2978_v8 = vstv %s2637_s25  ;;  %v3002_v44 = vrot.slane %v5269_v58, 5 }
 0x93d   :  { %3185 = vmatpush3.msk.msra.mxu1 %vm573_vm7, %v2884_v52  ;;  %v5270_v52 = vld [vmem:[#allocation11_spill] sm:$0xff] }
 0x93e   :  { %3187 = vmatmul.mubr.msk.f32.vlgmr.msra.gmra.mrb[10].mxu1 %vm963_vm6, %v3094_v32  ;;  %v2991_v32 = vrot.slane %v5270_v52, 6 }
 0x9a9   :  { %v2246_v26 = vpop.f32.mrb[6].mxu1 }
 0x9aa   :  { %v2254_v1 = vmul.f32 %v2246_v26, %v2246_v26  ;;  %v2250_v51 = vsel %vm573_vm7, %v2246_v26, 0.0  ;;  %v3168_v46 = vpop.f32.mrb[7].mxu1 }
 0x9ab   :  { %2251 = vadd.xlane.f32.xlu0 %v2250_v51 }
 0x9ac   :  { %v2255_v54 = vsel %vm573_vm7, %v2254_v1, 0.0 }
 0x9ad   :  { %2256 = vadd.xlane.f32.xlu1 %v2255_v54 }
 0x9fd   :  { %v2601_v11 = vpop.f32.mrb[8].mxu1 }
 0x9fe   :  { %v2609_v43 = vmul.f32 %v2601_v11, %v2601_v11  ;;  %v2605_v34 = vsel %vm573_vm7, %v2601_v11, 0.0  ;;  %v3178_v25 = vpop.f32.mrb[9].mxu1 }
 0x9ff   :  { %2606 = vadd.xlane.f32.xlu0 %v2605_v34 }
 0xa00   :  { %v2610_v22 = vsel %vm573_vm7, %v2609_v43, 0.0 }
 0xa03   :  { %2611 = vadd.xlane.f32.xlu0 %v2610_v22 }
 0xa11   :  { %v2959_v6 = vpop.f32.mrb[10].mxu1 }
 0xa12   :  { %v2967_v61 = vmul.f32 %v2959_v6, %v2959_v6  ;;  %v2963_v27 = vsel %vm573_vm7, %v2959_v6, 0.0  ;;  %v3188_v10 = vpop.f32.mrb[11].mxu1 }
 0xa13   :  { %2964 = vadd.xlane.f32.xlu0 %v2963_v27  ;;  %v3008_v10 = vrot.slane %v5270_v52, 5 }
 0xa14   :  { %v2968_v29 = vsel %vm573_vm7, %v2967_v61, 0.0 }
 0xa15   :  { %2969 = vadd.xlane.f32.xlu1 %v2968_v29 }
 0xa38   :  { %v2252_v49 = vpop.xlane.xlu0 %2251 }
 0xa39   :  { %v2253_v57 = vmul.f32 0.0078125, %v2252_v49 }
 0xa3a   :  { %v2257_v45 = vpop.xlane.xlu1 %2256 }
 0xa3b   :  { %v2259_v12 = vmul.f32 %v2253_v57, %v2253_v57  ;;  %v2258_v40 = vmul.f32 0.0078125, %v2257_v45  ;;  %v2261_v59 = vsub.f32 %v2246_v26, %v2253_v57  ;;  %v2993_v26 = vrot.slane %v5270_v52, 1 }
 0xa3d   :  { %v2260_v3 = vsub.f32 %v2258_v40, %v2259_v12 }
 0xa3f   :  { %v2262_v55 = vadd.f32 1e-05, %v2260_v3 }
 0xa41   :  { %3335 = vrsqrt.f32 %v2262_v55 }
 0xa4b   :  { %v3336_v35 = vpop.eup %3335 }
 0xa4c   :  { %v2264_v48 = vmul.f32 %v3336_v35, %v2261_v59 }
 0xa4e   :  { %v2266_v4 = vmul.f32 %v2265_v21, %v2264_v48 }
 0xa50   :  { %v2267_v2 = vadd.f32 %v2266_v4, %v5267_v7 }
 0xa8c   :  { %v2607_v31 = vpop.xlane.xlu0 %2606 }
 0xa8d   :  { %v2608_v30 = vmul.f32 0.0078125, %v2607_v31 }
 0xa8f   :  { %v2614_v24 = vmul.f32 %v2608_v30, %v2608_v30  ;;  %v2616_v15 = vsub.f32 %v2601_v11, %v2608_v30  ;;  %v2998_v11 = vrot.slane %v5270_v52, 3 }
 0xa90   :  { %v2612_v41 = vpop.xlane.xlu0 %2611 }
 0xa91   :  { %v2613_v37 = vmul.f32 0.0078125, %v2612_v41 }
 0xa93   :  { %v2615_v18 = vsub.f32 %v2613_v37, %v2614_v24 }
 0xa95   :  { %v2617_v53 = vadd.f32 1e-05, %v2615_v18 }
 0xa97   :  { %3337 = vrsqrt.f32 %v2617_v53 }
 0xaa0   :  { %v2965_v60 = vpop.xlane.xlu0 %2964 }
 0xaa1   :  { %v3338_v19 = vpop.eup %3337  ;;  %v2966_v14 = vmul.f32 0.0078125, %v2965_v60 }
 0xaa2   :  { %v2619_v33 = vmul.f32 %v3338_v19, %v2616_v15  ;;  %v2970_v63 = vpop.xlane.xlu1 %2969 }
 0xaa3   :  { %v2972_v42 = vmul.f32 %v2966_v14, %v2966_v14  ;;  %v2971_v13 = vmul.f32 0.0078125, %v2970_v63  ;;  %v2974_v28 = vsub.f32 %v2959_v6, %v2966_v14  ;;  %v3006_v6 = vrot.slane %v5269_v58, 2 }
 0xaa4   :  { %v2621_v36 = vmul.f32 %v2620_v16, %v2619_v33 }
 0xaa5   :  { %v2973_v56 = vsub.f32 %v2971_v13, %v2972_v42 }
 0xaa6   :  { %v2622_v23 = vadd.f32 %v2621_v36, %v5268_v5 }
 0xaa7   :  { %v2975_v38 = vadd.f32 1e-05, %v2973_v56 }
 0xaa8   :  { %v2626_v9 = vadd.f32 %v2622_v23, %v2267_v2 }
 0xaa9   :  { %3339 = vrsqrt.f32 %v2975_v38 }
 0xab3   :  { %v3340_v39 = vpop.eup %3339 }
 0xab4   :  { %v2977_v62 = vmul.f32 %v3340_v39, %v2974_v28 }
 0xab6   :  { %v2979_v17 = vmul.f32 %v2978_v8, %v2977_v62 }
 0xab8   :  { %v2980_v50 = vadd.f32 %v2979_v17, %v4961_v47 }
 0xaba   :  { %v2984_v0 = vadd.f32 %v2980_v50, %v2626_v9 }
 0xabc   :  { %v2996_v1 = vrot.slane %v2984_v0, 5  ;;  %v3000_v51 = vrot.slane %v2984_v0, 2  ;;  %v3010_v46 = vsel %vm1623_vm9, %v2984_v0, %v2988_v20  ;;  %v3004_v34 = vrot.slane %v2984_v0, 7 }
 0xabd   :  { %v3011_v54 = vsel %vm1625_vm10, %v3010_v46, %v2991_v32 }
 0xabe   :  { %v3012_v43 = vsel %vm1627_vm11, %v3011_v54, %v2993_v26  ;;  %v3017_v47 = vsel %vm1623_vm9, %v3000_v51, %v3002_v44 }
 0xabf   :  { %v3013_v25 = vsel %vm573_vm7, %v3012_v43, %v2996_v1  ;;  %v3018_v22 = vsel %vm1625_vm10, %v3017_v47, %v5270_v52 }
 0xac0   :  { %v3014_v61 = vsel %vm1630_vm12, %v3013_v25, %v5269_v58  ;;  %v3019_v27 = vsel %vm1627_vm11, %v3018_v22, %v2998_v11 }
 0xac1   :  { %v3015_v29 = vsel %vm1632_vm13, %v3014_v61, %v2998_v11  ;;  %v3020_v49 = vsel %vm573_vm7, %v3019_v27, %v3004_v34 }
 0xac2   :  { %v3016_v57 = vsel %vm1634_vm14, %v3015_v29, %v2991_v32  ;;  %v3021_v45 = vsel %vm1630_vm12, %v3020_v49, %v3006_v6 }
 0xac3   :  { %v3022_v12 = vsel %vm1632_vm13, %v3021_v45, %v3008_v10  ;;  %3024 = vst [vmem:[%s5090_s12 + $0x10] sm:$0xff] %v3016_v57 }
 0xac4   :  { %v3023_v40 = vsel %vm1634_vm14, %v3022_v12, %v5270_v52 }
 0xac5   :  { %3025 = vst [vmem:[%s5090_s12 + $0x18] sm:$0xff] %v3023_v40 }
 0xac6   :  { %3030 = vsyncpa [#allocation3], 1 }
 0xac7   :  { %3031 = vsyncpa [#allocation5], 1 }

</bundles_post_ra>
